<compile_context>
chip_gen: v7x
topology: tpu7x:2x2x1
jax: 0.10.0
libtpu: 0.0.40
codegen_flags: <defaults>
</compile_context>

<pallas_src>
import functools
import math

import jax
import jax.numpy as jnp
import numpy as np
from jax import lax
from jax.experimental import pallas as pl
from jax.experimental.pallas import tpu as pltpu

EPS = 1e-6
NEG_BIG = -1e30
_SQRT_2_OVER_PI = 0.7978845608028654


def _gelu_tanh(x):
    # tanh-approximate GELU (tanh uses the EUP transcendental slot on TPU).
    return 0.5 * x * (1.0 + jnp.tanh(_SQRT_2_OVER_PI * (x + 0.044715 * x * x * x)))


# --------------------------------------------------------------------------
# Pallas kernel: full transformer block for one batch element.
# --------------------------------------------------------------------------
def _st_kernel(x_ref, ctx_ref, gc_ref, ropex_ref, ropec_ref, const_ref, kmask_ref,
               wnorm_ref, wqkv_ref, wkv_ref, wpo_ref, wup_ref, wdown_ref,
               o_ref, kw_ref, vw_ref,
               *, nh, dh, dff, n_tok, m_tok, l_pad):
    f32 = jnp.float32
    bf16 = jnp.bfloat16
    inner = nh * dh
    d4 = dh // 4

    x = x_ref[0]          # (N, C)  channels-last tokens
    ctx = ctx_ref[0]      # (M, Cc)
    gc = gc_ref[0]        # (1, Gd)

    sxf = const_ref[0:1, :]       # (1, inner)  sqrt(x_scale) per lane (head-major)
    scf = const_ref[1:2, :]       # (1, inner)  sqrt(cond_scale)
    bpo = const_ref[2:3, :]       # (1, C)      proj_out bias
    # rows 3 .. 3+nh-1 : one-hot head column masks

    # --- AdaRMSNorm(x, global_cond) --------------------------------------
    scale1 = jnp.dot(gc, wnorm_ref[0], preferred_element_type=f32) + 1.0
    xn = x * (scale1 * lax.rsqrt(jnp.mean(x * x, axis=-1, keepdims=True) + EPS))

    # --- QKV / cond-KV projections (bf16 operands, f32 accumulation) ------
    qkv = jnp.dot(xn.astype(bf16), wqkv_ref[...], preferred_element_type=f32)   # (N, 3*inner)
    ckv = jnp.dot(ctx.astype(bf16), wkv_ref[...], preferred_element_type=f32)   # (M, 2*inner)
    q = qkv[:, :inner]
    k = qkv[:, inner:2 * inner]
    v = qkv[:, 2 * inner:]
    ck = ckv[:, :inner]
    cv = ckv[:, inner:]

    def cos_scale(t, sqrt_scale):
        # exact f32 per-head sum of squares, broadcast back per head (VPU only;
        # the tiny per-head reduces are cheap -- nh is small here).
        parts = []
        for hh in range(nh):
            th = t[:, hh * dh:(hh + 1) * dh]
            ssh = jnp.sum(th * th, axis=-1, keepdims=True)
            parts.append(jnp.broadcast_to(ssh, (t.shape[0], dh)))
        ss = jnp.concatenate(parts, axis=-1)
        return t * (sqrt_scale * lax.rsqrt(ss + EPS))

    def rope(t, cos_f, sin_a, sin_b):
        # full-width exact rotation: out = t*cos + shift(t,-d4)*sinB - shift(t,+d4)*sinA
        # (sinA nonzero only on "a" lanes, sinB only on "b" lanes, both zero on rest,
        #  so the cyclic wrap of the full-width rolls never leaks across heads).
        left = jnp.concatenate([t[:, d4:], t[:, :d4]], axis=-1)                 # t[l+d4]
        right = jnp.concatenate([t[:, inner - d4:], t[:, :inner - d4]], axis=-1)  # t[l-d4]
        return t * cos_f + right * sin_b - left * sin_a

    q = rope(cos_scale(q, sxf), ropex_ref[0], ropex_ref[1], ropex_ref[2])
    k = rope(cos_scale(k, sxf), ropex_ref[0], ropex_ref[1], ropex_ref[2])
    ck = rope(cos_scale(ck, scf), ropec_ref[0], ropec_ref[1], ropec_ref[2])

    # --- block-diagonal wide K / V assembled in persistent VMEM scratch ----
    # block h rows [h*l_pad, h*l_pad+N)     <- self keys/values, other-head cols zeroed
    #          rows [.. +N, .. +N+M)        <- cond keys/values
    #          rows [.. +N+M, (h+1)*l_pad)  <- zero padding (masked / zero-prob)
    pad = l_pad - n_tok - m_tok
    zpad = jnp.zeros((pad, inner), f32) if pad > 0 else None
    for hh in range(nh):
        hrow = const_ref[3 + hh:4 + hh, :]          # (1, inner) one-hot head mask
        base = hh * l_pad
        kw_ref[base:base + n_tok, :] = k * hrow
        vw_ref[base:base + n_tok, :] = v * hrow
        kw_ref[base + n_tok:base + n_tok + m_tok, :] = ck * hrow
        vw_ref[base + n_tok:base + n_tok + m_tok, :] = cv * hrow
        if pad > 0:
            # cheap per-step fill; could be hoisted under pl.when(program_id==0)
            # since scratch persists across grid iterations.
            kw_ref[base + n_tok + m_tok:base + l_pad, :] = zpad
            vw_ref[base + n_tok + m_tok:base + l_pad, :] = zpad

    kw = kw_ref[...].astype(bf16)                    # (nh*l_pad, inner)
    vw = vw_ref[...].astype(bf16)

    # --- fused multi-head attention: ONE lane-dense score matmul -----------
    s = lax.dot_general(q.astype(bf16), kw, (((1,), (1,)), ((), ())),
                        preferred_element_type=f32)               # (N, nh*l_pad)
    s = s + kmask_ref[...]                                        # -1e30 on pad columns

    # per-head softmax (slices are 128-lane aligned); exact exp/sum/divide.
    probs = []
    for hh in range(nh):
        sh = s[:, hh * l_pad:(hh + 1) * l_pad]
        sh = sh - jnp.max(sh, axis=-1, keepdims=True)
        ph = jnp.exp(sh)
        probs.append(ph / jnp.sum(ph, axis=-1, keepdims=True))
    p = jnp.concatenate(probs, axis=-1)                           # (N, nh*l_pad)

    o = jnp.dot(p.astype(bf16), vw, preferred_element_type=f32)   # (N, inner) one matmul
    y = jnp.dot(o.astype(bf16), wpo_ref[...], preferred_element_type=f32) + bpo
    x1 = y + x

    # --- FeedForwardBlock: AdaRMSNorm -> GEGLU(tanh) -> down -> residual ---
    scale2 = jnp.dot(gc, wnorm_ref[1], preferred_element_type=f32) + 1.0
    xn2 = x1 * (scale2 * lax.rsqrt(jnp.mean(x1 * x1, axis=-1, keepdims=True) + EPS))
    up = jnp.dot(xn2.astype(bf16), wup_ref[...], preferred_element_type=f32)   # (N, 2*dff)
    g = up[:, :dff] * _gelu_tanh(up[:, dff:])
    down = jnp.dot(g.astype(bf16), wdown_ref[...], preferred_element_type=f32)

    o_ref[0] = (down + x1).astype(o_ref.dtype)


# --------------------------------------------------------------------------
# Host-side precompute helpers
# --------------------------------------------------------------------------
def _rope_theta(pos_img, freqs):
    """pos_img (h,w,2); freqs (nh, dh//8) -> theta (L, nh, dh//4)."""
    p = pos_img.reshape(-1, 2).astype(jnp.float32)
    th = p[:, None, 0:1] * freqs
    tw = p[:, None, 1:2] * freqs
    return jnp.concatenate([th, tw], axis=-1)


def _rope_tables(pos_img, freqs, nh, dh):
    """(3, L, nh*dh): full-width head-major rows [cos | sinA | sinB].
       cos = [cos,cos,1], sinA nonzero on the first d4 lanes of each head,
       sinB nonzero on the next d4 lanes, zero elsewhere."""
    d4 = dh // 4
    theta = _rope_theta(pos_img, freqs)                 # (L, nh, d4)
    L = theta.shape[0]
    cos_t, sin_t = jnp.cos(theta), jnp.sin(theta)
    ones_r = jnp.ones((L, nh, dh - 2 * d4), jnp.float32)
    zer_r = jnp.zeros((L, nh, dh - 2 * d4), jnp.float32)
    zer_4 = jnp.zeros((L, nh, d4), jnp.float32)
    cos_full = jnp.concatenate([cos_t, cos_t, ones_r], axis=-1).reshape(L, nh * dh)
    sin_a = jnp.concatenate([sin_t, zer_4, zer_r], axis=-1).reshape(L, nh * dh)
    sin_b = jnp.concatenate([zer_4, sin_t, zer_r], axis=-1).reshape(L, nh * dh)
    return jnp.stack([cos_full, sin_a, sin_b], axis=0)


# --------------------------------------------------------------------------
# Wrapper: preprocess + pallas_call
# --------------------------------------------------------------------------
def spatial_transformer_forward(x, pos, global_cond, context, context_pos, params,
                                *, n_heads, d_head):
    b, c, h, w = x.shape
    _, cc, hc, wc = context.shape
    N, M = h * w, hc * wc
    inner = n_heads * d_head
    assert inner == c, "proj_out/residual requires n_heads * d_head == in_channels"
    dff = int(c * 2)
    gd = global_cond.shape[1]
    l_pad = ((N + M + 127) // 128) * 128
    lw = n_heads * l_pad
    f32, bf16 = jnp.float32, jnp.bfloat16

    x_seq = jnp.transpose(x, (0, 2, 3, 1)).reshape(b, N, c).astype(f32)
    ctx_seq = jnp.transpose(context, (0, 2, 3, 1)).reshape(b, M, cc).astype(f32)
    gc = global_cond.reshape(b, 1, gd).astype(f32)

    rope_x = _rope_tables(pos, params["freqs"], n_heads, d_head)          # (3, N, inner)
    rope_c = _rope_tables(context_pos, params["freqs"], n_heads, d_head)  # (3, M, inner)

    # packed small constants: rows = [sqrt(x_scale) | sqrt(cond_scale) | proj bias | head one-hots]
    sxf = jnp.repeat(jnp.sqrt(params["x_scale"]), d_head).reshape(1, inner)
    scf = jnp.repeat(jnp.sqrt(params["cond_scale"]), d_head).reshape(1, inner)
    bpo = params["proj_b"].reshape(1, inner)
    hrows = jnp.repeat(jnp.eye(n_heads, dtype=f32), d_head, axis=1)       # (nh, inner)
    consts = jnp.concatenate([sxf, scf, bpo, hrows], axis=0).astype(f32)  # (3+nh, inner)

    kcol = jnp.where(jnp.arange(l_pad) < (N + M), 0.0, NEG_BIG).astype(f32)
    kmask = jnp.tile(kcol, (n_heads,)).reshape(1, lw)

    wnorm = jnp.stack([params["norm1_w"].T, params["ff_norm_w"].T], axis=0).astype(f32)
    wqkv = params["qkv_w"].T.astype(bf16)
    wkv = params["kv_w"].T.astype(bf16)
    wpo = params["proj_w"].T.astype(bf16)
    wup = params["ff_up_w"].T.astype(bf16)
    wdown = params["ff_down_w"].T.astype(bf16)

    kernel = functools.partial(_st_kernel, nh=n_heads, dh=d_head, dff=dff,
                               n_tok=N, m_tok=M, l_pad=l_pad)

    bmap = lambda i: (i, 0, 0)
    fix2 = lambda i: (0, 0)
    fix3 = lambda i: (0, 0, 0)

    in_specs = [
        pl.BlockSpec((1, N, c), bmap),            # x tokens
        pl.BlockSpec((1, M, cc), bmap),           # context tokens
        pl.BlockSpec((1, 1, gd), bmap),           # global cond
        pl.BlockSpec((3, N, inner), fix3),        # rope_x [cos|sinA|sinB]
        pl.BlockSpec((3, M, inner), fix3),        # rope_c
        pl.BlockSpec((3 + n_heads, inner), fix2), # packed constants
        pl.BlockSpec((1, lw), fix2),              # additive key padding mask (wide)
        pl.BlockSpec((2, gd, c), fix3),           # [norm1 | ff_norm] W^T (f32)
        pl.BlockSpec((c, 3 * inner), fix2),       # qkv W^T (bf16)
        pl.BlockSpec((cc, 2 * inner), fix2),      # cond kv W^T (bf16)
        pl.BlockSpec((inner, c), fix2),           # proj_out W^T (bf16)
        pl.BlockSpec((c, 2 * dff), fix2),         # ff up W^T (bf16)
        pl.BlockSpec((dff, c), fix2),             # ff down W^T (bf16)
    ]

    out = pl.pallas_call(
        kernel,
        out_shape=jax.ShapeDtypeStruct((b, N, c), f32),
        grid=(b,),
        in_specs=in_specs,
        out_specs=pl.BlockSpec((1, N, c), bmap),
        scratch_shapes=[pltpu.VMEM((lw, inner), f32),     # wide K (block-diagonal)
                        pltpu.VMEM((lw, inner), f32)],    # wide V (block-diagonal)
        compiler_params=pltpu.CompilerParams(
            dimension_semantics=("parallel",),
            vmem_limit_bytes=48 * 1024 * 1024),
    )(x_seq, ctx_seq, gc, rope_x, rope_c, consts, kmask,
      wnorm, wqkv, wkv, wpo, wup, wdown)

    return jnp.transpose(out.reshape(b, h, w, c), (0, 3, 1, 2))


# --------------------------------------------------------------------------
# Pure-JAX reference (same math, same bf16 matmul boundaries) for verification.
# --------------------------------------------------------------------------
def reference_forward(x, pos, global_cond, context, context_pos, params,
                      *, n_heads, d_head):
    b, c, h, w = x.shape
    _, cc, hc, wc = context.shape
    N, M = h * w, hc * wc
    inner = n_heads * d_head
    d4 = d_head // 4
    dff = int(c * 2)
    f32, bf16 = jnp.float32, jnp.bfloat16

    x_seq = jnp.transpose(x, (0, 2, 3, 1)).reshape(b, N, c).astype(f32)
    ctx_seq = jnp.transpose(context, (0, 2, 3, 1)).reshape(b, M, cc).astype(f32)
    gc = global_cond.astype(f32)

    wqkv = params["qkv_w"].T.astype(bf16)
    wkv = params["kv_w"].T.astype(bf16)
    wpo = params["proj_w"].T.astype(bf16)
    wup = params["ff_up_w"].T.astype(bf16)
    wdown = params["ff_down_w"].T.astype(bf16)

    def rot(t, cos, sin):
        a, b_, rest = t[..., :d4], t[..., d4:2 * d4], t[..., 2 * d4:]
        return jnp.concatenate([a * cos - b_ * sin, b_ * cos + a * sin, rest], axis=-1)

    tx = _rope_theta(pos, params["freqs"])[None]            # (1, N, nh, d4)
    tc = _rope_theta(context_pos, params["freqs"])[None]    # (1, M, nh, d4)

    scale1 = gc @ params["norm1_w"].T + 1.0
    xn = x_seq * (scale1[:, None, :] * lax.rsqrt(jnp.mean(x_seq ** 2, -1, keepdims=True) + EPS))

    qkv = jnp.einsum('bnc,cd->bnd', xn.astype(bf16), wqkv,
                     preferred_element_type=f32).reshape(b, N, 3, n_heads, d_head)
    q, k, v = qkv[:, :, 0], qkv[:, :, 1], qkv[:, :, 2]
    sq = jnp.sqrt(params["x_scale"])[None, None, :, None]
    q = q * (sq * lax.rsqrt(jnp.sum(q * q, -1, keepdims=True) + EPS))
    k = k * (sq * lax.rsqrt(jnp.sum(k * k, -1, keepdims=True) + EPS))
    q = rot(q, jnp.cos(tx), jnp.sin(tx))
    k = rot(k, jnp.cos(tx), jnp.sin(tx))

    ckv = jnp.einsum('bmc,cd->bmd', ctx_seq.astype(bf16), wkv,
                     preferred_element_type=f32).reshape(b, M, 2, n_heads, d_head)
    ck, cv = ckv[:, :, 0], ckv[:, :, 1]
    sc = jnp.sqrt(params["cond_scale"])[None, None, :, None]
    ck = ck * (sc * lax.rsqrt(jnp.sum(ck * ck, -1, keepdims=True) + EPS))
    ck = rot(ck, jnp.cos(tc), jnp.sin(tc))

    K = jnp.concatenate([k, ck], axis=1)
    V = jnp.concatenate([v, cv], axis=1)
    s = jnp.einsum('bqhd,bkhd->bhqk', q.astype(bf16), K.astype(bf16),
                   preferred_element_type=f32)
    s = s - jnp.max(s, axis=-1, keepdims=True)
    e = jnp.exp(s)
    p = e / jnp.sum(e, axis=-1, keepdims=True)
    o = jnp.einsum('bhqk,bkhd->bqhd', p.astype(bf16), V.astype(bf16),
                   preferred_element_type=f32).reshape(b, N, inner)

    y = jnp.einsum('bnd,dc->bnc', o.astype(bf16), wpo,
                   preferred_element_type=f32) + params["proj_b"]
    x1 = y + x_seq

    scale2 = gc @ params["ff_norm_w"].T + 1.0
    xn2 = x1 * (scale2[:, None, :] * lax.rsqrt(jnp.mean(x1 ** 2, -1, keepdims=True) + EPS))
    up = jnp.einsum('bnc,cd->bnd', xn2.astype(bf16), wup, preferred_element_type=f32)
    g = up[..., :dff] * _gelu_tanh(up[..., dff:])
    out = jnp.einsum('bnd,dc->bnc', g.astype(bf16), wdown,
                     preferred_element_type=f32) + x1
    return jnp.transpose(out.reshape(b, h, w, c), (0, 3, 1, 2))


# --------------------------------------------------------------------------
def init_params(key, *, in_channels, n_heads, d_head, global_cond_dim, context_dim):
    c = in_channels
    inner = n_heads * d_head
    dff = int(c * 2)
    rope_dim = d_head // 2
    nf = n_heads * (rope_dim // 4)
    freqs = jnp.exp(jnp.linspace(math.log(math.pi), math.log(10.0 * math.pi), nf + 1)[:-1])
    freqs = freqs.reshape(rope_dim // 4, n_heads).T.astype(jnp.float32)   # (nh, rope_dim//4)

    ks = jax.random.split(key, 8)

    def w(k, shape, fan_in, scale=1.0):
        return (jax.random.normal(k, shape, jnp.float32) / math.sqrt(fan_in)) * scale

    return dict(
        norm1_w=w(ks[0], (c, global_cond_dim), global_cond_dim, 0.1),   # zero-init in torch
        qkv_w=w(ks[1], (3 * inner, c), c),
        x_scale=jnp.full((n_heads,), 10.0, jnp.float32),
        kv_w=w(ks[2], (2 * inner, context_dim), context_dim),
        cond_scale=jnp.full((n_heads,), 10.0, jnp.float32),
        proj_w=w(ks[3], (inner, c), c),                                  # zero-init in torch
        proj_b=w(ks[4], (inner,), c),
        ff_norm_w=w(ks[5], (c, global_cond_dim), global_cond_dim, 0.1),  # zero-init in torch
        ff_up_w=w(ks[6], (2 * dff, c), c),
        ff_down_w=w(ks[7], (c, dff), dff),                               # zero-init in torch
        freqs=freqs,
    )


if __name__ == "__main__":
    # small shapes consistent with the module (inner_dim == in_channels)
    b, in_channels, h, w = 2, 32, 8, 8
    n_heads, d_head = 2, 16
    global_cond_dim = 24
    context_dim, hc, wc = 16, 4, 4

    key = jax.random.PRNGKey(0)
    kx, kc, kg, kp = jax.random.split(key, 4)

    x = jax.random.normal(kx, (b, in_channels, h, w), jnp.float32)
    context = jax.random.normal(kc, (b, context_dim, hc, wc), jnp.float32)
    global_cond = jax.random.normal(kg, (b, global_cond_dim), jnp.float32)

    def axial_pos(hh, ww):
        ys = jnp.linspace(-1.0, 1.0, hh)
        xs = jnp.linspace(-1.0, 1.0, ww)
        return jnp.stack(jnp.meshgrid(ys, xs, indexing="ij"), axis=-1)   # (hh, ww, 2)

    pos = axial_pos(h, w)
    context_pos = axial_pos(hc, wc)

    params = init_params(kp, in_channels=in_channels, n_heads=n_heads, d_head=d_head,
                         global_cond_dim=global_cond_dim, context_dim=context_dim)

    out = spatial_transformer_forward(x, pos, global_cond, context, context_pos, params,
                                      n_heads=n_heads, d_head=d_head)
    out = jax.block_until_ready(out)

    ref = reference_forward(x, pos, global_cond, context, context_pos, params,
                            n_heads=n_heads, d_head=d_head)
    ref = jax.block_until_ready(ref)

    assert out.shape == x.shape
    np.testing.assert_allclose(np.asarray(out), np.asarray(ref), rtol=1e-2, atol=1e-2)
    print("KERNEL_OK")
</pallas_src>

<mosaic_0001>
module attributes {stable_mosaic.version = 11 : i64} {
  func.func @_st_kernel(%arg0: i32, %arg1: memref<1x64x32xf32, #tpu.memory_space<vmem>>, %arg2: memref<1x16x16xf32, #tpu.memory_space<vmem>>, %arg3: memref<1x1x24xf32, #tpu.memory_space<vmem>>, %arg4: memref<3x64x32xf32, #tpu.memory_space<vmem>>, %arg5: memref<3x16x32xf32, #tpu.memory_space<vmem>>, %arg6: memref<5x32xf32, #tpu.memory_space<vmem>>, %arg7: memref<1x256xf32, #tpu.memory_space<vmem>>, %arg8: memref<2x24x32xf32, #tpu.memory_space<vmem>>, %arg9: memref<32x96xbf16, #tpu.memory_space<vmem>>, %arg10: memref<16x64xbf16, #tpu.memory_space<vmem>>, %arg11: memref<32x32xbf16, #tpu.memory_space<vmem>>, %arg12: memref<32x128xbf16, #tpu.memory_space<vmem>>, %arg13: memref<64x32xbf16, #tpu.memory_space<vmem>>, %arg14: memref<1x64x32xf32, #tpu.memory_space<vmem>>, %arg15: memref<256x32xf32, #tpu.memory_space<vmem>>, %arg16: memref<256x32xf32, #tpu.memory_space<vmem>>) attributes {dimension_semantics = [#tpu.dimension_semantics<parallel>], iteration_bounds = array<i64: 2>, scalar_prefetch = 0 : i64, scratch_operands = 2 : i64, tpu.core_type = #tpu.core_type<tc>, window_params = [{transform_indices = @transform_0, window_bounds = array<i64: 1, 64, 32>}, {transform_indices = @transform_1, window_bounds = array<i64: 1, 16, 16>}, {transform_indices = @transform_2, window_bounds = array<i64: 1, 1, 24>}, {pipeline_mode = #tpu.pipeline_mode<synchronous>, transform_indices = @transform_3, window_bounds = array<i64: 3, 64, 32>}, {pipeline_mode = #tpu.pipeline_mode<synchronous>, transform_indices = @transform_4, window_bounds = array<i64: 3, 16, 32>}, {pipeline_mode = #tpu.pipeline_mode<synchronous>, transform_indices = @transform_5, window_bounds = array<i64: 5, 32>}, {pipeline_mode = #tpu.pipeline_mode<synchronous>, transform_indices = @transform_6, window_bounds = array<i64: 1, 256>}, {pipeline_mode = #tpu.pipeline_mode<synchronous>, transform_indices = @transform_7, window_bounds = array<i64: 2, 24, 32>}, {pipeline_mode = #tpu.pipeline_mode<synchronous>, transform_indices = @transform_8, window_bounds = array<i64: 32, 96>}, {pipeline_mode = #tpu.pipeline_mode<synchronous>, transform_indices = @transform_9, window_bounds = array<i64: 16, 64>}, {pipeline_mode = #tpu.pipeline_mode<synchronous>, transform_indices = @transform_10, window_bounds = array<i64: 32, 32>}, {pipeline_mode = #tpu.pipeline_mode<synchronous>, transform_indices = @transform_11, window_bounds = array<i64: 32, 128>}, {pipeline_mode = #tpu.pipeline_mode<synchronous>, transform_indices = @transform_12, window_bounds = array<i64: 64, 32>}, {transform_indices = @transform_13, window_bounds = array<i64: 1, 64, 32>}]} {
    %c0 = arith.constant 0 : index
    %c0_0 = arith.constant 0 : index
    %c0_1 = arith.constant 0 : index
    %0 = vector.load %arg1[%c0, %c0_0, %c0_1] : memref<1x64x32xf32, #tpu.memory_space<vmem>>, vector<1x64x32xf32>
    %1 = vector.shape_cast %0 : vector<1x64x32xf32> to vector<64x32xf32>
    %c0_2 = arith.constant 0 : index
    %c0_3 = arith.constant 0 : index
    %c0_4 = arith.constant 0 : index
    %2 = vector.load %arg2[%c0_2, %c0_3, %c0_4] : memref<1x16x16xf32, #tpu.memory_space<vmem>>, vector<1x16x16xf32>
    %3 = vector.shape_cast %2 : vector<1x16x16xf32> to vector<16x16xf32>
    %c0_5 = arith.constant 0 : index
    %c0_6 = arith.constant 0 : index
    %c0_7 = arith.constant 0 : index
    %4 = vector.load %arg3[%c0_5, %c0_6, %c0_7] : memref<1x1x24xf32, #tpu.memory_space<vmem>>, vector<1x1x24xf32>
    %5 = vector.shape_cast %4 : vector<1x1x24xf32> to vector<1x24xf32>
    %c0_8 = arith.constant 0 : index
    %c0_9 = arith.constant 0 : index
    %6 = vector.load %arg6[%c0_8, %c0_9] : memref<5x32xf32, #tpu.memory_space<vmem>>, vector<1x32xf32>
    %c1 = arith.constant 1 : index
    %c0_10 = arith.constant 0 : index
    %7 = vector.load %arg6[%c1, %c0_10] : memref<5x32xf32, #tpu.memory_space<vmem>>, vector<1x32xf32>
    %c2 = arith.constant 2 : index
    %c0_11 = arith.constant 0 : index
    %8 = vector.load %arg6[%c2, %c0_11] : memref<5x32xf32, #tpu.memory_space<vmem>>, vector<1x32xf32>
    %c0_12 = arith.constant 0 : index
    %c0_13 = arith.constant 0 : index
    %c0_14 = arith.constant 0 : index
    %9 = vector.load %arg8[%c0_12, %c0_13, %c0_14] : memref<2x24x32xf32, #tpu.memory_space<vmem>>, vector<1x24x32xf32>
    %10 = vector.shape_cast %9 : vector<1x24x32xf32> to vector<24x32xf32>
    %cst = arith.constant dense<0.000000e+00> : vector<1x32xf32>
    %11 = tpu.matmul %5, %10, %cst {dimension_numbers = #tpu.dot_dimension_numbers<[1], [0], [0], [1], [0, 0, 1, 1], [], []>} : vector<1x24xf32>, vector<24x32xf32>, vector<1x32xf32> -> vector<1x32xf32>
    %cst_15 = arith.constant 1.000000e+00 : f32
    %12 = vector.broadcast %cst_15 : f32 to vector<1x32xf32>
    %13 = arith.addf %11, %12 : vector<1x32xf32>
    %14 = arith.mulf %1, %1 : vector<64x32xf32>
    %cst_16 = arith.constant dense<0.000000e+00> : vector<64xf32>
    %15 = vector.multi_reduction <add>, %14, %cst_16 [1] : vector<64x32xf32> to vector<64xf32>
    %16 = vector.shape_cast %15 : vector<64xf32> to vector<64x1xf32>
    %cst_17 = arith.constant 3.200000e+01 : f32
    %17 = vector.broadcast %cst_17 : f32 to vector<64x1xf32>
    %18 = arith.divf %16, %17 : vector<64x1xf32>
    %cst_18 = arith.constant 9.99999997E-7 : f32
    %19 = vector.broadcast %cst_18 : f32 to vector<64x1xf32>
    %20 = arith.addf %18, %19 : vector<64x1xf32>
    %21 = math.rsqrt %20 : vector<64x1xf32>
    %22 = vector.broadcast %13 : vector<1x32xf32> to vector<64x32xf32>
    %23 = vector.broadcast %21 : vector<64x1xf32> to vector<64x32xf32>
    %24 = arith.mulf %22, %23 : vector<64x32xf32>
    %25 = arith.mulf %1, %24 : vector<64x32xf32>
    %26 = arith.truncf %25 : vector<64x32xf32> to vector<64x32xbf16>
    %c0_19 = arith.constant 0 : index
    %c0_20 = arith.constant 0 : index
    %27 = vector.load %arg9[%c0_19, %c0_20] : memref<32x96xbf16, #tpu.memory_space<vmem>>, vector<32x96xbf16>
    %cst_21 = arith.constant dense<0.000000e+00> : vector<64x96xf32>
    %28 = tpu.matmul %26, %27, %cst_21 {dimension_numbers = #tpu.dot_dimension_numbers<[1], [0], [0], [1], [0, 0, 1, 1], [], []>} : vector<64x32xbf16>, vector<32x96xbf16>, vector<64x96xf32> -> vector<64x96xf32>
    %29 = arith.truncf %3 : vector<16x16xf32> to vector<16x16xbf16>
    %c0_22 = arith.constant 0 : index
    %c0_23 = arith.constant 0 : index
    %30 = vector.load %arg10[%c0_22, %c0_23] : memref<16x64xbf16, #tpu.memory_space<vmem>>, vector<16x64xbf16>
    %cst_24 = arith.constant dense<0.000000e+00> : vector<16x64xf32>
    %31 = tpu.matmul %29, %30, %cst_24 {dimension_numbers = #tpu.dot_dimension_numbers<[1], [0], [0], [1], [0, 0, 1, 1], [], []>} : vector<16x16xbf16>, vector<16x64xbf16>, vector<16x64xf32> -> vector<16x64xf32>
    %32 = vector.extract_strided_slice %28 {offsets = [0, 0], sizes = [64, 32], strides = [1, 1]} : vector<64x96xf32> to vector<64x32xf32>
    %33 = vector.extract_strided_slice %28 {offsets = [0, 32], sizes = [64, 32], strides = [1, 1]} : vector<64x96xf32> to vector<64x32xf32>
    %34 = vector.extract_strided_slice %28 {offsets = [0, 64], sizes = [64, 32], strides = [1, 1]} : vector<64x96xf32> to vector<64x32xf32>
    %35 = vector.extract_strided_slice %31 {offsets = [0, 0], sizes = [16, 32], strides = [1, 1]} : vector<16x64xf32> to vector<16x32xf32>
    %36 = vector.extract_strided_slice %31 {offsets = [0, 32], sizes = [16, 32], strides = [1, 1]} : vector<16x64xf32> to vector<16x32xf32>
    %37 = vector.extract_strided_slice %32 {offsets = [0, 0], sizes = [64, 16], strides = [1, 1]} : vector<64x32xf32> to vector<64x16xf32>
    %38 = arith.mulf %37, %37 : vector<64x16xf32>
    %cst_25 = arith.constant dense<0.000000e+00> : vector<64xf32>
    %39 = vector.multi_reduction <add>, %38, %cst_25 [1] : vector<64x16xf32> to vector<64xf32>
    %40 = vector.shape_cast %39 : vector<64xf32> to vector<64x1xf32>
    %41 = vector.shape_cast %40 : vector<64x1xf32> to vector<64x1xf32>
    %42 = vector.broadcast %41 : vector<64x1xf32> to vector<64x16xf32>
    %43 = vector.extract_strided_slice %32 {offsets = [0, 16], sizes = [64, 16], strides = [1, 1]} : vector<64x32xf32> to vector<64x16xf32>
    %44 = arith.mulf %43, %43 : vector<64x16xf32>
    %cst_26 = arith.constant dense<0.000000e+00> : vector<64xf32>
    %45 = vector.multi_reduction <add>, %44, %cst_26 [1] : vector<64x16xf32> to vector<64xf32>
    %46 = vector.shape_cast %45 : vector<64xf32> to vector<64x1xf32>
    %47 = vector.shape_cast %46 : vector<64x1xf32> to vector<64x1xf32>
    %48 = vector.broadcast %47 : vector<64x1xf32> to vector<64x16xf32>
    %49 = tpu.concatenate %42, %48 in 1 : vector<64x16xf32>, vector<64x16xf32> -> vector<64x32xf32>
    %cst_27 = arith.constant 9.99999997E-7 : f32
    %50 = vector.broadcast %cst_27 : f32 to vector<64x32xf32>
    %51 = arith.addf %49, %50 : vector<64x32xf32>
    %52 = math.rsqrt %51 : vector<64x32xf32>
    %53 = vector.broadcast %6 : vector<1x32xf32> to vector<64x32xf32>
    %54 = arith.mulf %53, %52 : vector<64x32xf32>
    %55 = arith.mulf %32, %54 : vector<64x32xf32>
    %c0_28 = arith.constant 0 : index
    %c0_29 = arith.constant 0 : index
    %c0_30 = arith.constant 0 : index
    %56 = vector.load %arg4[%c0_28, %c0_29, %c0_30] : memref<3x64x32xf32, #tpu.memory_space<vmem>>, vector<1x64x32xf32>
    %57 = vector.shape_cast %56 : vector<1x64x32xf32> to vector<64x32xf32>
    %c1_31 = arith.constant 1 : index
    %c0_32 = arith.constant 0 : index
    %c0_33 = arith.constant 0 : index
    %58 = vector.load %arg4[%c1_31, %c0_32, %c0_33] : memref<3x64x32xf32, #tpu.memory_space<vmem>>, vector<1x64x32xf32>
    %59 = vector.shape_cast %58 : vector<1x64x32xf32> to vector<64x32xf32>
    %c2_34 = arith.constant 2 : index
    %c0_35 = arith.constant 0 : index
    %c0_36 = arith.constant 0 : index
    %60 = vector.load %arg4[%c2_34, %c0_35, %c0_36] : memref<3x64x32xf32, #tpu.memory_space<vmem>>, vector<1x64x32xf32>
    %61 = vector.shape_cast %60 : vector<1x64x32xf32> to vector<64x32xf32>
    %62 = vector.extract_strided_slice %55 {offsets = [0, 4], sizes = [64, 28], strides = [1, 1]} : vector<64x32xf32> to vector<64x28xf32>
    %63 = vector.extract_strided_slice %55 {offsets = [0, 0], sizes = [64, 4], strides = [1, 1]} : vector<64x32xf32> to vector<64x4xf32>
    %64 = tpu.concatenate %62, %63 in 1 : vector<64x28xf32>, vector<64x4xf32> -> vector<64x32xf32>
    %65 = vector.extract_strided_slice %55 {offsets = [0, 28], sizes = [64, 4], strides = [1, 1]} : vector<64x32xf32> to vector<64x4xf32>
    %66 = vector.extract_strided_slice %55 {offsets = [0, 0], sizes = [64, 28], strides = [1, 1]} : vector<64x32xf32> to vector<64x28xf32>
    %67 = tpu.concatenate %65, %66 in 1 : vector<64x4xf32>, vector<64x28xf32> -> vector<64x32xf32>
    %68 = arith.mulf %55, %57 : vector<64x32xf32>
    %69 = arith.mulf %67, %61 : vector<64x32xf32>
    %70 = arith.addf %68, %69 : vector<64x32xf32>
    %71 = arith.mulf %64, %59 : vector<64x32xf32>
    %72 = arith.subf %70, %71 : vector<64x32xf32>
    %73 = vector.extract_strided_slice %33 {offsets = [0, 0], sizes = [64, 16], strides = [1, 1]} : vector<64x32xf32> to vector<64x16xf32>
    %74 = arith.mulf %73, %73 : vector<64x16xf32>
    %cst_37 = arith.constant dense<0.000000e+00> : vector<64xf32>
    %75 = vector.multi_reduction <add>, %74, %cst_37 [1] : vector<64x16xf32> to vector<64xf32>
    %76 = vector.shape_cast %75 : vector<64xf32> to vector<64x1xf32>
    %77 = vector.shape_cast %76 : vector<64x1xf32> to vector<64x1xf32>
    %78 = vector.broadcast %77 : vector<64x1xf32> to vector<64x16xf32>
    %79 = vector.extract_strided_slice %33 {offsets = [0, 16], sizes = [64, 16], strides = [1, 1]} : vector<64x32xf32> to vector<64x16xf32>
    %80 = arith.mulf %79, %79 : vector<64x16xf32>
    %cst_38 = arith.constant dense<0.000000e+00> : vector<64xf32>
    %81 = vector.multi_reduction <add>, %80, %cst_38 [1] : vector<64x16xf32> to vector<64xf32>
    %82 = vector.shape_cast %81 : vector<64xf32> to vector<64x1xf32>
    %83 = vector.shape_cast %82 : vector<64x1xf32> to vector<64x1xf32>
    %84 = vector.broadcast %83 : vector<64x1xf32> to vector<64x16xf32>
    %85 = tpu.concatenate %78, %84 in 1 : vector<64x16xf32>, vector<64x16xf32> -> vector<64x32xf32>
    %cst_39 = arith.constant 9.99999997E-7 : f32
    %86 = vector.broadcast %cst_39 : f32 to vector<64x32xf32>
    %87 = arith.addf %85, %86 : vector<64x32xf32>
    %88 = math.rsqrt %87 : vector<64x32xf32>
    %89 = vector.broadcast %6 : vector<1x32xf32> to vector<64x32xf32>
    %90 = arith.mulf %89, %88 : vector<64x32xf32>
    %91 = arith.mulf %33, %90 : vector<64x32xf32>
    %c0_40 = arith.constant 0 : index
    %c0_41 = arith.constant 0 : index
    %c0_42 = arith.constant 0 : index
    %92 = vector.load %arg4[%c0_40, %c0_41, %c0_42] : memref<3x64x32xf32, #tpu.memory_space<vmem>>, vector<1x64x32xf32>
    %93 = vector.shape_cast %92 : vector<1x64x32xf32> to vector<64x32xf32>
    %c1_43 = arith.constant 1 : index
    %c0_44 = arith.constant 0 : index
    %c0_45 = arith.constant 0 : index
    %94 = vector.load %arg4[%c1_43, %c0_44, %c0_45] : memref<3x64x32xf32, #tpu.memory_space<vmem>>, vector<1x64x32xf32>
    %95 = vector.shape_cast %94 : vector<1x64x32xf32> to vector<64x32xf32>
    %c2_46 = arith.constant 2 : index
    %c0_47 = arith.constant 0 : index
    %c0_48 = arith.constant 0 : index
    %96 = vector.load %arg4[%c2_46, %c0_47, %c0_48] : memref<3x64x32xf32, #tpu.memory_space<vmem>>, vector<1x64x32xf32>
    %97 = vector.shape_cast %96 : vector<1x64x32xf32> to vector<64x32xf32>
    %98 = vector.extract_strided_slice %91 {offsets = [0, 4], sizes = [64, 28], strides = [1, 1]} : vector<64x32xf32> to vector<64x28xf32>
    %99 = vector.extract_strided_slice %91 {offsets = [0, 0], sizes = [64, 4], strides = [1, 1]} : vector<64x32xf32> to vector<64x4xf32>
    %100 = tpu.concatenate %98, %99 in 1 : vector<64x28xf32>, vector<64x4xf32> -> vector<64x32xf32>
    %101 = vector.extract_strided_slice %91 {offsets = [0, 28], sizes = [64, 4], strides = [1, 1]} : vector<64x32xf32> to vector<64x4xf32>
    %102 = vector.extract_strided_slice %91 {offsets = [0, 0], sizes = [64, 28], strides = [1, 1]} : vector<64x32xf32> to vector<64x28xf32>
    %103 = tpu.concatenate %101, %102 in 1 : vector<64x4xf32>, vector<64x28xf32> -> vector<64x32xf32>
    %104 = arith.mulf %91, %93 : vector<64x32xf32>
    %105 = arith.mulf %103, %97 : vector<64x32xf32>
    %106 = arith.addf %104, %105 : vector<64x32xf32>
    %107 = arith.mulf %100, %95 : vector<64x32xf32>
    %108 = arith.subf %106, %107 : vector<64x32xf32>
    %109 = vector.extract_strided_slice %35 {offsets = [0, 0], sizes = [16, 16], strides = [1, 1]} : vector<16x32xf32> to vector<16x16xf32>
    %110 = arith.mulf %109, %109 : vector<16x16xf32>
    %cst_49 = arith.constant dense<0.000000e+00> : vector<16xf32>
    %111 = vector.multi_reduction <add>, %110, %cst_49 [1] : vector<16x16xf32> to vector<16xf32>
    %112 = vector.shape_cast %111 : vector<16xf32> to vector<16x1xf32>
    %113 = vector.shape_cast %112 : vector<16x1xf32> to vector<16x1xf32>
    %114 = vector.broadcast %113 : vector<16x1xf32> to vector<16x16xf32>
    %115 = vector.extract_strided_slice %35 {offsets = [0, 16], sizes = [16, 16], strides = [1, 1]} : vector<16x32xf32> to vector<16x16xf32>
    %116 = arith.mulf %115, %115 : vector<16x16xf32>
    %cst_50 = arith.constant dense<0.000000e+00> : vector<16xf32>
    %117 = vector.multi_reduction <add>, %116, %cst_50 [1] : vector<16x16xf32> to vector<16xf32>
    %118 = vector.shape_cast %117 : vector<16xf32> to vector<16x1xf32>
    %119 = vector.shape_cast %118 : vector<16x1xf32> to vector<16x1xf32>
    %120 = vector.broadcast %119 : vector<16x1xf32> to vector<16x16xf32>
    %121 = tpu.concatenate %114, %120 in 1 : vector<16x16xf32>, vector<16x16xf32> -> vector<16x32xf32>
    %cst_51 = arith.constant 9.99999997E-7 : f32
    %122 = vector.broadcast %cst_51 : f32 to vector<16x32xf32>
    %123 = arith.addf %121, %122 : vector<16x32xf32>
    %124 = math.rsqrt %123 : vector<16x32xf32>
    %125 = vector.broadcast %7 : vector<1x32xf32> to vector<16x32xf32>
    %126 = arith.mulf %125, %124 : vector<16x32xf32>
    %127 = arith.mulf %35, %126 : vector<16x32xf32>
    %c0_52 = arith.constant 0 : index
    %c0_53 = arith.constant 0 : index
    %c0_54 = arith.constant 0 : index
    %128 = vector.load %arg5[%c0_52, %c0_53, %c0_54] : memref<3x16x32xf32, #tpu.memory_space<vmem>>, vector<1x16x32xf32>
    %129 = vector.shape_cast %128 : vector<1x16x32xf32> to vector<16x32xf32>
    %c1_55 = arith.constant 1 : index
    %c0_56 = arith.constant 0 : index
    %c0_57 = arith.constant 0 : index
    %130 = vector.load %arg5[%c1_55, %c0_56, %c0_57] : memref<3x16x32xf32, #tpu.memory_space<vmem>>, vector<1x16x32xf32>
    %131 = vector.shape_cast %130 : vector<1x16x32xf32> to vector<16x32xf32>
    %c2_58 = arith.constant 2 : index
    %c0_59 = arith.constant 0 : index
    %c0_60 = arith.constant 0 : index
    %132 = vector.load %arg5[%c2_58, %c0_59, %c0_60] : memref<3x16x32xf32, #tpu.memory_space<vmem>>, vector<1x16x32xf32>
    %133 = vector.shape_cast %132 : vector<1x16x32xf32> to vector<16x32xf32>
    %134 = vector.extract_strided_slice %127 {offsets = [0, 4], sizes = [16, 28], strides = [1, 1]} : vector<16x32xf32> to vector<16x28xf32>
    %135 = vector.extract_strided_slice %127 {offsets = [0, 0], sizes = [16, 4], strides = [1, 1]} : vector<16x32xf32> to vector<16x4xf32>
    %136 = tpu.concatenate %134, %135 in 1 : vector<16x28xf32>, vector<16x4xf32> -> vector<16x32xf32>
    %137 = vector.extract_strided_slice %127 {offsets = [0, 28], sizes = [16, 4], strides = [1, 1]} : vector<16x32xf32> to vector<16x4xf32>
    %138 = vector.extract_strided_slice %127 {offsets = [0, 0], sizes = [16, 28], strides = [1, 1]} : vector<16x32xf32> to vector<16x28xf32>
    %139 = tpu.concatenate %137, %138 in 1 : vector<16x4xf32>, vector<16x28xf32> -> vector<16x32xf32>
    %140 = arith.mulf %127, %129 : vector<16x32xf32>
    %141 = arith.mulf %139, %133 : vector<16x32xf32>
    %142 = arith.addf %140, %141 : vector<16x32xf32>
    %143 = arith.mulf %136, %131 : vector<16x32xf32>
    %144 = arith.subf %142, %143 : vector<16x32xf32>
    %cst_61 = arith.constant 0.000000e+00 : f32
    %145 = vector.broadcast %cst_61 : f32 to vector<48x32xf32>
    %c3 = arith.constant 3 : index
    %c0_62 = arith.constant 0 : index
    %146 = vector.load %arg6[%c3, %c0_62] : memref<5x32xf32, #tpu.memory_space<vmem>>, vector<1x32xf32>
    %147 = vector.broadcast %146 : vector<1x32xf32> to vector<64x32xf32>
    %148 = arith.mulf %108, %147 : vector<64x32xf32>
    %c0_63 = arith.constant 0 : index
    %c0_64 = arith.constant 0 : index
    %149 = vector.load %arg15[%c0_63, %c0_64] : memref<256x32xf32, #tpu.memory_space<vmem>>, vector<64x32xf32>
    tpu.vector_store %arg15[%c0_63, %c0_64], %148 {strides = array<i32>} : memref<256x32xf32, #tpu.memory_space<vmem>>, vector<64x32xf32>,
    %150 = vector.broadcast %146 : vector<1x32xf32> to vector<64x32xf32>
    %151 = arith.mulf %34, %150 : vector<64x32xf32>
    %c0_65 = arith.constant 0 : index
    %c0_66 = arith.constant 0 : index
    %152 = vector.load %arg16[%c0_65, %c0_66] : memref<256x32xf32, #tpu.memory_space<vmem>>, vector<64x32xf32>
    tpu.vector_store %arg16[%c0_65, %c0_66], %151 {strides = array<i32>} : memref<256x32xf32, #tpu.memory_space<vmem>>, vector<64x32xf32>,
    %153 = vector.broadcast %146 : vector<1x32xf32> to vector<16x32xf32>
    %154 = arith.mulf %144, %153 : vector<16x32xf32>
    %c64 = arith.constant 64 : index
    %c0_67 = arith.constant 0 : index
    %155 = vector.load %arg15[%c64, %c0_67] : memref<256x32xf32, #tpu.memory_space<vmem>>, vector<16x32xf32>
    tpu.vector_store %arg15[%c64, %c0_67], %154 {strides = array<i32>} : memref<256x32xf32, #tpu.memory_space<vmem>>, vector<16x32xf32>,
    %156 = vector.broadcast %146 : vector<1x32xf32> to vector<16x32xf32>
    %157 = arith.mulf %36, %156 : vector<16x32xf32>
    %c64_68 = arith.constant 64 : index
    %c0_69 = arith.constant 0 : index
    %158 = vector.load %arg16[%c64_68, %c0_69] : memref<256x32xf32, #tpu.memory_space<vmem>>, vector<16x32xf32>
    tpu.vector_store %arg16[%c64_68, %c0_69], %157 {strides = array<i32>} : memref<256x32xf32, #tpu.memory_space<vmem>>, vector<16x32xf32>,
    %c80 = arith.constant 80 : index
    %c0_70 = arith.constant 0 : index
    %159 = vector.load %arg15[%c80, %c0_70] : memref<256x32xf32, #tpu.memory_space<vmem>>, vector<48x32xf32>
    tpu.vector_store %arg15[%c80, %c0_70], %145 {strides = array<i32>} : memref<256x32xf32, #tpu.memory_space<vmem>>, vector<48x32xf32>,
    %c80_71 = arith.constant 80 : index
    %c0_72 = arith.constant 0 : index
    %160 = vector.load %arg16[%c80_71, %c0_72] : memref<256x32xf32, #tpu.memory_space<vmem>>, vector<48x32xf32>
    tpu.vector_store %arg16[%c80_71, %c0_72], %145 {strides = array<i32>} : memref<256x32xf32, #tpu.memory_space<vmem>>, vector<48x32xf32>,
    %c4 = arith.constant 4 : index
    %c0_73 = arith.constant 0 : index
    %161 = vector.load %arg6[%c4, %c0_73] : memref<5x32xf32, #tpu.memory_space<vmem>>, vector<1x32xf32>
    %162 = vector.broadcast %161 : vector<1x32xf32> to vector<64x32xf32>
    %163 = arith.mulf %108, %162 : vector<64x32xf32>
    %c128 = arith.constant 128 : index
    %c0_74 = arith.constant 0 : index
    %164 = vector.load %arg15[%c128, %c0_74] : memref<256x32xf32, #tpu.memory_space<vmem>>, vector<64x32xf32>
    tpu.vector_store %arg15[%c128, %c0_74], %163 {strides = array<i32>} : memref<256x32xf32, #tpu.memory_space<vmem>>, vector<64x32xf32>,
    %165 = vector.broadcast %161 : vector<1x32xf32> to vector<64x32xf32>
    %166 = arith.mulf %34, %165 : vector<64x32xf32>
    %c128_75 = arith.constant 128 : index
    %c0_76 = arith.constant 0 : index
    %167 = vector.load %arg16[%c128_75, %c0_76] : memref<256x32xf32, #tpu.memory_space<vmem>>, vector<64x32xf32>
    tpu.vector_store %arg16[%c128_75, %c0_76], %166 {strides = array<i32>} : memref<256x32xf32, #tpu.memory_space<vmem>>, vector<64x32xf32>,
    %168 = vector.broadcast %161 : vector<1x32xf32> to vector<16x32xf32>
    %169 = arith.mulf %144, %168 : vector<16x32xf32>
    %c192 = arith.constant 192 : index
    %c0_77 = arith.constant 0 : index
    %170 = vector.load %arg15[%c192, %c0_77] : memref<256x32xf32, #tpu.memory_space<vmem>>, vector<16x32xf32>
    tpu.vector_store %arg15[%c192, %c0_77], %169 {strides = array<i32>} : memref<256x32xf32, #tpu.memory_space<vmem>>, vector<16x32xf32>,
    %171 = vector.broadcast %161 : vector<1x32xf32> to vector<16x32xf32>
    %172 = arith.mulf %36, %171 : vector<16x32xf32>
    %c192_78 = arith.constant 192 : index
    %c0_79 = arith.constant 0 : index
    %173 = vector.load %arg16[%c192_78, %c0_79] : memref<256x32xf32, #tpu.memory_space<vmem>>, vector<16x32xf32>
    tpu.vector_store %arg16[%c192_78, %c0_79], %172 {strides = array<i32>} : memref<256x32xf32, #tpu.memory_space<vmem>>, vector<16x32xf32>,
    %c208 = arith.constant 208 : index
    %c0_80 = arith.constant 0 : index
    %174 = vector.load %arg15[%c208, %c0_80] : memref<256x32xf32, #tpu.memory_space<vmem>>, vector<48x32xf32>
    tpu.vector_store %arg15[%c208, %c0_80], %145 {strides = array<i32>} : memref<256x32xf32, #tpu.memory_space<vmem>>, vector<48x32xf32>,
    %c208_81 = arith.constant 208 : index
    %c0_82 = arith.constant 0 : index
    %175 = vector.load %arg16[%c208_81, %c0_82] : memref<256x32xf32, #tpu.memory_space<vmem>>, vector<48x32xf32>
    tpu.vector_store %arg16[%c208_81, %c0_82], %145 {strides = array<i32>} : memref<256x32xf32, #tpu.memory_space<vmem>>, vector<48x32xf32>,
    %c0_83 = arith.constant 0 : index
    %c0_84 = arith.constant 0 : index
    %176 = vector.load %arg15[%c0_83, %c0_84] : memref<256x32xf32, #tpu.memory_space<vmem>>, vector<256x32xf32>
    %177 = arith.truncf %176 : vector<256x32xf32> to vector<256x32xbf16>
    %c0_85 = arith.constant 0 : index
    %c0_86 = arith.constant 0 : index
    %178 = vector.load %arg16[%c0_85, %c0_86] : memref<256x32xf32, #tpu.memory_space<vmem>>, vector<256x32xf32>
    %179 = arith.truncf %178 : vector<256x32xf32> to vector<256x32xbf16>
    %180 = arith.truncf %72 : vector<64x32xf32> to vector<64x32xbf16>
    %cst_87 = arith.constant dense<0.000000e+00> : vector<64x256xf32>
    %181 = tpu.matmul %180, %177, %cst_87 {dimension_numbers = #tpu.dot_dimension_numbers<[1], [1], [0], [0], [0, 0, 1, 0], [], []>} : vector<64x32xbf16>, vector<256x32xbf16>, vector<64x256xf32> -> vector<64x256xf32>
    %c0_88 = arith.constant 0 : index
    %c0_89 = arith.constant 0 : index
    %182 = vector.load %arg7[%c0_88, %c0_89] : memref<1x256xf32, #tpu.memory_space<vmem>>, vector<1x256xf32>
    %183 = vector.broadcast %182 : vector<1x256xf32> to vector<64x256xf32>
    %184 = arith.addf %181, %183 : vector<64x256xf32>
    %185 = vector.extract_strided_slice %184 {offsets = [0, 0], sizes = [64, 128], strides = [1, 1]} : vector<64x256xf32> to vector<64x128xf32>
    %cst_90 = arith.constant dense<0xFF800000> : vector<64xf32>
    %186 = vector.multi_reduction <maximumf>, %185, %cst_90 [1] : vector<64x128xf32> to vector<64xf32>
    %187 = vector.shape_cast %186 : vector<64xf32> to vector<64x1xf32>
    %188 = vector.broadcast %187 : vector<64x1xf32> to vector<64x128xf32>
    %189 = arith.subf %185, %188 : vector<64x128xf32>
    %190 = math.exp %189 : vector<64x128xf32>
    %cst_91 = arith.constant dense<0.000000e+00> : vector<64xf32>
    %191 = vector.multi_reduction <add>, %190, %cst_91 [1] : vector<64x128xf32> to vector<64xf32>
    %192 = vector.shape_cast %191 : vector<64xf32> to vector<64x1xf32>
    %193 = vector.broadcast %192 : vector<64x1xf32> to vector<64x128xf32>
    %194 = arith.divf %190, %193 : vector<64x128xf32>
    %195 = vector.extract_strided_slice %184 {offsets = [0, 128], sizes = [64, 128], strides = [1, 1]} : vector<64x256xf32> to vector<64x128xf32>
    %cst_92 = arith.constant dense<0xFF800000> : vector<64xf32>
    %196 = vector.multi_reduction <maximumf>, %195, %cst_92 [1] : vector<64x128xf32> to vector<64xf32>
    %197 = vector.shape_cast %196 : vector<64xf32> to vector<64x1xf32>
    %198 = vector.broadcast %197 : vector<64x1xf32> to vector<64x128xf32>
    %199 = arith.subf %195, %198 : vector<64x128xf32>
    %200 = math.exp %199 : vector<64x128xf32>
    %cst_93 = arith.constant dense<0.000000e+00> : vector<64xf32>
    %201 = vector.multi_reduction <add>, %200, %cst_93 [1] : vector<64x128xf32> to vector<64xf32>
    %202 = vector.shape_cast %201 : vector<64xf32> to vector<64x1xf32>
    %203 = vector.broadcast %202 : vector<64x1xf32> to vector<64x128xf32>
    %204 = arith.divf %200, %203 : vector<64x128xf32>
    %205 = tpu.concatenate %194, %204 in 1 : vector<64x128xf32>, vector<64x128xf32> -> vector<64x256xf32>
    %206 = arith.truncf %205 : vector<64x256xf32> to vector<64x256xbf16>
    %cst_94 = arith.constant dense<0.000000e+00> : vector<64x32xf32>
    %207 = tpu.matmul %206, %179, %cst_94 {dimension_numbers = #tpu.dot_dimension_numbers<[1], [0], [0], [1], [0, 0, 1, 1], [], []>} : vector<64x256xbf16>, vector<256x32xbf16>, vector<64x32xf32> -> vector<64x32xf32>
    %208 = arith.truncf %207 : vector<64x32xf32> to vector<64x32xbf16>
    %c0_95 = arith.constant 0 : index
    %c0_96 = arith.constant 0 : index
    %209 = vector.load %arg11[%c0_95, %c0_96] : memref<32x32xbf16, #tpu.memory_space<vmem>>, vector<32x32xbf16>
    %cst_97 = arith.constant dense<0.000000e+00> : vector<64x32xf32>
    %210 = tpu.matmul %208, %209, %cst_97 {dimension_numbers = #tpu.dot_dimension_numbers<[1], [0], [0], [1], [0, 0, 1, 1], [], []>} : vector<64x32xbf16>, vector<32x32xbf16>, vector<64x32xf32> -> vector<64x32xf32>
    %211 = vector.broadcast %8 : vector<1x32xf32> to vector<64x32xf32>
    %212 = arith.addf %210, %211 : vector<64x32xf32>
    %213 = arith.addf %212, %1 : vector<64x32xf32>
    %c1_98 = arith.constant 1 : index
    %c0_99 = arith.constant 0 : index
    %c0_100 = arith.constant 0 : index
    %214 = vector.load %arg8[%c1_98, %c0_99, %c0_100] : memref<2x24x32xf32, #tpu.memory_space<vmem>>, vector<1x24x32xf32>
    %215 = vector.shape_cast %214 : vector<1x24x32xf32> to vector<24x32xf32>
    %cst_101 = arith.constant dense<0.000000e+00> : vector<1x32xf32>
    %216 = tpu.matmul %5, %215, %cst_101 {dimension_numbers = #tpu.dot_dimension_numbers<[1], [0], [0], [1], [0, 0, 1, 1], [], []>} : vector<1x24xf32>, vector<24x32xf32>, vector<1x32xf32> -> vector<1x32xf32>
    %cst_102 = arith.constant 1.000000e+00 : f32
    %217 = vector.broadcast %cst_102 : f32 to vector<1x32xf32>
    %218 = arith.addf %216, %217 : vector<1x32xf32>
    %219 = arith.mulf %213, %213 : vector<64x32xf32>
    %cst_103 = arith.constant dense<0.000000e+00> : vector<64xf32>
    %220 = vector.multi_reduction <add>, %219, %cst_103 [1] : vector<64x32xf32> to vector<64xf32>
    %221 = vector.shape_cast %220 : vector<64xf32> to vector<64x1xf32>
    %cst_104 = arith.constant 3.200000e+01 : f32
    %222 = vector.broadcast %cst_104 : f32 to vector<64x1xf32>
    %223 = arith.divf %221, %222 : vector<64x1xf32>
    %cst_105 = arith.constant 9.99999997E-7 : f32
    %224 = vector.broadcast %cst_105 : f32 to vector<64x1xf32>
    %225 = arith.addf %223, %224 : vector<64x1xf32>
    %226 = math.rsqrt %225 : vector<64x1xf32>
    %227 = vector.broadcast %218 : vector<1x32xf32> to vector<64x32xf32>
    %228 = vector.broadcast %226 : vector<64x1xf32> to vector<64x32xf32>
    %229 = arith.mulf %227, %228 : vector<64x32xf32>
    %230 = arith.mulf %213, %229 : vector<64x32xf32>
    %231 = arith.truncf %230 : vector<64x32xf32> to vector<64x32xbf16>
    %c0_106 = arith.constant 0 : index
    %c0_107 = arith.constant 0 : index
    %232 = vector.load %arg12[%c0_106, %c0_107] : memref<32x128xbf16, #tpu.memory_space<vmem>>, vector<32x128xbf16>
    %cst_108 = arith.constant dense<0.000000e+00> : vector<64x128xf32>
    %233 = tpu.matmul %231, %232, %cst_108 {dimension_numbers = #tpu.dot_dimension_numbers<[1], [0], [0], [1], [0, 0, 1, 1], [], []>} : vector<64x32xbf16>, vector<32x128xbf16>, vector<64x128xf32> -> vector<64x128xf32>
    %234 = vector.extract_strided_slice %233 {offsets = [0, 0], sizes = [64, 64], strides = [1, 1]} : vector<64x128xf32> to vector<64x64xf32>
    %235 = vector.extract_strided_slice %233 {offsets = [0, 64], sizes = [64, 64], strides = [1, 1]} : vector<64x128xf32> to vector<64x64xf32>
    %cst_109 = arith.constant 5.000000e-01 : f32
    %236 = vector.broadcast %cst_109 : f32 to vector<64x64xf32>
    %237 = arith.mulf %236, %235 : vector<64x64xf32>
    %cst_110 = arith.constant 4.471500e-02 : f32
    %238 = vector.broadcast %cst_110 : f32 to vector<64x64xf32>
    %239 = arith.mulf %238, %235 : vector<64x64xf32>
    %240 = arith.mulf %239, %235 : vector<64x64xf32>
    %241 = arith.mulf %240, %235 : vector<64x64xf32>
    %242 = arith.addf %235, %241 : vector<64x64xf32>
    %cst_111 = arith.constant 0.797884583 : f32
    %243 = vector.broadcast %cst_111 : f32 to vector<64x64xf32>
    %244 = arith.mulf %243, %242 : vector<64x64xf32>
    %245 = math.tanh %244 : vector<64x64xf32>
    %cst_112 = arith.constant 1.000000e+00 : f32
    %246 = vector.broadcast %cst_112 : f32 to vector<64x64xf32>
    %247 = arith.addf %246, %245 : vector<64x64xf32>
    %248 = arith.mulf %237, %247 : vector<64x64xf32>
    %249 = arith.mulf %234, %248 : vector<64x64xf32>
    %250 = arith.truncf %249 : vector<64x64xf32> to vector<64x64xbf16>
    %c0_113 = arith.constant 0 : index
    %c0_114 = arith.constant 0 : index
    %251 = vector.load %arg13[%c0_113, %c0_114] : memref<64x32xbf16, #tpu.memory_space<vmem>>, vector<64x32xbf16>
    %cst_115 = arith.constant dense<0.000000e+00> : vector<64x32xf32>
    %252 = tpu.matmul %250, %251, %cst_115 {dimension_numbers = #tpu.dot_dimension_numbers<[1], [0], [0], [1], [0, 0, 1, 1], [], []>} : vector<64x64xbf16>, vector<64x32xbf16>, vector<64x32xf32> -> vector<64x32xf32>
    %253 = arith.addf %252, %213 : vector<64x32xf32>
    %c0_116 = arith.constant 0 : index
    %c0_117 = arith.constant 0 : index
    %c0_118 = arith.constant 0 : index
    %254 = vector.load %arg14[%c0_116, %c0_117, %c0_118] : memref<1x64x32xf32, #tpu.memory_space<vmem>>, vector<1x64x32xf32>
    %255 = vector.shape_cast %254 : vector<1x64x32xf32> to vector<64x32xf32>
    %256 = vector.shape_cast %253 : vector<64x32xf32> to vector<1x64x32xf32>
    tpu.vector_store %arg14[%c0_116, %c0_117, %c0_118], %256 {strides = array<i32>} : memref<1x64x32xf32, #tpu.memory_space<vmem>>, vector<1x64x32xf32>,
    return
  }
  func.func @transform_0(%arg0: i32) -> (i32, i32, i32) {
    %c0_i32 = arith.constant 0 : i32
    %c0_i32_0 = arith.constant 0 : i32
    %c0_i32_1 = arith.constant 0 : i32
    return %arg0, %c0_i32, %c0_i32_0 : i32, i32, i32
  }
  func.func @transform_1(%arg0: i32) -> (i32, i32, i32) {
    %c0_i32 = arith.constant 0 : i32
    %c0_i32_0 = arith.constant 0 : i32
    %c0_i32_1 = arith.constant 0 : i32
    return %arg0, %c0_i32, %c0_i32_0 : i32, i32, i32
  }
  func.func @transform_2(%arg0: i32) -> (i32, i32, i32) {
    %c0_i32 = arith.constant 0 : i32
    %c0_i32_0 = arith.constant 0 : i32
    %c0_i32_1 = arith.constant 0 : i32
    return %arg0, %c0_i32, %c0_i32_0 : i32, i32, i32
  }
  func.func @transform_3(%arg0: i32) -> (i32, i32, i32) {
    %c0_i32 = arith.constant 0 : i32
    %c0_i32_0 = arith.constant 0 : i32
    %c0_i32_1 = arith.constant 0 : i32
    %c0_i32_2 = arith.constant 0 : i32
    return %c0_i32, %c0_i32_0, %c0_i32_1 : i32, i32, i32
  }
  func.func @transform_4(%arg0: i32) -> (i32, i32, i32) {
    %c0_i32 = arith.constant 0 : i32
    %c0_i32_0 = arith.constant 0 : i32
    %c0_i32_1 = arith.constant 0 : i32
    %c0_i32_2 = arith.constant 0 : i32
    return %c0_i32, %c0_i32_0, %c0_i32_1 : i32, i32, i32
  }
  func.func @transform_5(%arg0: i32) -> (i32, i32) {
    %c0_i32 = arith.constant 0 : i32
    %c0_i32_0 = arith.constant 0 : i32
    %c0_i32_1 = arith.constant 0 : i32
    return %c0_i32, %c0_i32_0 : i32, i32
  }
  func.func @transform_6(%arg0: i32) -> (i32, i32) {
    %c0_i32 = arith.constant 0 : i32
    %c0_i32_0 = arith.constant 0 : i32
    %c0_i32_1 = arith.constant 0 : i32
    return %c0_i32, %c0_i32_0 : i32, i32
  }
  func.func @transform_7(%arg0: i32) -> (i32, i32, i32) {
    %c0_i32 = arith.constant 0 : i32
    %c0_i32_0 = arith.constant 0 : i32
    %c0_i32_1 = arith.constant 0 : i32
    %c0_i32_2 = arith.constant 0 : i32
    return %c0_i32, %c0_i32_0, %c0_i32_1 : i32, i32, i32
  }
  func.func @transform_8(%arg0: i32) -> (i32, i32) {
    %c0_i32 = arith.constant 0 : i32
    %c0_i32_0 = arith.constant 0 : i32
    %c0_i32_1 = arith.constant 0 : i32
    return %c0_i32, %c0_i32_0 : i32, i32
  }
  func.func @transform_9(%arg0: i32) -> (i32, i32) {
    %c0_i32 = arith.constant 0 : i32
    %c0_i32_0 = arith.constant 0 : i32
    %c0_i32_1 = arith.constant 0 : i32
    return %c0_i32, %c0_i32_0 : i32, i32
  }
  func.func @transform_10(%arg0: i32) -> (i32, i32) {
    %c0_i32 = arith.constant 0 : i32
    %c0_i32_0 = arith.constant 0 : i32
    %c0_i32_1 = arith.constant 0 : i32
    return %c0_i32, %c0_i32_0 : i32, i32
  }
  func.func @transform_11(%arg0: i32) -> (i32, i32) {
    %c0_i32 = arith.constant 0 : i32
    %c0_i32_0 = arith.constant 0 : i32
    %c0_i32_1 = arith.constant 0 : i32
    return %c0_i32, %c0_i32_0 : i32, i32
  }
  func.func @transform_12(%arg0: i32) -> (i32, i32) {
    %c0_i32 = arith.constant 0 : i32
    %c0_i32_0 = arith.constant 0 : i32
    %c0_i32_1 = arith.constant 0 : i32
    return %c0_i32, %c0_i32_0 : i32, i32
  }
  func.func @transform_13(%arg0: i32) -> (i32, i32, i32) {
    %c0_i32 = arith.constant 0 : i32
    %c0_i32_0 = arith.constant 0 : i32
    %c0_i32_1 = arith.constant 0 : i32
    return %arg0, %c0_i32, %c0_i32_0 : i32, i32, i32
  }
}

</mosaic_0001>

<bundles_post_ra>
// kernel: tpu_custom_call.1
= control target key start
LH: loop header
LB: loop body
LE: loop exit
PB: predicated region body
PF: predicated region fallthrough
CT: control target
= control target key end

     0   :  { %s3584_s25 = smov 0   ;;  %s5015_s0 = inlined_call_operand.vmem [shape: f32[2,64,32], index: 0, kind: input, shape index: {}]   ;;  %s5016_s1 = inlined_call_operand.vmem [shape: f32[2,16,16], index: 1, kind: input, shape index: {}]   ;;  %s5017_s2 = inlined_call_operand.vmem [shape: f32[2,1,24], index: 2, kind: input, shape index: {}]   ;;  %s5018_s3 = inlined_call_operand.vmem [shape: f32[3,64,32], index: 3, kind: input, shape index: {}]   ;;  %s5019_s4 = inlined_call_operand.vmem [shape: f32[3,16,32], index: 4, kind: input, shape index: {}]   ;;  %s5020_s5 = inlined_call_operand.vmem [shape: f32[5,32], index: 5, kind: input, shape index: {}]   ;;  %s5021_s6 = inlined_call_operand.vmem [shape: f32[1,256], index: 6, kind: input, shape index: {}]   ;;  %s5022_s7 = inlined_call_operand.vmem [shape: f32[2,24,32], index: 7, kind: input, shape index: {}]   ;;  %s5023_s8 = inlined_call_operand.vmem [shape: bf16[32,96], index: 8, kind: input, shape index: {}]   ;;  %s5024_s9 = inlined_call_operand.vmem [shape: bf16[16,64], index: 9, kind: input, shape index: {}]   ;;  %s5025_s10 = inlined_call_operand.vmem [shape: bf16[32,32], index: 10, kind: input, shape index: {}]   ;;  %s5026_s11 = inlined_call_operand.vmem [shape: bf16[32,128], index: 11, kind: input, shape index: {}]   ;;  %s5027_s12 = inlined_call_operand.vmem [shape: bf16[64,32], index: 12, kind: input, shape index: {}]   ;;  %s5028_s13 = inlined_call_operand.vmem [shape: f32[2,64,32], index: 13, kind: output, shape index: {}]  }
   0x1 LB: > { %s3024_s26 = sadd.s32 4294967295, %s3498_s25   ;;  %p3028_p0 = scmp.ge.s32.totalorder %s3498_s25, 1  ;;  %s3498_s25 = sphi %s3584_s25, %s23_s25  }
   0x2   : > { %p405_p1 = scmp.lt.s32.totalorder %s3498_s25, 3 }
   0x4   : > { %p406_p2 = pnand %p3028_p0, %p405_p1 }
   0x6   : > { %409 = sbr.rel (%p406_p2) target bundleno = 3215 (0xc8f), region = 72 }
   0xd   : > { %v490_v0 = vld [vmem:[%s5022_s7] sm:$0xff]  ;;  %v491_v1 = vld [vmem:[%s5022_s7 + $0x8] sm:$0xff]  ;;  %v5031_v2 = vmov 0.0|0.0   ;;  %vm3501_vm0 = vmmov 0   ;;  %v5029_v4 = vmov 0.0   ;;  %p457_p3 = scmp.lt.s32.totalorder %s3024_s26, 1 }
   0xe   : > { %3278 = vmatprep.subr.bf16.mxu0 %v5031_v2  ;;  %v3279_v3 = vpack.c.bf16 %v491_v1, %v490_v0  ;;  %3208 = vmatprep.mubr.msk.f32.mxu0 %vm3501_vm0, %v5029_v4  ;;  %vm575_vm1 = vcmask 261120   ;;  %v492_v5 = vld [vmem:[%s5022_s7 + $0x10] sm:$0xff]  ;;  %vm493_vm2 = vcmask 195584   ;;  %v3314_v6 = vld [vmem:[%s5024_s9] sm:$0xff]   ;;  %vm751_vm3 = vcmask 130048   ;;  %v929_v35 = vld [vmem:[%s5018_s3 + $0x8] sm:$0xff] }
   0xf   : > { %s5079_s26 = smov (!%p457_p3, %s3024_s26), 1  ;;  %1748 = vst.msk [vmem:[#allocation2 + $0x50] sm:$0xff] %vm575_vm1, %v5029_v4  ;;  %1749 = vst.msk [vmem:[#allocation2 + $0x58] sm:$0xff] %vm575_vm1, %v5029_v4  ;;  %s3503_s16 = smov 32   ;;  %v3067_v36 = vld [vmem:[%s5020_s5 + $0x4] ss:$0 sm:$0xff] }
  0x10   : > { %3280 = vmatpush3.bf16.msra.mxu0 %v3279_v3  ;;  %1750 = vst.msk [vmem:[#allocation2 + $0x60] sm:$0xff] %vm575_vm1, %v5029_v4  ;;  %1751 = vst.msk [vmem:[#allocation2 + $0x68] sm:$0xff] %vm575_vm1, %v5029_v4  ;;  %s3099_s18 = sshll.u32 %s5079_s26, 6  ;;  %s3100_s19 = sshll.u32 %s5079_s26, 4  ;;  %v928_v37 = vld [vmem:[%s5018_s3] sm:$0xff]  ;;  %v931_v38 = vld [vmem:[%s5018_s3 + $0x18] sm:$0xff] }
  0x11   : > { %1752 = vst.msk [vmem:[#allocation2 + $0x70] sm:$0xff] %vm575_vm1, %v5029_v4  ;;  %1753 = vst.msk [vmem:[#allocation2 + $0x78] sm:$0xff] %vm575_vm1, %v5029_v4  ;;  %3206 = vmatprep.subr.mxu0 %v5029_v4  ;;  %s3665_s22 = scalar_lea.vmem %s5015_s0, %s3099_s18  ;;  %s466_s27 = scalar_lea.vmem %s5016_s1, %s3100_s19  ;;  %v3066_v39 = vld [vmem:[%s5020_s5 + $0x3] ss:$0 sm:$0xff]  ;;  %v930_v40 = vld [vmem:[%s5018_s3 + $0x10] sm:$0xff]  ;;  %vm1067_vm4 = vcmask 31744  }
  0x12   : > { %1754 = vst.msk [vmem:[#allocation3 + $0x50] sm:$0xff] %vm575_vm1, %v5029_v4  ;;  %1755 = vst.msk [vmem:[#allocation3 + $0x58] sm:$0xff] %vm575_vm1, %v5029_v4  ;;  %s3674_s30 = scalar_lea.vmem %s5017_s2, %s5079_s26  ;;  %v484_v7 = vld [vmem:[%s466_s27] sm:$0xff]  ;;  %v485_v8 = vld [vmem:[%s466_s27 + $0x8] sm:$0xff]  ;;  %s3504_s17 = smov 112   ;;  %vm1010_vm5 = vcmask 228352  }
  0x13   : > { %1756 = vst.msk [vmem:[#allocation3 + $0x60] sm:$0xff] %vm575_vm1, %v5029_v4  ;;  %1757 = vst.msk [vmem:[#allocation3 + $0x68] sm:$0xff] %vm575_vm1, %v5029_v4  ;;  %v3677_v9 = vld [vmem:[%s3665_s22 + $0x10] sm:$0xff]  ;;  %v486_v10 = vld [vmem:[%s3674_s30] sm:$0x1]  ;;  %v742_v14 = vpack.c.bf16 %v485_v8, %v484_v7  ;;  %v625_v7 = vlaneseq  ;;  %s3505_s19 = smov 96  }
  0x14   : > { %1758 = vst.msk [vmem:[#allocation3 + $0x70] sm:$0xff] %vm575_vm1, %v5029_v4  ;;  %1759 = vst.msk [vmem:[#allocation3 + $0x78] sm:$0xff] %vm575_vm1, %v5029_v4  ;;  %3207 = vmatpush3.msra.mxu0 %v492_v5  ;;  %v569_v11 = vmul.f32 %v3677_v9, %v3677_v9  ;;  %v3684_v12 = vld [vmem:[%s3665_s22] sm:$0xff]  ;;  %v3687_v13 = vld [vmem:[%s3665_s22 + $0x18] sm:$0xff]  ;;  %s3506_s20 = smov 80   ;;  %s3507_s24 = smov 68  }
  0x15   : > { %1884 = vst.msk [vmem:[#allocation2 + $0xd0] sm:$0xff] %vm575_vm1, %v5029_v4  ;;  %1885 = vst.msk [vmem:[#allocation2 + $0xd8] sm:$0xff] %vm575_vm1, %v5029_v4  ;;  %3223 = vmatprep.subr.bf16.mxu0 %v5029_v4  ;;  %3209 = vmatmul.mubr.msk.f32.vlgmr.msra.gmra.mrb[0].mxu0 %vm493_vm2, %v486_v10  ;;  %v567_v15 = vmul.f32 %v3684_v12, %v3684_v12  ;;  %v570_v16 = vmul.f32 %v3687_v13, %v3687_v13  ;;  %v3695_v17 = vld [vmem:[%s3665_s22 + $0x8] sm:$0xff]  ;;  %v3706_v21 = vld [vmem:[%s3665_s22 + $0x20] sm:$0xff]  ;;  %s3508_s27 = smov 100   ;;  %s3509_s28 = smov 92  }
  0x16   : > { %1886 = vst.msk [vmem:[#allocation2 + $0xe0] sm:$0xff] %vm575_vm1, %v5029_v4  ;;  %1887 = vst.msk [vmem:[#allocation2 + $0xe8] sm:$0xff] %vm575_vm1, %v5029_v4  ;;  %v3698_v18 = vld [vmem:[%s3665_s22 + $0x28] sm:$0xff]  ;;  %3224 = vmatpush3.bf16.msra.mxu0 %v3314_v6  ;;  %3225 = vmatprep.mubr.msk.bf16.mxu0 %vm3501_vm0, %v5029_v4  ;;  %v582_v19 = vsel %vm575_vm1, %v569_v11, 0.0  ;;  %v568_v20 = vmul.f32 %v3695_v17, %v3695_v17  ;;  %v3713_v25 = vld [vmem:[%s3665_s22 + $0x38] sm:$0xff]  ;;  %v571_v27 = vmul.f32 %v3706_v21, %v3706_v21  ;;  %s3510_s29 = smov 124  }
  0x17   : > { %1888 = vst.msk [vmem:[#allocation2 + $0xf0] sm:$0xff] %vm575_vm1, %v5029_v4  ;;  %1889 = vst.msk [vmem:[#allocation2 + $0xf8] sm:$0xff] %vm575_vm1, %v5029_v4  ;;  %583 = vadd.xlane.f32.xlu1 %v582_v19  ;;  %v576_v22 = vsel %vm575_vm1, %v567_v15, 0.0  ;;  %v585_v23 = vsel %vm575_vm1, %v570_v16, 0.0  ;;  %v572_v24 = vmul.f32 %v3698_v18, %v3698_v18  ;;  %v3720_v28 = vld [vmem:[%s3665_s22 + $0x30] sm:$0xff]  ;;  %v574_v30 = vmul.f32 %v3713_v25, %v3713_v25  ;;  %v932_v41 = vld [vmem:[%s5018_s3 + $0x20] sm:$0xff] }
  0x18   : > { %1890 = vst.msk [vmem:[#allocation3 + $0xd0] sm:$0xff] %vm575_vm1, %v5029_v4  ;;  %1891 = vst.msk [vmem:[#allocation3 + $0xd8] sm:$0xff] %vm575_vm1, %v5029_v4  ;;  %577 = vadd.xlane.f32.xlu0 %v576_v22  ;;  %v579_v26 = vsel %vm575_vm1, %v568_v20, 0.0  ;;  %v588_v31 = vsel %vm575_vm1, %v571_v27, 0.0  ;;  %v573_v32 = vmul.f32 %v3720_v28, %v3720_v28  ;;  %v933_v42 = vld [vmem:[%s5018_s3 + $0x28] sm:$0xff]  ;;  %v934_v43 = vld [vmem:[%s5018_s3 + $0x30] sm:$0xff] }
  0x19   : > { %1892 = vst.msk [vmem:[#allocation3 + $0xe0] sm:$0xff] %vm575_vm1, %v5029_v4  ;;  %1893 = vst.msk [vmem:[#allocation3 + $0xe8] sm:$0xff] %vm575_vm1, %v5029_v4  ;;  %3226 = vmatmul.mubr.msk.bf16.vlgmr.msra.gmra.mrb[4].mxu0 %vm751_vm3, %v742_v14  ;;  %v591_v29 = vsel %vm575_vm1, %v572_v24, 0.0  ;;  %v597_v33 = vsel %vm575_vm1, %v574_v30, 0.0  ;;  %v3315_v44 = vld [vmem:[%s5023_s8] sm:$0xff]   ;;  %v935_v45 = vld [vmem:[%s5018_s3 + $0x38] sm:$0xff] }
  0x1a   : > { %1894 = vst.msk [vmem:[#allocation3 + $0xf0] sm:$0xff] %vm575_vm1, %v5029_v4  ;;  %1895 = vst.msk [vmem:[#allocation3 + $0xf8] sm:$0xff] %vm575_vm1, %v5029_v4  ;;  %v594_v34 = vsel %vm575_vm1, %v573_v32, 0.0  ;;  %3211 = vmatprep.subr.bf16.mxu1 %v3315_v44  ;;  %v3316_v46 = vld [vmem:[%s5023_s8 + $0x8] sm:$0xff]   ;;  %v3776_v11 = vshrl.u32 %v625_v7, 7  ;;  %v4095_v2 = vld [vmem:[%s5018_s3 + $0x98] sm:$0xff] }
  0x1b   : > { %586 = vadd.xlane.f32.xlu1 %v585_v23  ;;  %3212 = vmatpush3.bf16.msra.mxu1 %v3315_v44  ;;  %s3513_s23 = smov 64   ;;  %vm2862_vm6 = vcmask 523264  }
  0x1c   : > { %580 = vadd.xlane.f32.xlu0 %v579_v26  ;;  %3213 = vmatprep.subr.bf16.mxu1 %v3316_v46  ;;  %5048 = vst [vmem:[#allocation4_spill] sm:$0xff] %v3776_v11  ;;  %v3779_v15 = vsub.s32 0, %v3776_v11 }
  0x1e   : > { %5049 = vst [vmem:[#allocation5_spill] sm:$0xff] %v3779_v15 }
  0x1f   : > { %592 = vadd.xlane.f32.xlu1 %v591_v29  ;;  %3214 = vmatpush3.bf16.msra.mxu1 %v3316_v46 }
  0x20   : > { %589 = vadd.xlane.f32.xlu0 %v588_v31 }
  0x23   : > { %598 = vadd.xlane.f32.xlu1 %v597_v33 }
  0x24   : > { %595 = vadd.xlane.f32.xlu0 %v594_v34 }
  0x34   : > { %1414 = vrot.lane.b32.xlu1 %v929_v35, %s3503_s16 }
  0x38   : > { %1766 = vrot.lane.b32.xlu1 %v3067_v36, %s3503_s16 }
  0x3a   : > { %1412 = vrot.lane.b32.xlu0 %v928_v37, %s3503_s16 }
  0x3c   : > { %1418 = vrot.lane.b32.xlu1 %v931_v38, %s3503_s16 }
  0x3e   : > { %1630 = vrot.lane.b32.xlu0 %v3066_v39, %s3503_s16 }
  0x40   : > { %1422 = vrot.lane.b32.xlu1 %v933_v42, %s3503_s16 }
  0x42   : > { %1416 = vrot.lane.b32.xlu0 %v930_v40, %s3503_s16 }
  0x44   : > { %1426 = vrot.lane.b32.xlu1 %v935_v45, %s3503_s16 }
  0x46   : > { %1420 = vrot.lane.b32.xlu0 %v932_v41, %s3503_s16 }
  0x4a   : > { %1424 = vrot.lane.b32.xlu0 %v934_v43, %s3503_s16 }
  0xa4   : > { %v584_v47 = vpop.xlane.xlu1 %583 }
  0xa5   : > { %v578_v48 = vpop.xlane.xlu0 %577  ;;  %v603_v53 = vmul.f32 0.03125, %v584_v47 }
  0xa6   : > { %v601_v60 = vmul.f32 0.03125, %v578_v48 }
  0xa7   : > { %v611_v57 = vadd.f32 1e-06, %v603_v53 }
  0xa8   : > { %v587_v49 = vpop.xlane.xlu1 %586  ;;  %v609_v6 = vadd.f32 1e-06, %v601_v60 }
  0xa9   : > { %v581_v50 = vpop.xlane.xlu0 %580  ;;  %v604_v54 = vmul.f32 0.03125, %v587_v49  ;;  %3325 = vrsqrt.f32 %v611_v57 }
  0xaa   : > { %v602_v55 = vmul.f32 0.03125, %v581_v50 }
  0xab   : > { %v612_v61 = vadd.f32 1e-06, %v604_v54 }
  0xac   : > { %v593_v51 = vpop.xlane.xlu1 %592  ;;  %v610_v63 = vadd.f32 1e-06, %v602_v55 }
  0xad   : > { %v590_v52 = vpop.xlane.xlu0 %589  ;;  %v606_v56 = vmul.f32 0.03125, %v593_v51  ;;  %3327 = vrsqrt.f32 %v612_v61 }
  0xae   : > { %v605_v58 = vmul.f32 0.03125, %v590_v52  ;;  %3329 = vrsqrt.f32 %v610_v63 }
  0xaf   : > { %v614_v0 = vadd.f32 1e-06, %v606_v56 }
  0xb0   : > { %v599_v59 = vpop.xlane.xlu1 %598  ;;  %v613_v3 = vadd.f32 1e-06, %v605_v58 }
  0xb1   : > { %v596_v62 = vpop.xlane.xlu0 %595  ;;  %v608_v1 = vmul.f32 0.03125, %v599_v59  ;;  %3331 = vrsqrt.f32 %v614_v0 }
  0xb2   : > { %v607_v5 = vmul.f32 0.03125, %v596_v62  ;;  %3333 = vrsqrt.f32 %v613_v3 }
  0xb3   : > { %v616_v8 = vadd.f32 1e-06, %v608_v1  ;;  %3335 = vrsqrt.f32 %v609_v6  ;;  %v3326_v14 = vpop.eup %3325 }
  0xb4   : > { %v615_v10 = vadd.f32 1e-06, %v607_v5  ;;  %v3808_v55 = vpop.permute.xlu1 %1414 }
  0xb5   : > { %3337 = vrsqrt.f32 %v616_v8  ;;  %v3806_v54 = vpop.permute.xlu0 %1412 }
  0xb6   : > { %3339 = vrsqrt.f32 %v615_v10 }
  0xb7   : > { %v3328_v16 = vpop.eup %3327 }
  0xb8   : > { %v3330_v20 = vpop.eup %3329  ;;  %v3812_v57 = vpop.permute.xlu1 %1766 }
  0xb9   : > { %v3810_v56 = vpop.permute.xlu0 %1630 }
  0xbb   : > { %v3332_v24 = vpop.eup %3331 }
  0xbc   : > { %v3334_v26 = vpop.eup %3333 }
  0xbd   : > { %v3336_v29 = vpop.eup %3335 }
  0xbf   : > { %v3338_v36 = vpop.eup %3337 }
  0xc0   : > { %v3340_v41 = vpop.eup %3339 }
  0xe8   : > { %v563_v19 = vpop.f32.mrb[0].mxu0 }
  0xe9   : > { %v564_v22 = vadd.f32 1.0, %v563_v19  ;;  %v3210_v23 = vpop.f32.mrb[1].mxu0 }
  0xeb   : > { %v628_v27 = vrot.slane %v564_v22, %v3779_v15 }
  0xec   : > { %v3782_v30 = vpop.f32.mrb[4].mxu0 }
  0xed   : > { %5050 = vst [vmem:[#allocation6_spill] sm:$0xff] %v3782_v30  ;;  %v3227_v31 = vpop.f32.mrb[5].mxu0  ;;  %v1540_v32 = vmul.f32 %v3782_v30, %v3782_v30  ;;  %v629_v33 = vmul.f32 %v3336_v29, %v628_v27  ;;  %v630_v34 = vmul.f32 %v3330_v20, %v628_v27  ;;  %v631_v35 = vmul.f32 %v3326_v14, %v628_v27 }
  0xee   : > { %v3786_v37 = vpop.f32.mrb[6].mxu0  ;;  %v632_v38 = vmul.f32 %v3328_v16, %v628_v27  ;;  %v633_v39 = vmul.f32 %v3334_v26, %v628_v27  ;;  %v634_v40 = vmul.f32 %v3332_v24, %v628_v27  ;;  %v635_v52 = vmul.f32 %v3340_v41, %v628_v27 }
  0xef   : > { %1550 = vrot.lane.b32.xlu0 %v1540_v32, %s3504_s17  ;;  %v1541_v42 = vmul.f32 %v3786_v37, %v3786_v37  ;;  %v637_v43 = vmul.f32 %v629_v33, %v3684_v12  ;;  %v638_v44 = vmul.f32 %v630_v34, %v3695_v17  ;;  %v639_v45 = vmul.f32 %v631_v35, %v3677_v9  ;;  %v3228_v46 = vpop.f32.mrb[7].mxu0 }
  0xf0   : > { %v640_v47 = vmul.f32 %v632_v38, %v3687_v13  ;;  %v641_v48 = vmul.f32 %v633_v39, %v3706_v21  ;;  %v642_v49 = vmul.f32 %v634_v40, %v3698_v18  ;;  %v636_v53 = vmul.f32 %v3338_v36, %v628_v27 }
  0xf1   : > { %1552 = vrot.lane.b32.xlu1 %v1541_v42, %s3504_s17  ;;  %v645_v50 = vpack.c.bf16 %v638_v44, %v637_v43  ;;  %v643_v9 = vmul.f32 %v635_v52, %v3720_v28  ;;  %v1542_v18 = vsel %vm751_vm3, %v1540_v32, 0.0  ;;  %v1545_v21 = vsel %vm751_vm3, %v1541_v42, 0.0  ;;  %v3814_v28 = vpop.permute.xlu0 %1416 }
  0xf2   : > { %v646_v51 = vpack.c.bf16 %v640_v47, %v639_v45  ;;  %v647_v12 = vpack.c.bf16 %v642_v49, %v641_v48  ;;  %v644_v13 = vmul.f32 %v636_v53, %v3713_v25  ;;  %v3816_v25 = vpop.permute.xlu1 %1418 }
  0xf3   : > { %3215 = vmatprep.mubr.msk.bf16.mxu1 %vm575_vm1, %v645_v50 }
  0xf4   : > { %3216 = vmatmul.mubr.msk.bf16.vlgmr.msra.gmra.mrb[0].mxu1 %vm575_vm1, %v646_v51  ;;  %v648_v17 = vpack.c.bf16 %v644_v13, %v643_v9 }
  0xf5   : > { %3219 = vmatprep.mubr.msk.bf16.mxu1 %vm575_vm1, %v647_v12  ;;  %v3818_v58 = vpop.permute.xlu0 %1420 }
  0xf6   : > { %v3820_v59 = vpop.permute.xlu1 %1422 }
  0xf9   : > { %v3822_v60 = vpop.permute.xlu0 %1424 }
  0xfa   : > { %v3824_v61 = vpop.permute.xlu1 %1426 }
  0xfc   : > { %3220 = vmatmul.mubr.msk.bf16.gmra.mrb[4].mxu1 %vm575_vm1, %v648_v17 }
 0x10e   : > { %1543 = vadd.xlane.f32.xlu0 %v1542_v18 }
 0x115   : > { %1546 = vadd.xlane.f32.xlu1 %v1545_v21 }
 0x161   : > { %v1551_v62 = vpop.permute.xlu0 %1550 }
 0x162   : > { %v1556_v63 = vsel %vm751_vm3, %v1551_v62, 0.0 }
 0x163   : > { %1557 = vadd.xlane.f32.xlu0 %v1556_v63  ;;  %v1553_v0 = vpop.permute.xlu1 %1552 }
 0x164   : > { %v1559_v1 = vsel %vm751_vm3, %v1553_v0, 0.0 }
 0x167   : > { %1560 = vadd.xlane.f32.xlu0 %v1559_v1 }
 0x19b   : > { %v3902_v35 = vpop.xlane.xlu0 %1543 }
 0x1a2   : > { %v3909_v39 = vpop.xlane.xlu1 %1546 }
 0x1c7   : > { %v3828_v3 = vpop.f32.mrb[0].mxu1 }
 0x1c8   : > { %v3830_v5 = vpop.f32.mrb[1].mxu1  ;;  %v798_v6 = vmul.f32 %v3828_v3, %v3828_v3 }
 0x1c9   : > { %v3834_v7 = vpop.f32.mrb[2].mxu1  ;;  %v796_v8 = vmul.f32 %v3830_v5, %v3830_v5 }
 0x1ca   : > { %v3838_v10 = vpop.f32.mrb[3].mxu1  ;;  %1120 = vrot.lane.b32.xlu0 %v798_v6, %s3505_s19  ;;  %v799_v14 = vmul.f32 %v3834_v7, %v3834_v7  ;;  %v810_v24 = vsel %vm751_vm3, %v798_v6, 0.0 }
 0x1cb   : > { %1164 = vrot.lane.b32.xlu1 %v796_v8, %s3506_s20  ;;  %v797_v23 = vmul.f32 %v3838_v10, %v3838_v10  ;;  %v804_v26 = vsel %vm751_vm3, %v796_v8, 0.0 }
 0x1cc   : > { %v813_v27 = vsel %vm751_vm3, %v799_v14, 0.0 }
 0x1cd   : > { %v807_v29 = vsel %vm751_vm3, %v797_v23, 0.0 }
 0x1ce   : > { %1168 = vrot.lane.b32.xlu0 %v798_v6, %s3506_s20 }
 0x1cf   : > { %1122 = vrot.lane.b32.xlu1 %v799_v14, %s3505_s19  ;;  %v3846_v16 = vpop.f32.mrb[4].mxu1 }
 0x1d0   : > { %v3848_v19 = vpop.f32.mrb[5].mxu1  ;;  %v3870_v31 = vmul.f32 %v3846_v16, %v3846_v16 }
 0x1d1   : > { %v3850_v20 = vpop.f32.mrb[6].mxu1  ;;  %v3886_v33 = vmul.f32 %v3848_v19, %v3848_v19 }
 0x1d2   : > { %v3852_v22 = vpop.f32.mrb[7].mxu1  ;;  %840 = vrot.lane.b32.xlu0 %v798_v6, %s3504_s17  ;;  %v3878_v32 = vmul.f32 %v3850_v20, %v3850_v20 }
 0x1d3   : > { %1170 = vrot.lane.b32.xlu1 %v799_v14, %s3506_s20  ;;  %v801_v34 = vmul.f32 %v3852_v22, %v3852_v22 }
 0x1d5   : > { %v819_v1 = vsel %vm751_vm3, %v801_v34, 0.0 }
 0x1d6   : > { %1116 = vrot.lane.b32.xlu0 %v796_v8, %s3505_s19 }
 0x1d7   : > { %842 = vrot.lane.b32.xlu1 %v799_v14, %s3504_s17 }
 0x1da   : > { %836 = vrot.lane.b32.xlu0 %v796_v8, %s3504_s17 }
 0x1db   : > { %1118 = vrot.lane.b32.xlu1 %v797_v23, %s3505_s19 }
 0x1df   : > { %1166 = vrot.lane.b32.xlu1 %v797_v23, %s3506_s20 }
 0x1e3   : > { %838 = vrot.lane.b32.xlu1 %v797_v23, %s3504_s17 }
 0x1f0   : > { %v3905_v36 = vpop.xlane.xlu0 %1557 }
 0x1f4   : > { %v3907_v38 = vpop.xlane.xlu0 %1560 }
 0x1f9   : > { %811 = vadd.xlane.f32.xlu0 %v810_v24 }
 0x1fd   : > { %805 = vadd.xlane.f32.xlu0 %v804_v26 }
 0x207   : > { %814 = vadd.xlane.f32.xlu1 %v813_v27 }
 0x20b   : > { %808 = vadd.xlane.f32.xlu1 %v807_v29 }
 0x213   : > { %1128 = vrot.lane.b32.xlu0 %v3870_v31, %s3505_s19 }
 0x217   : > { %1176 = vrot.lane.b32.xlu0 %v3870_v31, %s3506_s20 }
 0x21b   : > { %848 = vrot.lane.b32.xlu0 %v3870_v31, %s3504_s17 }
 0x21c   : > { %1130 = vrot.lane.b32.xlu1 %v3878_v32, %s3505_s19 }
 0x21f   : > { %1124 = vrot.lane.b32.xlu0 %v3886_v33, %s3505_s19 }
 0x220   : > { %1178 = vrot.lane.b32.xlu1 %v3878_v32, %s3506_s20 }
 0x223   : > { %1172 = vrot.lane.b32.xlu0 %v3886_v33, %s3506_s20 }
 0x224   : > { %850 = vrot.lane.b32.xlu1 %v3878_v32, %s3504_s17 }
 0x227   : > { %844 = vrot.lane.b32.xlu0 %v3886_v33, %s3504_s17 }
 0x228   : > { %1126 = vrot.lane.b32.xlu1 %v801_v34, %s3505_s19 }
 0x22c   : > { %1174 = vrot.lane.b32.xlu1 %v801_v34, %s3506_s20 }
 0x230   : > { %846 = vrot.lane.b32.xlu1 %v801_v34, %s3504_s17  ;;  %s3512_s17 = smov 28  }
 0x23c   : > { %v1121_v40 = vpop.permute.xlu0 %1120 }
 0x23d   : > { %v1165_v41 = vpop.permute.xlu1 %1164  ;;  %v1146_v46 = vsel %vm751_vm3, %v1121_v40, 0.0 }
 0x23e   : > { %v1188_v52 = vsel %vm751_vm3, %v1165_v41, 0.0 }
 0x240   : > { %v1169_v42 = vpop.permute.xlu0 %1168 }
 0x241   : > { %v1123_v43 = vpop.permute.xlu1 %1122  ;;  %v1194_v48 = vsel %vm751_vm3, %v1169_v42, 0.0 }
 0x242   : > { %v1149_v12 = vsel %vm751_vm3, %v1123_v43, 0.0 }
 0x244   : > { %v841_v44 = vpop.permute.xlu0 %840 }
 0x245   : > { %v1171_v45 = vpop.permute.xlu1 %1170 }
 0x246   : > { %1147 = vadd.xlane.f32.xlu0 %v1146_v46  ;;  %v1197_v17 = vsel %vm751_vm3, %v1171_v45, 0.0 }
 0x248   : > { %v1117_v49 = vpop.permute.xlu0 %1116 }
 0x249   : > { %v843_v47 = vpop.permute.xlu1 %842  ;;  %v1140_v50 = vsel %vm751_vm3, %v1117_v49, 0.0  ;;  %v866_v49 = vsel %vm751_vm3, %v841_v44, 0.0 }
 0x24a   : > { %1195 = vadd.xlane.f32.xlu0 %v1194_v48  ;;  %v869_v0 = vsel %vm751_vm3, %v843_v47, 0.0 }
 0x24c   : > { %v837_v53 = vpop.permute.xlu0 %836 }
 0x24d   : > { %v1119_v51 = vpop.permute.xlu1 %1118  ;;  %v860_v13 = vsel %vm751_vm3, %v837_v53, 0.0 }
 0x24e   : > { %1141 = vadd.xlane.f32.xlu0 %v1140_v50  ;;  %v1143_v62 = vsel %vm751_vm3, %v1119_v51, 0.0  ;;  %v816_v51 = vsel %vm751_vm3, %v3886_v33, 0.0 }
 0x251   : > { %v1167_v9 = vpop.permute.xlu1 %1166 }
 0x252   : > { %1189 = vadd.xlane.f32.xlu0 %v1188_v52  ;;  %v1191_v18 = vsel %vm751_vm3, %v1167_v9, 0.0 }
 0x254   : > { %1150 = vadd.xlane.f32.xlu1 %v1149_v12 }
 0x255   : > { %v839_v21 = vpop.permute.xlu1 %838 }
 0x256   : > { %861 = vadd.xlane.f32.xlu0 %v860_v13  ;;  %v863_v63 = vsel %vm751_vm3, %v839_v21, 0.0 }
 0x258   : > { %1198 = vadd.xlane.f32.xlu1 %v1197_v17 }
 0x25a   : > { %1192 = vadd.xlane.f32.xlu0 %v1191_v18 }
 0x25c   : > { %1144 = vadd.xlane.f32.xlu1 %v1143_v62 }
 0x25e   : > { %864 = vadd.xlane.f32.xlu0 %v863_v63 }
 0x260   : > { %870 = vadd.xlane.f32.xlu1 %v869_v0 }
 0x264   : > { %820 = vadd.xlane.f32.xlu1 %v819_v1 }
 0x286   : > { %v3923_v6 = vpop.xlane.xlu0 %811 }
 0x28a   : > { %v3925_v8 = vpop.xlane.xlu0 %805 }
 0x28e   : > { %v1129_v14 = vpop.permute.xlu0 %1128 }
 0x28f   : > { %v1158_v23 = vsel %vm751_vm3, %v1129_v14, 0.0 }
 0x290   : > { %1159 = vadd.xlane.f32.xlu0 %v1158_v23 }
 0x292   : > { %v1177_v24 = vpop.permute.xlu0 %1176 }
 0x293   : > { %v1206_v26 = vsel %vm751_vm3, %v1177_v24, 0.0 }
 0x294   : > { %v3929_v27 = vpop.xlane.xlu1 %814  ;;  %1207 = vadd.xlane.f32.xlu0 %v1206_v26  ;;  %v3953_v26 = vld [vmem:[%s5020_s5] ss:$0 sm:$0xff] }
 0x296   : > { %v3931_v29 = vpop.permute.xlu0 %848 }
 0x298   : > { %v3933_v40 = vpop.xlane.xlu1 %808 }
 0x29a   : > { %v1125_v34 = vpop.permute.xlu0 %1124 }
 0x29b   : > { %v1152_v41 = vsel %vm751_vm3, %v1125_v34, 0.0 }
 0x29c   : > { %v1131_v42 = vpop.permute.xlu1 %1130  ;;  %1153 = vadd.xlane.f32.xlu0 %v1152_v41 }
 0x29d   : > { %v1161_v43 = vsel %vm751_vm3, %v1131_v42, 0.0 }
 0x29e   : > { %1162 = vadd.xlane.f32.xlu1 %v1161_v43  ;;  %v1173_v45 = vpop.permute.xlu0 %1172 }
 0x29f   : > { %v1200_v46 = vsel %vm751_vm3, %v1173_v45, 0.0 }
 0x2a0   : > { %v1179_v47 = vpop.permute.xlu1 %1178  ;;  %1201 = vadd.xlane.f32.xlu0 %v1200_v46 }
 0x2a1   : > { %v1209_v48 = vsel %vm751_vm3, %v1179_v47, 0.0 }
 0x2a2   : > { %1210 = vadd.xlane.f32.xlu1 %v1209_v48  ;;  %v845_v52 = vpop.permute.xlu0 %844 }
 0x2a3   : > { %v872_v9 = vsel %vm751_vm3, %v845_v52, 0.0 }
 0x2a4   : > { %v3940_v50 = vpop.permute.xlu1 %850  ;;  %867 = vadd.xlane.f32.xlu0 %v866_v49 }
 0x2a8   : > { %v1127_v53 = vpop.permute.xlu1 %1126  ;;  %817 = vadd.xlane.f32.xlu0 %v816_v51 }
 0x2a9   : > { %v1155_v12 = vsel %vm751_vm3, %v1127_v53, 0.0 }
 0x2aa   : > { %1156 = vadd.xlane.f32.xlu1 %v1155_v12 }
 0x2ac   : > { %v1175_v13 = vpop.permute.xlu1 %1174  ;;  %873 = vadd.xlane.f32.xlu0 %v872_v9 }
 0x2ad   : > { %v1203_v17 = vsel %vm751_vm3, %v1175_v13, 0.0 }
 0x2ae   : > { %1204 = vadd.xlane.f32.xlu1 %v1203_v17 }
 0x2b0   : > { %v847_v44 = vpop.permute.xlu1 %846 }
 0x2b1   : > { %v875_v18 = vsel %vm751_vm3, %v847_v44, 0.0 }
 0x2b2   : > { %876 = vadd.xlane.f32.xlu1 %v875_v18 }
 0x2d3   : > { %v1148_v21 = vpop.xlane.xlu0 %1147 }
 0x2d7   : > { %v1196_v62 = vpop.xlane.xlu0 %1195 }
 0x2d8   : > { %v1214_v33 = vsel %vm751_vm3, %v1148_v21, %v1196_v62 }
 0x2d9   : > { %v1222_v63 = vadd.f32 1e-06, %v1214_v33 }
 0x2db   : > { %3341 = vrsqrt.f32 %v1222_v63  ;;  %v1142_v0 = vpop.xlane.xlu0 %1141 }
 0x2df   : > { %v1190_v1 = vpop.xlane.xlu0 %1189 }
 0x2e0   : > { %v1212_v14 = vsel %vm751_vm3, %v1142_v0, %v1190_v1 }
 0x2e1   : > { %v1220_v23 = vadd.f32 1e-06, %v1212_v14  ;;  %v1151_v24 = vpop.xlane.xlu1 %1150 }
 0x2e3   : > { %3343 = vrsqrt.f32 %v1220_v23  ;;  %v3955_v34 = vpop.xlane.xlu0 %861 }
 0x2e5   : > { %v3342_v41 = vpop.eup %3341  ;;  %v1199_v42 = vpop.xlane.xlu1 %1198 }
 0x2e6   : > { %v1215_v43 = vsel %vm751_vm3, %v1151_v24, %v1199_v42  ;;  %v1238_v45 = vmul.f32 %v3342_v41, %v3953_v26 }
 0x2e7   : > { %v1223_v46 = vadd.f32 1e-06, %v1215_v43  ;;  %v1193_v47 = vpop.xlane.xlu0 %1192 }
 0x2e8   : > { %1256 = vrot.lane.b32.xlu1 %v1238_v45, %s3503_s16 }
 0x2e9   : > { %3345 = vrsqrt.f32 %v1223_v46  ;;  %v1145_v48 = vpop.xlane.xlu1 %1144 }
 0x2ea   : > { %v1213_v49 = vsel %vm751_vm3, %v1145_v48, %v1193_v47 }
 0x2eb   : > { %v1221_v51 = vadd.f32 1e-06, %v1213_v49  ;;  %v3967_v44 = vpop.xlane.xlu0 %864 }
 0x2ed   : > { %v3344_v52 = vpop.eup %3343  ;;  %3347 = vrsqrt.f32 %v1221_v51  ;;  %v3969_v21 = vpop.xlane.xlu1 %870 }
 0x2ee   : > { %v1236_v53 = vmul.f32 %v3344_v52, %v3953_v26 }
 0x2f0   : > { %1252 = vrot.lane.b32.xlu0 %v1236_v53, %s3503_s16 }
 0x2f1   : > { %v3972_v0 = vpop.xlane.xlu1 %820 }
 0x2f3   : > { %v3346_v12 = vpop.eup %3345 }
 0x2f4   : > { %v1239_v9 = vmul.f32 %v3346_v12, %v3953_v26 }
 0x2f6   : > { %1258 = vrot.lane.b32.xlu1 %v1239_v9, %s3503_s16 }
 0x2f7   : > { %v3348_v13 = vpop.eup %3347 }
 0x2f8   : > { %v1237_v17 = vmul.f32 %v3348_v13, %v3953_v26 }
 0x2fa   : > { %1254 = vrot.lane.b32.xlu1 %v1237_v17, %s3503_s16 }
 0x31d   : > { %v1160_v18 = vpop.xlane.xlu0 %1159 }
 0x321   : > { %v1208_v62 = vpop.xlane.xlu0 %1207 }
 0x322   : > { %v1218_v33 = vsel %vm751_vm3, %v1160_v18, %v1208_v62 }
 0x323   : > { %v1226_v63 = vadd.f32 1e-06, %v1218_v33 }
 0x325   : > { %3349 = vrsqrt.f32 %v1226_v63 }
 0x329   : > { %v1154_v1 = vpop.xlane.xlu0 %1153 }
 0x32b   : > { %v1163_v14 = vpop.xlane.xlu1 %1162 }
 0x32d   : > { %v1202_v23 = vpop.xlane.xlu0 %1201 }
 0x32e   : > { %v1216_v24 = vsel %vm751_vm3, %v1154_v1, %v1202_v23 }
 0x32f   : > { %v3350_v41 = vpop.eup %3349  ;;  %v1224_v42 = vadd.f32 1e-06, %v1216_v24  ;;  %v1211_v43 = vpop.xlane.xlu1 %1210 }
 0x330   : > { %v1219_v45 = vsel %vm751_vm3, %v1163_v14, %v1211_v43  ;;  %v1242_v46 = vmul.f32 %v3350_v41, %v3953_v26 }
 0x331   : > { %3351 = vrsqrt.f32 %v1224_v42  ;;  %v1227_v47 = vadd.f32 1e-06, %v1219_v45  ;;  %v3987_v33 = vpop.xlane.xlu0 %867 }
 0x332   : > { %1264 = vrot.lane.b32.xlu0 %v1242_v46, %s3503_s16 }
 0x333   : > { %3353 = vrsqrt.f32 %v1227_v47 }
 0x335   : > { %v3994_v14 = vpop.xlane.xlu0 %817 }
 0x337   : > { %v1157_v48 = vpop.xlane.xlu1 %1156 }
 0x339   : > { %v3998_v23 = vpop.xlane.xlu0 %873 }
 0x33b   : > { %v3352_v49 = vpop.eup %3351  ;;  %v1205_v51 = vpop.xlane.xlu1 %1204 }
 0x33c   : > { %v1217_v52 = vsel %vm751_vm3, %v1157_v48, %v1205_v51  ;;  %v1240_v53 = vmul.f32 %v3352_v49, %v3953_v26  ;;  %v825_v49 = vsel %vm751_vm3, %v3878_v32, 0.0 }
 0x33d   : > { %v3354_v12 = vpop.eup %3353  ;;  %v1225_v9 = vadd.f32 1e-06, %v1217_v52 }
 0x33e   : > { %1260 = vrot.lane.b32.xlu0 %v1240_v53, %s3503_s16  ;;  %v1243_v13 = vmul.f32 %v3354_v12, %v3953_v26 }
 0x33f   : > { %3355 = vrsqrt.f32 %v1225_v9  ;;  %v3985_v62 = vpop.xlane.xlu1 %876 }
 0x340   : > { %1266 = vrot.lane.b32.xlu1 %v1243_v13, %s3503_s16 }
 0x349   : > { %v3356_v17 = vpop.eup %3355 }
 0x34a   : > { %v1241_v18 = vmul.f32 %v3356_v17, %v3953_v26 }
 0x34c   : > { %1262 = vrot.lane.b32.xlu1 %v1241_v18, %s3503_s16 }
 0x35a   : > { %v1257_v63 = vpop.permute.xlu1 %1256 }
 0x35b   : > { %v3990_v1 = vmul.f32 %v3828_v3, %v1257_v63 }
 0x35d   : > { %1352 = vrot.lane.b32.xlu0 %v3990_v1, %s3507_s24 }
 0x361   : > { %1376 = vrot.lane.b32.xlu0 %v3990_v1, %s3508_s27 }
 0x362   : > { %v1253_v24 = vpop.permute.xlu0 %1252 }
 0x363   : > { %v4008_v43 = vmul.f32 %v1253_v24, %v3830_v5 }
 0x365   : > { %1296 = vrot.lane.b32.xlu0 %v3990_v1, %s3509_s28 }
 0x368   : > { %v1259_v41 = vpop.permute.xlu1 %1258 }
 0x369   : > { %v4003_v42 = vmul.f32 %v3834_v7, %v1259_v41  ;;  %1320 = vrot.lane.b32.xlu0 %v3990_v1, %s3510_s29 }
 0x36b   : > { %1354 = vrot.lane.b32.xlu1 %v4003_v42, %s3507_s24 }
 0x36c   : > { %v1255_v45 = vpop.permute.xlu1 %1254 }
 0x36d   : > { %1348 = vrot.lane.b32.xlu0 %v4008_v43, %s3507_s24  ;;  %v4025_v46 = vmul.f32 %v1255_v45, %v3838_v10 }
 0x36f   : > { %1378 = vrot.lane.b32.xlu1 %v4003_v42, %s3508_s27 }
 0x371   : > { %1372 = vrot.lane.b32.xlu0 %v4008_v43, %s3508_s27 }
 0x373   : > { %1298 = vrot.lane.b32.xlu1 %v4003_v42, %s3509_s28 }
 0x375   : > { %1292 = vrot.lane.b32.xlu0 %v4008_v43, %s3509_s28 }
 0x377   : > { %1322 = vrot.lane.b32.xlu1 %v4003_v42, %s3510_s29 }
 0x379   : > { %1316 = vrot.lane.b32.xlu0 %v4008_v43, %s3510_s29 }
 0x37b   : > { %1350 = vrot.lane.b32.xlu1 %v4025_v46, %s3507_s24 }
 0x37f   : > { %1374 = vrot.lane.b32.xlu1 %v4025_v46, %s3508_s27 }
 0x383   : > { %1294 = vrot.lane.b32.xlu1 %v4025_v46, %s3509_s28 }
 0x387   : > { %1318 = vrot.lane.b32.xlu1 %v4025_v46, %s3510_s29 }
 0x3a4   : > { %v1265_v47 = vpop.permute.xlu0 %1264 }
 0x3a5   : > { %v4038_v48 = vmul.f32 %v3846_v16, %v1265_v47  ;;  %v822_v47 = vsel %vm751_vm3, %v3870_v31, 0.0 }
 0x3a7   : > { %1360 = vrot.lane.b32.xlu0 %v4038_v48, %s3507_s24 }
 0x3ab   : > { %826 = vadd.xlane.f32.xlu1 %v825_v49  ;;  %1384 = vrot.lane.b32.xlu0 %v4038_v48, %s3508_s27  ;;  %v4088_v49 = vld [vmem:[%s5018_s3 + $0x80] sm:$0xff] }
 0x3af   : > { %1304 = vrot.lane.b32.xlu0 %v4038_v48, %s3509_s28 }
 0x3b0   : > { %v1261_v51 = vpop.permute.xlu0 %1260 }
 0x3b1   : > { %v4051_v52 = vmul.f32 %v1261_v51, %v3848_v19 }
 0x3b2   : > { %v1267_v53 = vpop.permute.xlu1 %1266 }
 0x3b3   : > { %1328 = vrot.lane.b32.xlu0 %v4038_v48, %s3510_s29  ;;  %v4056_v32 = vmul.f32 %v3850_v20, %v1267_v53 }
 0x3b7   : > { %1356 = vrot.lane.b32.xlu0 %v4051_v52, %s3507_s24 }
 0x3bb   : > { %1380 = vrot.lane.b32.xlu0 %v4051_v52, %s3508_s27 }
 0x3bc   : > { %1362 = vrot.lane.b32.xlu1 %v4056_v32, %s3507_s24 }
 0x3be   : > { %v1263_v12 = vpop.permute.xlu1 %1262 }
 0x3bf   : > { %1300 = vrot.lane.b32.xlu0 %v4051_v52, %s3509_s28  ;;  %v4073_v9 = vmul.f32 %v1263_v12, %v3852_v22 }
 0x3c0   : > { %1386 = vrot.lane.b32.xlu1 %v4056_v32, %s3508_s27 }
 0x3c3   : > { %1324 = vrot.lane.b32.xlu0 %v4051_v52, %s3510_s29 }
 0x3c4   : > { %1306 = vrot.lane.b32.xlu1 %v4056_v32, %s3509_s28 }
 0x3c8   : > { %1330 = vrot.lane.b32.xlu1 %v4056_v32, %s3510_s29 }
 0x3cc   : > { %1358 = vrot.lane.b32.xlu1 %v4073_v9, %s3507_s24 }
 0x3cf   : > { %v1353_v13 = vpop.permute.xlu0 %1352 }
 0x3d0   : > { %1382 = vrot.lane.b32.xlu1 %v4073_v9, %s3508_s27 }
 0x3d3   : > { %v1377_v17 = vpop.permute.xlu0 %1376 }
 0x3d4   : > { %1302 = vrot.lane.b32.xlu1 %v4073_v9, %s3509_s28 }
 0x3d7   : > { %v1297_v18 = vpop.permute.xlu0 %1296 }
 0x3d8   : > { %1326 = vrot.lane.b32.xlu1 %v4073_v9, %s3510_s29 }
 0x3db   : > { %v1321_v63 = vpop.permute.xlu0 %1320 }
 0x3dd   : > { %v1355_v24 = vpop.permute.xlu1 %1354 }
 0x3df   : > { %v1349_v41 = vpop.permute.xlu0 %1348 }
 0x3e1   : > { %v1379_v45 = vpop.permute.xlu1 %1378 }
 0x3e2   : > { %823 = vadd.xlane.f32.xlu0 %v822_v47  ;;  %v1399_v31 = vsel %vm1067_vm4, %v1355_v24, %v1379_v45  ;;  %v4112_v24 = vld [vmem:[%s5018_s3 + $0x88] sm:$0xff] }
 0x3e3   : > { %v1373_v51 = vpop.permute.xlu0 %1372  ;;  %v1447_v47 = vmul.f32 %v4095_v2, %v1399_v31 }
 0x3e4   : > { %v1396_v53 = vsel %vm1067_vm4, %v1349_v41, %v1373_v51  ;;  %v4103_v41 = vld [vmem:[%s5018_s3 + $0x58] sm:$0xff] }
 0x3e5   : > { %v1444_v12 = vmul.f32 %v4088_v49, %v1396_v53  ;;  %v1299_v4 = vpop.permute.xlu1 %1298  ;;  %5051 = vst [vmem:[#allocation7_spill] sm:$0xff] %v4103_v41 }
 0x3e7   : > { %1460 = vrot.lane.b32.xlu1 %v1444_v12, %s3503_s16  ;;  %v1293_v12 = vpop.permute.xlu0 %1292 }
 0x3e9   : > { %v1323_v15 = vpop.permute.xlu1 %1322 }
 0x3ea   : > { %v1343_v51 = vsel %vm1010_vm5, %v1299_v4, %v1323_v15  ;;  %v4118_v4 = vld [vmem:[%s5018_s3 + $0x90] sm:$0xff]  ;;  %v1398_v15 = vsel %vm1067_vm4, %v1353_v13, %v1377_v17  ;;  %v4134_v13 = vld [vmem:[%s5018_s3 + $0x48] sm:$0xff] }
 0x3eb   : > { %1466 = vrot.lane.b32.xlu1 %v1447_v47, %s3503_s16  ;;  %v1495_v53 = vmul.f32 %v4103_v41, %v1343_v51  ;;  %5052 = vst [vmem:[#allocation8_spill] sm:$0xff] %v4118_v4  ;;  %v4127_v41 = vld [vmem:[%s5018_s3 + $0x50] sm:$0xff] }
 0x3ec   : > { %5053 = vst [vmem:[#allocation9_spill] sm:$0xff] %v4127_v41 }
 0x3ed   : > { %v1351_v11 = vpop.permute.xlu1 %1350 }
 0x3ef   : > { %1514 = vrot.lane.b32.xlu1 %v1495_v53, %s3503_s16  ;;  %v1446_v53 = vmul.f32 %v4118_v4, %v1398_v15 }
 0x3f1   : > { %v1375_v45 = vpop.permute.xlu1 %1374 }
 0x3f2   : > { %v1397_v31 = vsel %vm1067_vm4, %v1351_v11, %v1375_v45  ;;  %v1342_v11 = vsel %vm1010_vm5, %v1297_v18, %v1321_v63  ;;  %v1317_v45 = vpop.permute.xlu0 %1316 }
 0x3f3   : > { %v1445_v47 = vmul.f32 %v4112_v24, %v1397_v31  ;;  %v1494_v31 = vmul.f32 %v4127_v41, %v1342_v11  ;;  %v1340_v18 = vsel %vm1010_vm5, %v1293_v12, %v1317_v45 }
 0x3f5   : > { %v1295_v51 = vpop.permute.xlu1 %1294  ;;  %1462 = vrot.lane.b32.xlu1 %v1445_v47, %s3503_s16  ;;  %v4141_v47 = vld [vmem:[%s5018_s3 + $0x40] sm:$0xff] }
 0x3f8   : > { %1464 = vrot.lane.b32.xlu0 %v1446_v53, %s3503_s16  ;;  %v1492_v53 = vmul.f32 %v4141_v47, %v1340_v18 }
 0x3f9   : > { %v1319_v17 = vpop.permute.xlu1 %1318 }
 0x3fa   : > { %v1341_v15 = vsel %vm1010_vm5, %v1295_v51, %v1319_v17  ;;  %v4152_v51 = vld [vmem:[%s5018_s3 + $0xb0] sm:$0xff] }
 0x3fb   : > { %v1493_v63 = vmul.f32 %v4134_v13, %v1341_v15  ;;  %5054 = vst [vmem:[#allocation10_spill] sm:$0xff] %v4152_v51 }
 0x3fc   : > { %1512 = vrot.lane.b32.xlu0 %v1494_v31, %s3503_s16  ;;  %v4160_v31 = vld [vmem:[%s5018_s3 + $0x70] sm:$0xff] }
 0x3fd   : > { %1510 = vrot.lane.b32.xlu1 %v1493_v63, %s3503_s16  ;;  %5055 = vst [vmem:[#allocation11_spill] sm:$0xff] %v4160_v31 }
 0x400   : > { %1508 = vrot.lane.b32.xlu0 %v1492_v53, %s3503_s16 }
 0x419   : > { %v1361_v11 = vpop.permute.xlu0 %1360 }
 0x41d   : > { %v1385_v17 = vpop.permute.xlu0 %1384 }
 0x41e   : > { %v1402_v41 = vsel %vm1067_vm4, %v1361_v11, %v1385_v17 }
 0x41f   : > { %v1450_v12 = vmul.f32 %v4152_v51, %v1402_v41  ;;  %v4168_v41 = vld [vmem:[%s5018_s3 + $0xa0] sm:$0xff] }
 0x420   : > { %5056 = vst [vmem:[#allocation12_spill] sm:$0xff] %v4168_v41 }
 0x421   : > { %1472 = vrot.lane.b32.xlu0 %v1450_v12, %s3503_s16  ;;  %v1305_v45 = vpop.permute.xlu0 %1304 }
 0x425   : > { %v1329_v15 = vpop.permute.xlu0 %1328 }
 0x426   : > { %v1346_v18 = vsel %vm1010_vm5, %v1305_v45, %v1329_v15  ;;  %v4176_v45 = vld [vmem:[%s5018_s3 + $0x60] sm:$0xff] }
 0x427   : > { %v1498_v63 = vmul.f32 %v4160_v31, %v1346_v18  ;;  %5057 = vst [vmem:[#allocation13_spill] sm:$0xff] %v4176_v45 }
 0x429   : > { %1520 = vrot.lane.b32.xlu0 %v1498_v63, %s3503_s16  ;;  %v1357_v53 = vpop.permute.xlu0 %1356 }
 0x42d   : > { %v1381_v11 = vpop.permute.xlu0 %1380 }
 0x42e   : > { %v1400_v17 = vsel %vm1067_vm4, %v1357_v53, %v1381_v11  ;;  %v4186_v11 = vld [vmem:[%s5018_s3 + $0xb8] sm:$0xff] }
 0x42f   : > { %v1448_v12 = vmul.f32 %v4168_v41, %v1400_v17  ;;  %5058 = vst [vmem:[#allocation14_spill] sm:$0xff] %v4186_v11 }
 0x431   : > { %1468 = vrot.lane.b32.xlu0 %v1448_v12, %s3503_s16  ;;  %v1301_v51 = vpop.permute.xlu0 %1300 }
 0x435   : > { %v1325_v15 = vpop.permute.xlu0 %1324 }
 0x436   : > { %v1344_v18 = vsel %vm1010_vm5, %v1301_v51, %v1325_v15  ;;  %v4194_v51 = vld [vmem:[%s5018_s3 + $0x78] sm:$0xff] }
 0x437   : > { %v1496_v63 = vmul.f32 %v4176_v45, %v1344_v18  ;;  %5059 = vst [vmem:[#allocation15_spill] sm:$0xff] %v4194_v51 }
 0x438   : > { %v4180_v31 = vpop.xlane.xlu1 %826 }
 0x439   : > { %1516 = vrot.lane.b32.xlu0 %v1496_v63, %s3503_s16 }
 0x43c   : > { %v1363_v53 = vpop.permute.xlu1 %1362 }
 0x440   : > { %v1387_v17 = vpop.permute.xlu1 %1386 }
 0x441   : > { %v1403_v12 = vsel %vm1067_vm4, %v1363_v53, %v1387_v17  ;;  %v4202_v53 = vld [vmem:[%s5018_s3 + $0xa8] sm:$0xff] }
 0x442   : > { %v1451_v41 = vmul.f32 %v4186_v11, %v1403_v12  ;;  %5060 = vst [vmem:[#allocation16_spill] sm:$0xff] %v4202_v53  ;;  %v1562_v11 = vsel %vm751_vm3, %v3902_v35, %v3905_v36  ;;  %v3061_v36 = vld [vmem:[%s5020_s5 + $0x1] ss:$0 sm:$0xff] }
 0x444   : > { %v1307_v4 = vpop.permute.xlu1 %1306  ;;  %1474 = vrot.lane.b32.xlu1 %v1451_v41, %s3503_s16 }
 0x448   : > { %v1331_v15 = vpop.permute.xlu1 %1330 }
 0x449   : > { %v1347_v18 = vsel %vm1010_vm5, %v1307_v4, %v1331_v15  ;;  %v1564_v15 = vadd.f32 1e-06, %v1562_v11 }
 0x44a   : > { %v1499_v63 = vmul.f32 %v4194_v51, %v1347_v18  ;;  %v4213_v18 = vld [vmem:[%s5018_s3 + $0x68] sm:$0xff] }
 0x44b   : > { %5061 = vst [vmem:[#allocation17_spill] sm:$0xff] %v4213_v18  ;;  %3357 = vrsqrt.f32 %v1564_v15  ;;  %v1563_v15 = vsel %vm751_vm3, %v3909_v39, %v3907_v38  ;;  %v881_v38 = vsel %vm751_vm3, %v3940_v50, 0.0 }
 0x44c   : > { %v1359_v45 = vpop.permute.xlu1 %1358  ;;  %1522 = vrot.lane.b32.xlu1 %v1499_v63, %s3503_s16  ;;  %v878_v63 = vsel %vm751_vm3, %v3931_v29, 0.0 }
 0x450   : > { %v1383_v17 = vpop.permute.xlu1 %1382 }
 0x451   : > { %v1401_v41 = vsel %vm1067_vm4, %v1359_v45, %v1383_v17 }
 0x452   : > { %v1449_v12 = vmul.f32 %v4202_v53, %v1401_v41 }
 0x454   : > { %v1303_v4 = vpop.permute.xlu1 %1302  ;;  %1470 = vrot.lane.b32.xlu1 %v1449_v12, %s3503_s16  ;;  %v1438_v12 = vmul.f32 %v3814_v28, %v3990_v1 }
 0x455   : > { %v3358_v35 = vpop.eup %3357 }
 0x456   : > { %v1572_v11 = vmul.f32 %v3358_v35, %v3061_v36  ;;  %v1565_v35 = vadd.f32 1e-06, %v1563_v15 }
 0x458   : > { %v1327_v51 = vpop.permute.xlu1 %1326  ;;  %879 = vadd.xlane.f32.xlu0 %v878_v63  ;;  %v4224_v41 = vmul.f32 %v1572_v11, %v3782_v30  ;;  %v1436_v11 = vmul.f32 %v3806_v54, %v4008_v43  ;;  %3359 = vrsqrt.f32 %v1565_v35 }
 0x459   : > { %v1345_v45 = vsel %vm1010_vm5, %v1303_v4, %v1327_v51 }
 0x45a   : > { %v1497_v17 = vmul.f32 %v4213_v18, %v1345_v45 }
 0x45c   : > { %1518 = vrot.lane.b32.xlu1 %v1497_v17, %s3503_s16  ;;  %v1461_v17 = vpop.permute.xlu1 %1460  ;;  %s3511_s16 = smov 4  }
 0x45d   : > { %v1484_v53 = vadd.f32 %v1461_v17, %v1436_v11 }
 0x460   : > { %v1467_v43 = vpop.permute.xlu1 %1466 }
 0x462   : > { %v3360_v54 = vpop.eup %3359 }
 0x46e   : > { %1600 = vrot.lane.b32.xlu0 %v4224_v41, %s3508_s27 }
 0x46f   : > { %v4228_v29 = vpop.xlane.xlu0 %823 }
 0x473   : > { %v1465_v51 = vpop.permute.xlu0 %1464 }
 0x474   : > { %v1486_v4 = vadd.f32 %v1465_v51, %v1438_v12  ;;  %v1515_v51 = vpop.permute.xlu1 %1514 }
 0x477   : > { %v1513_v63 = vpop.permute.xlu0 %1512 }
 0x478   : > { %v1534_v45 = vsub.f32 %v1486_v4, %v1513_v63  ;;  %v1463_v15 = vpop.permute.xlu1 %1462 }
 0x47a   : > { %v1635_v30 = vmul.f32 %v3810_v56, %v1534_v45  ;;  %v1771_v28 = vmul.f32 %v3812_v57, %v1534_v45 }
 0x47b   : > { %v1509_v18 = vpop.permute.xlu0 %1508 }
 0x47c   : > { %1653 = vrot.lane.b32.xlu0 %v1635_v30, %s3505_s19  ;;  %v1532_v1 = vsub.f32 %v1484_v53, %v1509_v18  ;;  %v1573_v30 = vmul.f32 %v3360_v54, %v3061_v36  ;;  %v1439_v53 = vmul.f32 %v3816_v25, %v4003_v42  ;;  %v1437_v36 = vmul.f32 %v3808_v55, %v4025_v46  ;;  %v1511_v25 = vpop.permute.xlu1 %1510 }
 0x47d   : > { %v1442_v42 = vmul.f32 %v3822_v60, %v4038_v48  ;;  %v1440_v48 = vmul.f32 %v3818_v58, %v4051_v52  ;;  %v884_v54 = vsel %vm751_vm3, %v3925_v8, %v3955_v34  ;;  %v886_v8 = vsel %vm751_vm3, %v3923_v6, %v3987_v33 }
 0x47e   : > { %v1633_v39 = vmul.f32 %v3810_v56, %v1532_v1  ;;  %v4250_v50 = vmul.f32 %v1573_v30, %v3786_v37  ;;  %v1487_v18 = vadd.f32 %v1467_v43, %v1439_v53  ;;  %v1769_v4 = vmul.f32 %v3812_v57, %v1532_v1 }
 0x47f   : > { %v1485_v17 = vadd.f32 %v1463_v15, %v1437_v36  ;;  %v892_v53 = vadd.f32 1e-06, %v884_v54  ;;  %v894_v15 = vadd.f32 1e-06, %v886_v8 }
 0x480   : > { %882 = vadd.xlane.f32.xlu1 %v881_v38  ;;  %1789 = vrot.lane.b32.xlu0 %v1771_v28, %s3505_s19  ;;  %v1535_v12 = vsub.f32 %v1487_v18, %v1515_v51 }
 0x481   : > { %v1533_v28 = vsub.f32 %v1485_v17, %v1511_v25  ;;  %3361 = vrsqrt.f32 %v892_v53  ;;  %v1441_v17 = vmul.f32 %v3820_v59, %v4073_v9  ;;  %v887_v9 = vsel %vm751_vm3, %v3929_v27, %v3969_v21 }
 0x482   : > { %v1636_v63 = vmul.f32 %v3810_v56, %v1535_v12  ;;  %v1772_v11 = vmul.f32 %v3812_v57, %v1535_v12  ;;  %3363 = vrsqrt.f32 %v894_v15 }
 0x483   : > { %v1634_v55 = vmul.f32 %v3810_v56, %v1533_v28  ;;  %v1770_v60 = vmul.f32 %v3812_v57, %v1533_v28 }
 0x484   : > { %1649 = vrot.lane.b32.xlu0 %v1633_v39, %s3505_s19 }
 0x488   : > { %1606 = vrot.lane.b32.xlu0 %v4224_v41, %s3511_s16 }
 0x48b   : > { %v3362_v52 = vpop.eup %3361 }
 0x48c   : > { %v912_v36 = vmul.f32 %v3362_v52, %v3953_v26 }
 0x48e   : > { %v4295_v33 = vmul.f32 %v912_v36, %v3830_v5 }
 0x491   : > { %1602 = vrot.lane.b32.xlu1 %v4250_v50, %s3508_s27 }
 0x493   : > { %v1473_v45 = vpop.permute.xlu0 %1472 }
 0x494   : > { %v1490_v35 = vadd.f32 %v1473_v45, %v1442_v42  ;;  %v3364_v42 = vpop.eup %3363 }
 0x495   : > { %1785 = vrot.lane.b32.xlu1 %v1769_v4, %s3505_s19  ;;  %v1443_v4 = vmul.f32 %v3824_v61, %v4056_v32  ;;  %v888_v61 = vsel %vm751_vm3, %v3994_v14, %v3998_v23 }
 0x499   : > { %1655 = vrot.lane.b32.xlu1 %v1636_v63, %s3505_s19 }
 0x49b   : > { %v1521_v1 = vpop.permute.xlu0 %1520 }
 0x49c   : > { %v1538_v38 = vsub.f32 %v1490_v35, %v1521_v1  ;;  %v885_v35 = vsel %vm751_vm3, %v3933_v40, %v3967_v44  ;;  %v914_v1 = vmul.f32 %v3364_v42, %v3953_v26 }
 0x49d   : > { %1791 = vrot.lane.b32.xlu1 %v1772_v11, %s3505_s19  ;;  %v896_v11 = vadd.f32 1e-06, %v888_v61 }
 0x49e   : > { %v1639_v39 = vmul.f32 %v3810_v56, %v1538_v38  ;;  %v1775_v58 = vmul.f32 %v3812_v57, %v1538_v38  ;;  %v4317_v14 = vmul.f32 %v3828_v3, %v914_v1 }
 0x49f   : > { %3365 = vrsqrt.f32 %v896_v11 }
 0x4a0   : > { %1661 = vrot.lane.b32.xlu0 %v1639_v39, %s3505_s19 }
 0x4a1   : > { %1651 = vrot.lane.b32.xlu1 %v1634_v55, %s3505_s19  ;;  %v893_v55 = vadd.f32 1e-06, %v885_v35 }
 0x4a3   : > { %v1469_v46 = vpop.permute.xlu0 %1468  ;;  %3367 = vrsqrt.f32 %v893_v55 }
 0x4a4   : > { %v1488_v43 = vadd.f32 %v1469_v46, %v1440_v48  ;;  %v895_v48 = vadd.f32 1e-06, %v887_v9 }
 0x4a5   : > { %1787 = vrot.lane.b32.xlu1 %v1770_v60, %s3505_s19 }
 0x4a6   : > { %3369 = vrsqrt.f32 %v895_v48 }
 0x4a9   : > { %1608 = vrot.lane.b32.xlu1 %v4250_v50, %s3511_s16  ;;  %v3366_v23 = vpop.eup %3365 }
 0x4aa   : > { %v916_v46 = vmul.f32 %v3366_v23, %v3953_v26 }
 0x4ab   : > { %v1517_v30 = vpop.permute.xlu0 %1516 }
 0x4ac   : > { %v1536_v51 = vsub.f32 %v1488_v43, %v1517_v30  ;;  %v4340_v43 = vmul.f32 %v916_v46, %v3848_v19 }
 0x4ad   : > { %v3368_v60 = vpop.eup %3367 }
 0x4ae   : > { %v1637_v18 = vmul.f32 %v3810_v56, %v1536_v51  ;;  %v1773_v12 = vmul.f32 %v3812_v57, %v1536_v51  ;;  %v913_v54 = vmul.f32 %v3368_v60, %v3953_v26  ;;  %v3064_v60 = vld [vmem:[%s5019_s4 + $0x20] sm:$0xff] }
 0x4b0   : > { %1657 = vrot.lane.b32.xlu0 %v1637_v18, %s3505_s19  ;;  %v4347_v21 = vmul.f32 %v913_v54, %v3838_v10  ;;  %v3370_v18 = vpop.eup %3369 }
 0x4b1   : > { %v915_v8 = vmul.f32 %v3370_v18, %v3953_v26  ;;  %v1576_v18 = vld [vmem:[%s5019_s4] sm:$0xff] }
 0x4b4   : > { %1793 = vrot.lane.b32.xlu0 %v1773_v12, %s3505_s19 }
 0x4b6   : > { %v1475_v34 = vpop.permute.xlu1 %1474 }
 0x4b7   : > { %v1491_v63 = vadd.f32 %v1475_v34, %v1443_v4 }
 0x4b8   : > { %1797 = vrot.lane.b32.xlu0 %v1775_v58, %s3505_s19 }
 0x4bc   : > { %1586 = vrot.lane.b32.xlu0 %v4224_v41, %s3510_s29 }
 0x4be   : > { %v1523_v45 = vpop.permute.xlu1 %1522 }
 0x4bf   : > { %v1539_v25 = vsub.f32 %v1491_v63, %v1523_v45 }
 0x4c0   : > { %1592 = vrot.lane.b32.xlu0 %v4224_v41, %s3512_s17 }
 0x4c1   : > { %v1640_v6 = vmul.f32 %v3810_v56, %v1539_v25  ;;  %v1776_v44 = vmul.f32 %v3812_v57, %v1539_v25  ;;  %v4406_v25 = vld [vmem:[%s5020_s5 + $0x4] ss:$0 sm:$0xff] }
 0x4c3   : > { %1663 = vrot.lane.b32.xlu1 %v1640_v6, %s3505_s19 }
 0x4c4   : > { %1019 = vrot.lane.b32.xlu0 %v4295_v33, %s3508_s27 }
 0x4c6   : > { %v1471_v32 = vpop.permute.xlu1 %1470 }
 0x4c7   : > { %v1489_v28 = vadd.f32 %v1471_v32, %v1441_v17 }
 0x4c8   : > { %1043 = vrot.lane.b32.xlu0 %v4295_v33, %s3511_s16 }
 0x4cc   : > { %962 = vrot.lane.b32.xlu0 %v4295_v33, %s3510_s29 }
 0x4ce   : > { %v1519_v38 = vpop.permute.xlu1 %1518 }
 0x4cf   : > { %v1537_v39 = vsub.f32 %v1489_v28, %v1519_v38 }
 0x4d0   : > { %986 = vrot.lane.b32.xlu0 %v4295_v33, %s3512_s17 }
 0x4d1   : > { %v1638_v59 = vmul.f32 %v3810_v56, %v1537_v39  ;;  %v1774_v40 = vmul.f32 %v3812_v57, %v1537_v39 }
 0x4d3   : > { %1659 = vrot.lane.b32.xlu1 %v1638_v59, %s3505_s19 }
 0x4d4   : > { %1023 = vrot.lane.b32.xlu0 %v4317_v14, %s3508_s27 }
 0x4d7   : > { %1795 = vrot.lane.b32.xlu1 %v1774_v40, %s3505_s19 }
 0x4d8   : > { %1047 = vrot.lane.b32.xlu0 %v4317_v14, %s3511_s16 }
 0x4db   : > { %1799 = vrot.lane.b32.xlu1 %v1776_v44, %s3505_s19 }
 0x4dc   : > { %966 = vrot.lane.b32.xlu0 %v4317_v14, %s3510_s29 }
 0x4df   : > { %1588 = vrot.lane.b32.xlu1 %v4250_v50, %s3510_s29 }
 0x4e0   : > { %990 = vrot.lane.b32.xlu0 %v4317_v14, %s3512_s17 }
 0x4e3   : > { %1594 = vrot.lane.b32.xlu1 %v4250_v50, %s3512_s17 }
 0x4e4   : > { %1027 = vrot.lane.b32.xlu0 %v4340_v43, %s3508_s27 }
 0x4e5   : > { %v880_v27 = vpop.xlane.xlu0 %879 }
 0x4e6   : > { %v890_v30 = vsel %vm751_vm3, %v4228_v29, %v880_v27  ;;  %v889_v29 = vsel %vm751_vm3, %v3972_v0, %v3985_v62  ;;  %v4375_v62 = vmul.f32 %v3834_v7, %v915_v8  ;;  %v4452_v8 = vld [vmem:[%s5020_s5 + $0x3] ss:$0 sm:$0xff] }
 0x4e7   : > { %v898_v51 = vadd.f32 1e-06, %v890_v30  ;;  %1021 = vrot.lane.b32.xlu1 %v4347_v21, %s3508_s27  ;;  %v897_v58 = vadd.f32 1e-06, %v889_v29 }
 0x4e8   : > { %1051 = vrot.lane.b32.xlu0 %v4340_v43, %s3511_s16 }
 0x4e9   : > { %3371 = vrsqrt.f32 %v898_v51  ;;  %v4355_v53 = vpop.permute.xlu0 %1600 }
 0x4ea   : > { %3373 = vrsqrt.f32 %v897_v58 }
 0x4eb   : > { %1045 = vrot.lane.b32.xlu1 %v4347_v21, %s3511_s16 }
 0x4ec   : > { %970 = vrot.lane.b32.xlu0 %v4340_v43, %s3510_s29 }
 0x4ee   : > { %v1654_v12 = vpop.permute.xlu0 %1653 }
 0x4ef   : > { %1675 = vst.msk [vmem:[#allocation2 + $0x10] sm:$0xff] %vm575_vm1, %v1654_v12  ;;  %964 = vrot.lane.b32.xlu1 %v4347_v21, %s3510_s29 }
 0x4f0   : > { %994 = vrot.lane.b32.xlu0 %v4340_v43, %s3512_s17 }
 0x4f2   : > { %v1790_v34 = vpop.permute.xlu0 %1789 }
 0x4f3   : > { %v3372_v52 = vpop.eup %3371  ;;  %1811 = vst.msk [vmem:[#allocation2 + $0x90] sm:$0xff] %vm575_vm1, %v1790_v34  ;;  %988 = vrot.lane.b32.xlu1 %v4347_v21, %s3512_s17 }
 0x4f4   : > { %v918_v0 = vmul.f32 %v3372_v52, %v3953_v26  ;;  %v3374_v63 = vpop.eup %3373 }
 0x4f5   : > { %v917_v36 = vmul.f32 %v3374_v63, %v3953_v26  ;;  %v1614_v63 = vmul.f32 %v1576_v18, %v4224_v41 }
 0x4f6   : > { %v1650_v4 = vpop.permute.xlu0 %1649  ;;  %v4378_v15 = vmul.f32 %v3846_v16, %v918_v0  ;;  %v3062_v0 = vld [vmem:[%s5019_s4 + $0x10] sm:$0xff] }
 0x4f7   : > { %1673 = vst.msk [vmem:[#allocation2] sm:$0xff] %vm575_vm1, %v1650_v4  ;;  %1025 = vrot.lane.b32.xlu1 %v4375_v62, %s3508_s27  ;;  %v4399_v45 = vmul.f32 %v917_v36, %v3852_v22 }
 0x4f8   : > { %1031 = vrot.lane.b32.xlu0 %v4378_v15, %s3508_s27 }
 0x4fa   : > { %v1607_v61 = vpop.permute.xlu0 %1606  ;;  %v1914_v12 = vld [vmem:[#allocation2 + $0x90] sm:$0xff] }
 0x4fb   : > { %1049 = vrot.lane.b32.xlu1 %v4375_v62, %s3511_s16  ;;  %v1612_v48 = vsel %vm1067_vm4, %v4355_v53, %v1607_v61  ;;  %v1898_v61 = vld [vmem:[#allocation2 + $0x10] sm:$0xff] }
 0x4fc   : > { %1055 = vrot.lane.b32.xlu0 %v4378_v15, %s3511_s16  ;;  %v1616_v58 = vmul.f32 %v3064_v60, %v1612_v48 }
 0x4fe   : > { %v1896_v9 = vld [vmem:[#allocation2] sm:$0xff] }
 0x4ff   : > { %968 = vrot.lane.b32.xlu1 %v4375_v62, %s3510_s29 }
 0x500   : > { %974 = vrot.lane.b32.xlu0 %v4378_v15, %s3510_s29 }
 0x503   : > { %992 = vrot.lane.b32.xlu1 %v4375_v62, %s3512_s17 }
 0x504   : > { %998 = vrot.lane.b32.xlu0 %v4378_v15, %s3512_s17 }
 0x507   : > { %1029 = vrot.lane.b32.xlu1 %v4399_v45, %s3508_s27 }
 0x508   : > { %1817 = vrot.lane.b32.xlu0 %v4406_v25, %s3513_s23 }
 0x50b   : > { %1053 = vrot.lane.b32.xlu1 %v4399_v45, %s3511_s16 }
 0x50d   : > { %v883_v6 = vpop.xlane.xlu1 %882 }
 0x50e   : > { %v891_v32 = vsel %vm751_vm3, %v4180_v31, %v883_v6 }
 0x50f   : > { %v899_v42 = vadd.f32 1e-06, %v891_v32  ;;  %972 = vrot.lane.b32.xlu1 %v4399_v45, %s3510_s29  ;;  %v1618_v32 = vadd.f32 %v1616_v58, %v1614_v63  ;;  %v1577_v58 = vld [vmem:[%s5019_s4 + $0x8] sm:$0xff] }
 0x511   : > { %3375 = vrsqrt.f32 %v899_v42  ;;  %v4416_v17 = vpop.permute.xlu1 %1602 }
 0x512   : > { %v1662_v35 = vpop.permute.xlu0 %1661 }
 0x513   : > { %1679 = vst.msk [vmem:[#allocation2 + $0x30] sm:$0xff] %vm575_vm1, %v1662_v35  ;;  %996 = vrot.lane.b32.xlu1 %v4399_v45, %s3512_s17 }
 0x515   : > { %v1786_v11 = vpop.permute.xlu1 %1785 }
 0x516   : > { %1809 = vst.msk [vmem:[#allocation2 + $0x80] sm:$0xff] %vm575_vm1, %v1786_v11 }
 0x519   : > { %v1656_v28 = vpop.permute.xlu1 %1655 }
 0x51a   : > { %1676 = vst.msk [vmem:[#allocation2 + $0x18] sm:$0xff] %vm575_vm1, %v1656_v28 }
 0x51b   : > { %v3376_v31 = vpop.eup %3375 }
 0x51c   : > { %v919_v1 = vmul.f32 %v3376_v31, %v3953_v26 }
 0x51d   : > { %v1792_v38 = vpop.permute.xlu1 %1791  ;;  %v1912_v54 = vld [vmem:[#allocation2 + $0x80] sm:$0xff] }
 0x51e   : > { %1812 = vst.msk [vmem:[#allocation2 + $0x98] sm:$0xff] %vm575_vm1, %v1792_v38  ;;  %v4426_v39 = vmul.f32 %v3850_v20, %v919_v1 }
 0x520   : > { %1033 = vrot.lane.b32.xlu1 %v4426_v39, %s3508_s27 }
 0x521   : > { %v1652_v55 = vpop.permute.xlu1 %1651  ;;  %v1899_v4 = vld [vmem:[#allocation2 + $0x18] sm:$0xff] }
 0x522   : > { %1674 = vst.msk [vmem:[#allocation2 + $0x8] sm:$0xff] %vm575_vm1, %v1652_v55  ;;  %v1658_v59 = vpop.permute.xlu0 %1657  ;;  %v1929_v35 = vpack.c.bf16 %v1899_v4, %v1898_v61  ;;  %v3063_v4 = vld [vmem:[%s5019_s4 + $0x18] sm:$0xff] }
 0x523   : > { %1677 = vst.msk [vmem:[#allocation2 + $0x20] sm:$0xff] %vm575_vm1, %v1658_v59 }
 0x524   : > { %1057 = vrot.lane.b32.xlu1 %v4426_v39, %s3511_s16  ;;  %v2024_v41 = vsel %vm575_vm1, %v1929_v35, 0 }
 0x525   : > { %v1788_v40 = vpop.permute.xlu1 %1787  ;;  %v1915_v30 = vld [vmem:[#allocation2 + $0x98] sm:$0xff] }
 0x526   : > { %1810 = vst.msk [vmem:[#allocation2 + $0x88] sm:$0xff] %vm575_vm1, %v1788_v40  ;;  %v1794_v26 = vpop.permute.xlu0 %1793  ;;  %v1937_v34 = vpack.c.bf16 %v1915_v30, %v1914_v12 }
 0x527   : > { %1813 = vst.msk [vmem:[#allocation2 + $0xa0] sm:$0xff] %vm575_vm1, %v1794_v26 }
 0x528   : > { %976 = vrot.lane.b32.xlu1 %v4426_v39, %s3510_s29 }
 0x529   : > { %v1897_v44 = vld [vmem:[#allocation2 + $0x8] sm:$0xff]  ;;  %v1609_v52 = vpop.permute.xlu1 %1608 }
 0x52a   : > { %v1798_v23 = vpop.permute.xlu0 %1797  ;;  %v1928_v46 = vpack.c.bf16 %v1897_v44, %v1896_v9  ;;  %v1613_v30 = vsel %vm1067_vm4, %v4416_v17, %v1609_v52  ;;  %v1615_v52 = vmul.f32 %v1577_v58, %v4250_v50 }
 0x52b   : > { %1815 = vst.msk [vmem:[#allocation2 + $0xb0] sm:$0xff] %vm575_vm1, %v1798_v23 }
 0x52c   : > { %1000 = vrot.lane.b32.xlu1 %v4426_v39, %s3512_s17  ;;  %v2021_v53 = vsel %vm575_vm1, %v1928_v46, 0 }
 0x52d   : > { %v1913_v27 = vld [vmem:[#allocation2 + $0x88] sm:$0xff] }
 0x52e   : > { %v1587_v51 = vpop.permute.xlu0 %1586  ;;  %v1936_v29 = vpack.c.bf16 %v1913_v27, %v1912_v54  ;;  %v1900_v54 = vld [vmem:[#allocation2 + $0x20] sm:$0xff]  ;;  %v3065_v27 = vld [vmem:[%s5019_s4 + $0x28] sm:$0xff] }
 0x52f   : > { %v1916_v18 = vld [vmem:[#allocation2 + $0xa0] sm:$0xff] }
 0x530   : > { %1681 = vrot.lane.b32.xlu1 %v4452_v8, %s3513_s23  ;;  %3284 = vmatprep.subr.msk.bf16.mxu1 %vm575_vm1, %v1936_v29 }
 0x531   : > { %3115 = vmatpush3.bf16.xpose.msra.mxu1 %v2021_v53 }
 0x532   : > { %3285 = vmatprep.subr.msk.bf16.mxu1 %vm575_vm1, %v1937_v34  ;;  %v1593_v36 = vpop.permute.xlu0 %1592 }
 0x533   : > { %v1598_v6 = vsel %vm1010_vm5, %v1587_v51, %v1593_v36  ;;  %v1918_v36 = vld [vmem:[#allocation2 + $0xb0] sm:$0xff] }
 0x534   : > { %v1620_v42 = vmul.f32 %v3062_v0, %v1598_v6  ;;  %v1617_v0 = vmul.f32 %v3065_v27, %v1613_v30 }
 0x535   : > { %v1664_v11 = vpop.permute.xlu1 %1663 }
 0x536   : > { %v1622_v28 = vsub.f32 %v1618_v32, %v1620_v42  ;;  %1680 = vst.msk [vmem:[#allocation2 + $0x38] sm:$0xff] %vm575_vm1, %v1664_v11  ;;  %v1020_v31 = vpop.permute.xlu0 %1019  ;;  %v1619_v11 = vadd.f32 %v1617_v0, %v1615_v52  ;;  %v3475_v0 = vld [vmem:[%s5018_s3] sm:$0xff] }
 0x538   : > { %v1732_v1 = vmul.f32 %v4452_v8, %v1622_v28  ;;  %v1868_v38 = vmul.f32 %v4406_v25, %v1622_v28 }
 0x539   : > { %3117 = vmatpush3.bf16.xpose.msra.mxu1 %v2024_v41 }
 0x53a   : > { %1734 = vst.msk [vmem:[#allocation2 + $0x40] sm:$0xff] %vm575_vm1, %v1732_v1  ;;  %1870 = vst.msk [vmem:[#allocation2 + $0xc0] sm:$0xff] %vm575_vm1, %v1868_v38  ;;  %v1044_v55 = vpop.permute.xlu0 %1043  ;;  %v1902_v1 = vld [vmem:[#allocation2 + $0x30] sm:$0xff] }
 0x53b   : > { %v1068_v27 = vsel %vm1067_vm4, %v1020_v31, %v1044_v55  ;;  %v1076_v31 = vmul.f32 %v3475_v0, %v4295_v33  ;;  %v3476_v55 = vld [vmem:[%s5018_s3 + $0x8] sm:$0xff]  ;;  %v1906_v33 = vld [vmem:[#allocation2 + $0x50] sm:$0xff] }
 0x53d   : > { %v1903_v61 = vld [vmem:[#allocation2 + $0x38] sm:$0xff] }
 0x53e   : > { %v963_v59 = vpop.permute.xlu0 %962  ;;  %v1931_v38 = vpack.c.bf16 %v1903_v61, %v1902_v1 }
 0x542   : > { %v987_v40 = vpop.permute.xlu0 %986 }
 0x545   : > { %v1660_v26 = vpop.permute.xlu1 %1659 }
 0x546   : > { %1678 = vst.msk [vmem:[#allocation2 + $0x28] sm:$0xff] %vm575_vm1, %v1660_v26  ;;  %v4471_v44 = vpop.permute.xlu0 %1023 }
 0x549   : > { %v1796_v23 = vpop.permute.xlu1 %1795 }
 0x54a   : > { %1814 = vst.msk [vmem:[#allocation2 + $0xa8] sm:$0xff] %vm575_vm1, %v1796_v23  ;;  %v4474_v9 = vpop.permute.xlu0 %1047 }
 0x54d   : > { %v1800_v60 = vpop.permute.xlu1 %1799  ;;  %v1901_v46 = vld [vmem:[#allocation2 + $0x28] sm:$0xff] }
 0x54e   : > { %1816 = vst.msk [vmem:[#allocation2 + $0xb8] sm:$0xff] %vm575_vm1, %v1800_v60  ;;  %v4477_v48 = vpop.permute.xlu0 %966  ;;  %v1930_v51 = vpack.c.bf16 %v1901_v46, %v1900_v54  ;;  %v2030_v46 = vsel %vm575_vm1, %v1931_v38, 0 }
 0x550   : > { %v2027_v17 = vsel %vm575_vm1, %v1930_v51, 0 }
 0x551   : > { %v1589_v29 = vpop.permute.xlu1 %1588  ;;  %v1917_v12 = vld [vmem:[#allocation2 + $0xa8] sm:$0xff] }
 0x552   : > { %v4487_v53 = vpop.permute.xlu0 %990  ;;  %v1938_v34 = vpack.c.bf16 %v1917_v12, %v1916_v18  ;;  %v1011_v18 = vsel %vm1010_vm5, %v963_v59, %v987_v40  ;;  %v1923_v12 = vld [vmem:[#allocation2 + $0xd8] sm:$0xff]  ;;  %v1904_v40 = vld [vmem:[#allocation2 + $0x40] sm:$0xff] }
 0x554   : > { %3286 = vmatprep.subr.msk.bf16.mxu1 %vm575_vm1, %v1938_v34  ;;  %v1920_v34 = vld [vmem:[#allocation2 + $0xc0] sm:$0xff] }
 0x555   : > { %v1595_v63 = vpop.permute.xlu1 %1594  ;;  %3119 = vmatpush3.bf16.xpose.msra.mxu1 %v2027_v17  ;;  %v1919_v6 = vld [vmem:[#allocation2 + $0xb8] sm:$0xff] }
 0x556   : > { %v1599_v32 = vsel %vm1010_vm5, %v1589_v29, %v1595_v63  ;;  %v4496_v42 = vpop.permute.xlu0 %1027  ;;  %v1939_v35 = vpack.c.bf16 %v1919_v6, %v1918_v36 }
 0x557   : > { %v1621_v28 = vmul.f32 %v3063_v4, %v1599_v32  ;;  %v1077_v4 = vmul.f32 %v3476_v55, %v4347_v21  ;;  %v1907_v32 = vld [vmem:[#allocation2 + $0x58] sm:$0xff] }
 0x558   : > { %3287 = vmatprep.subr.msk.bf16.mxu1 %vm575_vm1, %v1939_v35 }
 0x559   : > { %v1623_v41 = vsub.f32 %v1619_v11, %v1621_v28  ;;  %v1022_v26 = vpop.permute.xlu1 %1021 }
 0x55a   : > { %v4499_v23 = vpop.permute.xlu0 %1051 }
 0x55b   : > { %v1733_v50 = vmul.f32 %v4452_v8, %v1623_v41  ;;  %v1869_v60 = vmul.f32 %v4406_v25, %v1623_v41  ;;  %v1922_v8 = vld [vmem:[#allocation2 + $0xd0] sm:$0xff]  ;;  %v1084_v25 = vmul.f32 %v4088_v49, %v1068_v27  ;;  %v1100_v49 = vmul.f32 %v4141_v47, %v1011_v18  ;;  %v1909_v18 = vld [vmem:[#allocation2 + $0x68] sm:$0xff] }
 0x55c   : > { %v1941_v36 = vpack.c.bf16 %v1923_v12, %v1922_v8  ;;  %v1933_v41 = vpack.c.bf16 %v1907_v32, %v1906_v33 }
 0x55d   : > { %1735 = vst.msk [vmem:[#allocation2 + $0x48] sm:$0xff] %vm575_vm1, %v1733_v50  ;;  %1871 = vst.msk [vmem:[#allocation2 + $0xc8] sm:$0xff] %vm575_vm1, %v1869_v60  ;;  %v1046_v54 = vpop.permute.xlu1 %1045  ;;  %3121 = vmatpush3.bf16.xpose.msra.mxu1 %v2030_v46  ;;  %v1092_v35 = vadd.f32 %v1084_v25, %v1076_v31  ;;  %v1924_v50 = vld [vmem:[#allocation2 + $0xe0] sm:$0xff]  ;;  %v1925_v60 = vld [vmem:[#allocation2 + $0xe8] sm:$0xff] }
 0x55e   : > { %v1069_v30 = vsel %vm1067_vm4, %v1022_v26, %v1046_v54  ;;  %v4508_v51 = vpop.permute.xlu0 %970  ;;  %v1942_v27 = vpack.c.bf16 %v1925_v60, %v1924_v50 }
 0x55f   : > { %v1085_v58 = vmul.f32 %v4112_v24, %v1069_v30  ;;  %v1108_v47 = vsub.f32 %v1092_v35, %v1100_v49  ;;  %v1013_v35 = vsel %vm1010_vm5, %v4477_v48, %v4487_v53  ;;  %v3478_v53 = vld [vmem:[%s5018_s3 + $0x10] sm:$0xff] }
 0x561   : > { %v965_v29 = vpop.permute.xlu1 %964  ;;  %v1093_v11 = vadd.f32 %v1085_v58, %v1077_v4  ;;  %v1926_v58 = vld [vmem:[#allocation2 + $0xf0] sm:$0xff] }
 0x562   : > { %v4522_v6 = vpop.permute.xlu0 %994 }
 0x564   : > { %v1921_v59 = vld [vmem:[#allocation2 + $0xc8] sm:$0xff] }
 0x565   : > { %v1905_v17 = vld [vmem:[#allocation2 + $0x48] sm:$0xff]  ;;  %v989_v52 = vpop.permute.xlu1 %988  ;;  %v1940_v24 = vpack.c.bf16 %v1921_v59, %v1920_v34  ;;  %v1927_v34 = vld [vmem:[#allocation2 + $0xf8] sm:$0xff]  ;;  %v1910_v59 = vld [vmem:[#allocation2 + $0x70] sm:$0xff] }
 0x566   : > { %v1932_v63 = vpack.c.bf16 %v1905_v17, %v1904_v40  ;;  %v1012_v61 = vsel %vm1010_vm5, %v965_v29, %v989_v52  ;;  %v1908_v29 = vld [vmem:[#allocation2 + $0x60] sm:$0xff]  ;;  %v1943_v55 = vpack.c.bf16 %v1927_v34, %v1926_v58  ;;  %v1911_v40 = vld [vmem:[#allocation2 + $0x78] sm:$0xff] }
 0x567   : > { %v1101_v28 = vmul.f32 %v4134_v13, %v1012_v61  ;;  %3288 = vmatprep.subr.msk.bf16.mxu1 %vm575_vm1, %v1940_v24  ;;  %v2036_v13 = vsel %vm575_vm1, %v1933_v41, 0  ;;  %v1934_v12 = vpack.c.bf16 %v1909_v18, %v1908_v29  ;;  %v1935_v52 = vpack.c.bf16 %v1911_v40, %v1910_v59  ;;  %v5064_v41 = vld [vmem:[#allocation9_spill] sm:$0xff]  ;;  %v5066_v34 = vld [vmem:[#allocation12_spill] sm:$0xff] }
 0x568   : > { %v2033_v21 = vsel %vm575_vm1, %v1932_v63, 0  ;;  %v1070_v63 = vsel %vm1067_vm4, %v4471_v44, %v4474_v9  ;;  %v5062_v9 = vld [vmem:[#allocation8_spill] sm:$0xff]  ;;  %v1102_v50 = vmul.f32 %v5064_v41, %v1013_v35  ;;  %v1072_v29 = vsel %vm1067_vm4, %v4496_v42, %v4499_v23  ;;  %v5067_v42 = vld [vmem:[#allocation17_spill] sm:$0xff]  ;;  %v5072_v41 = vld [vmem:[#allocation15_spill] sm:$0xff] }
 0x569   : > { %3123 = vmatpush3.bf16.xpose.msra.mxu1 %v2033_v21  ;;  %v1109_v1 = vsub.f32 %v1093_v11, %v1101_v28  ;;  %v1026_v38 = vpop.permute.xlu1 %1025  ;;  %v2039_v31 = vsel %vm575_vm1, %v1934_v12, 0  ;;  %v2042_v44 = vsel %vm575_vm1, %v1935_v52, 0  ;;  %v1086_v28 = vmul.f32 %v5062_v9, %v1070_v63  ;;  %v3477_v21 = vld [vmem:[%s5018_s3 + $0x18] sm:$0xff] }
 0x56a   : > { %3289 = vmatprep.subr.msk.bf16.mxu1 %vm575_vm1, %v1941_v36  ;;  %v4529_v26 = vpop.permute.xlu0 %1031 }
 0x56b   : > { %v4531_v46 = vpack.c.bf16 %v1109_v1, %v1108_v47  ;;  %v1079_v47 = vmul.f32 %v3477_v21, %v4375_v62 }
 0x56d   : > { %v1050_v54 = vpop.permute.xlu1 %1049  ;;  %3130 = vmatprep.mubr.msk.bf16.mxu1 %vm575_vm1, %v4531_v46 }
 0x56e   : > { %v4536_v30 = vpop.permute.xlu0 %1055  ;;  %v1071_v17 = vsel %vm1067_vm4, %v1026_v38, %v1050_v54  ;;  %v1078_v38 = vmul.f32 %v3478_v53, %v4317_v14  ;;  %v1015_v14 = vsel %vm1010_vm5, %v4508_v51, %v4522_v6  ;;  %v3480_v51 = vld [vmem:[%s5018_s3 + $0x20] sm:$0xff] }
 0x56f   : > { %v1087_v32 = vmul.f32 %v4095_v2, %v1071_v17  ;;  %v5063_v2 = vld [vmem:[#allocation7_spill] sm:$0xff]  ;;  %v1080_v6 = vmul.f32 %v3480_v51, %v4340_v43  ;;  %v5068_v17 = vld [vmem:[#allocation13_spill] sm:$0xff]  ;;  %v1074_v43 = vsel %vm1067_vm4, %v4529_v26, %v4536_v30 }
 0x570   : > { %v1094_v62 = vadd.f32 %v1086_v28, %v1078_v38  ;;  %v5070_v28 = vld [vmem:[#allocation14_spill] sm:$0xff]  ;;  %v3482_v26 = vld [vmem:[%s5018_s3 + $0x38] sm:$0xff] }
 0x571   : > { %3125 = vmatpush3.bf16.xpose.msra.mxu1 %v2036_v13  ;;  %v969_v8 = vpop.permute.xlu1 %968  ;;  %v1095_v60 = vadd.f32 %v1087_v32, %v1079_v47  ;;  %v3481_v47 = vld [vmem:[%s5018_s3 + $0x30] sm:$0xff]  ;;  %v1083_v30 = vmul.f32 %v3482_v26, %v4426_v39 }
 0x572   : > { %3290 = vmatprep.subr.msk.bf16.mxu1 %vm575_vm1, %v1942_v27  ;;  %v4539_v25 = vpop.permute.xlu0 %974  ;;  %v1110_v18 = vsub.f32 %v1094_v62, %v1102_v50 }
 0x575   : > { %v993_v0 = vpop.permute.xlu1 %992 }
 0x576   : > { %v4542_v4 = vpop.permute.xlu0 %998  ;;  %v1014_v36 = vsel %vm1010_vm5, %v969_v8, %v993_v0  ;;  %v5065_v8 = vld [vmem:[#allocation16_spill] sm:$0xff]  ;;  %v1088_v0 = vmul.f32 %v5066_v34, %v1072_v29 }
 0x577   : > { %v1103_v1 = vmul.f32 %v5063_v2, %v1014_v36  ;;  %v1082_v2 = vmul.f32 %v3481_v47, %v4378_v15 }
 0x578   : > { %v1096_v63 = vadd.f32 %v1088_v0, %v1080_v6 }
 0x579   : > { %3127 = vmatpush3.bf16.xpose.msra.mxu1 %v2039_v31  ;;  %v1030_v49 = vpop.permute.xlu1 %1029  ;;  %v1111_v27 = vsub.f32 %v1095_v60, %v1103_v1  ;;  %v5071_v1 = vld [vmem:[#allocation11_spill] sm:$0xff] }
 0x57a   : > { %3291 = vmatprep.subr.msk.bf16.mxu1 %vm575_vm1, %v1943_v55  ;;  %v4546_v24 = vpop.permute.xlu0 %1817  ;;  %v3479_v55 = vld [vmem:[%s5018_s3 + $0x28] sm:$0xff] }
 0x57b   : > { %v1821_v61 = vmul.f32 %v4546_v24, %v3838_v10  ;;  %v1820_v33 = vmul.f32 %v4546_v24, %v3830_v5  ;;  %v1822_v48 = vmul.f32 %v3828_v3, %v4546_v24  ;;  %v1993_v31 = vpack.c.bf16 %v1111_v27, %v1110_v18 }
 0x57c   : > { %v1081_v59 = vmul.f32 %v3479_v55, %v4399_v45  ;;  %v1824_v29 = vmul.f32 %v4546_v24, %v3848_v19 }
 0x57d   : > { %v1054_v11 = vpop.permute.xlu1 %1053  ;;  %1838 = vrot.lane.b32.xlu1 %v1821_v61, %s3513_s23  ;;  %1836 = vrot.lane.b32.xlu0 %v1820_v33, %s3513_s23 }
 0x57e   : > { %v1073_v54 = vsel %vm1067_vm4, %v1030_v49, %v1054_v11  ;;  %v1104_v49 = vmul.f32 %v5068_v17, %v1015_v14  ;;  %v1017_v11 = vsel %vm1010_vm5, %v4539_v25, %v4542_v4 }
 0x57f   : > { %v1089_v12 = vmul.f32 %v5065_v8, %v1073_v54  ;;  %v1825_v8 = vmul.f32 %v4546_v24, %v3852_v22 }
 0x580   : > { %v1112_v36 = vsub.f32 %v1096_v63, %v1104_v49 }
 0x581   : > { %3129 = vmatpush3.bf16.xpose.msra.mxu1 %v2042_v44  ;;  %v973_v13 = vpop.permute.xlu1 %972  ;;  %1840 = vrot.lane.b32.xlu0 %v1822_v48, %s3513_s23  ;;  %v1097_v52 = vadd.f32 %v1089_v12, %v1081_v59  ;;  %v5069_v44 = vld [vmem:[#allocation10_spill] sm:$0xff]  ;;  %v1106_v48 = vmul.f32 %v5071_v1, %v1017_v11 }
 0x582   : > { %v1090_v9 = vmul.f32 %v5069_v44, %v1074_v43 }
 0x584   : > { %v1098_v4 = vadd.f32 %v1090_v9, %v1082_v2 }
 0x585   : > { %v997_v58 = vpop.permute.xlu1 %996 }
 0x586   : > { %v1016_v40 = vsel %vm1010_vm5, %v973_v13, %v997_v58  ;;  %v1114_v60 = vsub.f32 %v1098_v4, %v1106_v48  ;;  %v1996_v4 = vld [vmem:[%s5021_s6] sm:$0x3] }
 0x587   : > { %v1105_v23 = vmul.f32 %v5067_v42, %v1016_v40 }
 0x588   : > { %3131 = vmatmul.mubr.msk.bf16.vlgmr.msra.gmra.mrb[8].mxu1 %vm575_vm1, %v4531_v46 }
 0x589   : > { %3132 = vmatprep.mubr.msk.bf16.mxu1 %vm575_vm1, %v1993_v31  ;;  %v1113_v45 = vsub.f32 %v1097_v52, %v1105_v23 }
 0x58b   : > { %v1994_v61 = vpack.c.bf16 %v1113_v45, %v1112_v36 }
 0x590   : > { %3133 = vmatmul.mubr.msk.bf16.gmra.mrb[12].mxu1 %vm575_vm1, %v1993_v31 }
 0x591   : > { %3134 = vmatprep.mubr.msk.bf16.mxu1 %vm575_vm1, %v1994_v61 }
 0x592   : > { %v1034_v46 = vpop.permute.xlu1 %1033 }
 0x596   : > { %v1058_v33 = vpop.permute.xlu1 %1057 }
 0x597   : > { %v1075_v32 = vsel %vm1067_vm4, %v1034_v46, %v1058_v33 }
 0x598   : > { %3135 = vmatmul.mubr.msk.bf16.gmra.mrb[16].mxu1 %vm575_vm1, %v1994_v61  ;;  %v1091_v21 = vmul.f32 %v5070_v28, %v1075_v32 }
 0x59a   : > { %v977_v35 = vpop.permute.xlu1 %976  ;;  %v1099_v38 = vadd.f32 %v1091_v21, %v1083_v30 }
 0x59e   : > { %v1001_v53 = vpop.permute.xlu1 %1000 }
 0x59f   : > { %v1018_v25 = vsel %vm1010_vm5, %v977_v35, %v1001_v53 }
 0x5a0   : > { %v1107_v50 = vmul.f32 %v5072_v41, %v1018_v25 }
 0x5a2   : > { %v1115_v54 = vsub.f32 %v1099_v38, %v1107_v50  ;;  %v1682_v13 = vpop.permute.xlu1 %1681  ;;  %v5073_v38 = vld [vmem:[#allocation4_spill] sm:$0xff]  ;;  %v5074_v50 = vld [vmem:[#allocation5_spill] sm:$0xff] }
 0x5a3   : > { %v1684_v15 = vmul.f32 %v1682_v13, %v3830_v5  ;;  %v1686_v62 = vmul.f32 %v3828_v3, %v1682_v13  ;;  %v1685_v39 = vmul.f32 %v1682_v13, %v3838_v10  ;;  %v1823_v3 = vmul.f32 %v3834_v7, %v4546_v24 }
 0x5a4   : > { %v1995_v27 = vpack.c.bf16 %v1115_v54, %v1114_v60  ;;  %v1688_v5 = vmul.f32 %v1682_v13, %v3848_v19  ;;  %v1687_v18 = vmul.f32 %v3834_v7, %v1682_v13  ;;  %v1826_v10 = vmul.f32 %v3846_v16, %v4546_v24 }
 0x5a5   : > { %1700 = vrot.lane.b32.xlu1 %v1684_v15, %s3513_s23  ;;  %1704 = vrot.lane.b32.xlu0 %v1686_v62, %s3513_s23  ;;  %v1690_v12 = vmul.f32 %v3846_v16, %v1682_v13  ;;  %v1689_v19 = vmul.f32 %v1682_v13, %v3852_v22  ;;  %v1827_v7 = vmul.f32 %v3850_v20, %v4546_v24  ;;  %v2004_v41 = vsub.s32 1, %v5073_v38 }
 0x5a6   : > { %3136 = vmatprep.mubr.msk.bf16.mxu1 %vm575_vm1, %v1995_v27  ;;  %v1691_v14 = vmul.f32 %v3850_v20, %v1682_v13  ;;  %v2001_v60 = vrot.slane %v1996_v4, %v5074_v50 }
 0x5a7   : > { %3137 = vmatmul.mubr.msk.bf16.gmra.mrb[20].mxu1 %vm575_vm1, %v1995_v27  ;;  %v2005_v54 = vrot.slane %v1996_v4, %v2004_v41 }
 0x5a9   : > { %1702 = vrot.lane.b32.xlu1 %v1685_v39, %s3513_s23  ;;  %1844 = vrot.lane.b32.xlu0 %v1824_v29, %s3513_s23 }
 0x5ad   : > { %1842 = vrot.lane.b32.xlu1 %v1823_v3, %s3513_s23  ;;  %1708 = vrot.lane.b32.xlu0 %v1688_v5, %s3513_s23 }
 0x5b1   : > { %1706 = vrot.lane.b32.xlu1 %v1687_v18, %s3513_s23  ;;  %1848 = vrot.lane.b32.xlu0 %v1826_v10, %s3513_s23 }
 0x5b5   : > { %1846 = vrot.lane.b32.xlu1 %v1825_v8, %s3513_s23  ;;  %1712 = vrot.lane.b32.xlu0 %v1690_v12, %s3513_s23 }
 0x5b9   : > { %1710 = vrot.lane.b32.xlu1 %v1689_v19, %s3513_s23 }
 0x5bd   : > { %1850 = vrot.lane.b32.xlu1 %v1827_v7, %s3513_s23 }
 0x5c1   : > { %1714 = vrot.lane.b32.xlu1 %v1691_v14, %s3513_s23 }
 0x5ef   : > { %v1839_v58 = vpop.permute.xlu1 %1838  ;;  %v1837_v34 = vpop.permute.xlu0 %1836 }
 0x5f0   : > { %1861 = vst.msk [vmem:[#allocation3 + $0x88] sm:$0xff] %vm575_vm1, %v1839_v58  ;;  %1860 = vst.msk [vmem:[#allocation3 + $0x80] sm:$0xff] %vm575_vm1, %v1837_v34 }
 0x5f3   : > { %v1841_v16 = vpop.permute.xlu0 %1840 }
 0x5f4   : > { %1862 = vst.msk [vmem:[#allocation3 + $0x90] sm:$0xff] %vm575_vm1, %v1841_v16 }
 0x5f7   : > { %v1960_v22 = vld [vmem:[#allocation3 + $0x80] sm:$0xff]  ;;  %v1961_v0 = vld [vmem:[#allocation3 + $0x88] sm:$0xff] }
 0x5f8   : > { %v1984_v31 = vpack.c.bf16 %v1961_v0, %v1960_v22 }
 0x5fa   : > { %3138 = vmatprep.subr.bf16.mxu0 %v1984_v31 }
 0x5fb   : > { %v1962_v45 = vld [vmem:[#allocation3 + $0x90] sm:$0xff] }
 0x617   : > { %v1701_v24 = vpop.permute.xlu1 %1700  ;;  %v1705_v55 = vpop.permute.xlu0 %1704 }
 0x618   : > { %1724 = vst.msk [vmem:[#allocation3] sm:$0xff] %vm575_vm1, %v1701_v24  ;;  %1726 = vst.msk [vmem:[#allocation3 + $0x10] sm:$0xff] %vm575_vm1, %v1705_v55 }
 0x61b   : > { %v1703_v20 = vpop.permute.xlu1 %1702  ;;  %v1845_v59 = vpop.permute.xlu0 %1844 }
 0x61c   : > { %1725 = vst.msk [vmem:[#allocation3 + $0x8] sm:$0xff] %vm575_vm1, %v1703_v20  ;;  %1864 = vst.msk [vmem:[#allocation3 + $0xa0] sm:$0xff] %vm575_vm1, %v1845_v59 }
 0x61f   : > { %v1843_v40 = vpop.permute.xlu1 %1842  ;;  %v1709_v42 = vpop.permute.xlu0 %1708  ;;  %v1944_v6 = vld [vmem:[#allocation3] sm:$0xff]  ;;  %v1946_v33 = vld [vmem:[#allocation3 + $0x10] sm:$0xff] }
 0x620   : > { %1863 = vst.msk [vmem:[#allocation3 + $0x98] sm:$0xff] %vm575_vm1, %v1843_v40  ;;  %1728 = vst.msk [vmem:[#allocation3 + $0x20] sm:$0xff] %vm575_vm1, %v1709_v42 }
 0x623   : > { %v1707_v23 = vpop.permute.xlu1 %1706  ;;  %v1849_v51 = vpop.permute.xlu0 %1848  ;;  %v1945_v17 = vld [vmem:[#allocation3 + $0x8] sm:$0xff]  ;;  %v1964_v11 = vld [vmem:[#allocation3 + $0xa0] sm:$0xff] }
 0x624   : > { %1727 = vst.msk [vmem:[#allocation3 + $0x18] sm:$0xff] %vm575_vm1, %v1707_v23  ;;  %1866 = vst.msk [vmem:[#allocation3 + $0xb0] sm:$0xff] %vm575_vm1, %v1849_v51  ;;  %v1976_v49 = vpack.c.bf16 %v1945_v17, %v1944_v6 }
 0x626   : > { %3139 = vmatpush3.bf16.msra.mxu0 %v1976_v49 }
 0x627   : > { %v1847_v52 = vpop.permute.xlu1 %1846  ;;  %v1713_v63 = vpop.permute.xlu0 %1712  ;;  %v1963_v36 = vld [vmem:[#allocation3 + $0x98] sm:$0xff]  ;;  %v1948_v21 = vld [vmem:[#allocation3 + $0x20] sm:$0xff] }
 0x628   : > { %1865 = vst.msk [vmem:[#allocation3 + $0xa8] sm:$0xff] %vm575_vm1, %v1847_v52  ;;  %1730 = vst.msk [vmem:[#allocation3 + $0x30] sm:$0xff] %vm575_vm1, %v1713_v63  ;;  %v1985_v61 = vpack.c.bf16 %v1963_v36, %v1962_v45  ;;  %v1873_v52 = vmul.f32 %v3812_v57, %v3786_v37  ;;  %v5075_v63 = vld [vmem:[#allocation6_spill] sm:$0xff] }
 0x629   : > { %v1872_v45 = vmul.f32 %v3812_v57, %v5075_v63  ;;  %v1736_v36 = vmul.f32 %v3810_v56, %v5075_v63 }
 0x62a   : > { %3140 = vmatprep.subr.bf16.mxu0 %v1985_v61 }
 0x62b   : > { %v1711_v46 = vpop.permute.xlu1 %1710  ;;  %v1947_v43 = vld [vmem:[#allocation3 + $0x18] sm:$0xff]  ;;  %v1966_v1 = vld [vmem:[#allocation3 + $0xb0] sm:$0xff] }
 0x62c   : > { %1729 = vst.msk [vmem:[#allocation3 + $0x28] sm:$0xff] %vm575_vm1, %v1711_v46  ;;  %v1977_v32 = vpack.c.bf16 %v1947_v43, %v1946_v33 }
 0x62e   : > { %3141 = vmatpush3.bf16.msra.mxu0 %v1977_v32 }
 0x62f   : > { %v1851_v35 = vpop.permute.xlu1 %1850  ;;  %v1965_v44 = vld [vmem:[#allocation3 + $0xa8] sm:$0xff]  ;;  %v1950_v30 = vld [vmem:[#allocation3 + $0x30] sm:$0xff] }
 0x630   : > { %1867 = vst.msk [vmem:[#allocation3 + $0xb8] sm:$0xff] %vm575_vm1, %v1851_v35  ;;  %v1986_v9 = vpack.c.bf16 %v1965_v44, %v1964_v11 }
 0x632   : > { %3142 = vmatprep.subr.bf16.mxu0 %v1986_v9 }
 0x633   : > { %v1715_v28 = vpop.permute.xlu1 %1714  ;;  %v1949_v47 = vld [vmem:[#allocation3 + $0x28] sm:$0xff] }
 0x634   : > { %1731 = vst.msk [vmem:[#allocation3 + $0x38] sm:$0xff] %vm575_vm1, %v1715_v28  ;;  %v1978_v2 = vpack.c.bf16 %v1949_v47, %v1948_v21 }
 0x636   : > { %3143 = vmatpush3.bf16.msra.mxu0 %v1978_v2 }
 0x637   : > { %v1967_v48 = vld [vmem:[#allocation3 + $0xb8] sm:$0xff] }
 0x638   : > { %v1987_v26 = vpack.c.bf16 %v1967_v48, %v1966_v1 }
 0x63a   : > { %3144 = vmatprep.subr.bf16.mxu0 %v1987_v26 }
 0x63b   : > { %v1951_v53 = vld [vmem:[#allocation3 + $0x38] sm:$0xff] }
 0x63c   : > { %v1979_v25 = vpack.c.bf16 %v1951_v53, %v1950_v30 }
 0x63e   : > { %3145 = vmatpush3.bf16.msra.mxu0 %v1979_v25 }
 0x65b   : > { %v2102_v13 = vpop.f32.mrb[8].mxu1 }
 0x65c   : > { %v2103_v15 = vadd.f32 %v2102_v13, %v2001_v60  ;;  %v2104_v62 = vpop.f32.mrb[9].mxu1 }
 0x65d   : > { %v2105_v27 = vadd.f32 %v2104_v62, %v2005_v54  ;;  %v2106_v39 = vpop.f32.mrb[10].mxu1 }
 0x65e   : > { %v2108_v29 = vpop.f32.mrb[11].mxu1  ;;  %2141 = vmax.xlane.f32.xlu0 %v2103_v15  ;;  %v2107_v18 = vadd.f32 %v2106_v39, %v2001_v60 }
 0x65f   : > { %v2109_v3 = vadd.f32 %v2108_v29, %v2005_v54 }
 0x661   : > { %2215 = vmax.xlane.f32.xlu1 %v2109_v3 }
 0x662   : > { %2213 = vmax.xlane.f32.xlu0 %v2105_v27 }
 0x663   : > { %v2112_v5 = vpop.f32.mrb[12].mxu1 }
 0x664   : > { %v2114_v10 = vpop.f32.mrb[13].mxu1  ;;  %v4683_v58 = vadd.f32 %v2112_v5, %v2001_v60 }
 0x665   : > { %v4677_v8 = vadd.f32 %v2114_v10, %v2005_v54  ;;  %v2116_v12 = vpop.f32.mrb[14].mxu1 }
 0x666   : > { %v4679_v19 = vadd.f32 %v2116_v12, %v2001_v60  ;;  %v2118_v7 = vpop.f32.mrb[15].mxu1  ;;  %2143 = vmax.xlane.f32.xlu0 %v2107_v18 }
 0x667   : > { %v4681_v14 = vadd.f32 %v2118_v7, %v2005_v54 }
 0x668   : > { %2147 = vmax.xlane.f32.xlu1 %v4679_v19 }
 0x66a   : > { %2145 = vmax.xlane.f32.xlu0 %v4683_v58 }
 0x66b   : > { %v2122_v34 = vpop.f32.mrb[16].mxu1 }
 0x66c   : > { %v2124_v16 = vpop.f32.mrb[17].mxu1  ;;  %2219 = vmax.xlane.f32.xlu1 %v4681_v14  ;;  %v4693_v55 = vadd.f32 %v2122_v34, %v2001_v60 }
 0x66d   : > { %v4688_v22 = vadd.f32 %v2124_v16, %v2005_v54  ;;  %v2126_v0 = vpop.f32.mrb[18].mxu1 }
 0x66e   : > { %v2128_v31 = vpop.f32.mrb[19].mxu1  ;;  %2217 = vmax.xlane.f32.xlu0 %v4677_v8  ;;  %v4696_v20 = vadd.f32 %v2126_v0, %v2001_v60 }
 0x66f   : > { %v4691_v24 = vadd.f32 %v2128_v31, %v2005_v54 }
 0x670   : > { %2221 = vmax.xlane.f32.xlu1 %v4688_v22 }
 0x672   : > { %2149 = vmax.xlane.f32.xlu0 %v4693_v55 }
 0x674   : > { %2151 = vmax.xlane.f32.xlu1 %v4696_v20 }
 0x676   : > { %2223 = vmax.xlane.f32.xlu0 %v4691_v24 }
 0x67a   : > { %v2132_v59 = vpop.f32.mrb[20].mxu1 }
 0x67b   : > { %v4701_v40 = vadd.f32 %v2132_v59, %v2001_v60  ;;  %v2134_v42 = vpop.f32.mrb[21].mxu1 }
 0x67c   : > { %v4703_v23 = vadd.f32 %v2134_v42, %v2005_v54  ;;  %v2136_v51 = vpop.f32.mrb[22].mxu1 }
 0x67d   : > { %v4705_v6 = vadd.f32 %v2136_v51, %v2001_v60  ;;  %v2138_v17 = vpop.f32.mrb[23].mxu1  ;;  %2153 = vmax.xlane.f32.xlu0 %v4701_v40 }
 0x67e   : > { %v4708_v49 = vadd.f32 %v2138_v17, %v2005_v54 }
 0x67f   : > { %2155 = vmax.xlane.f32.xlu1 %v4705_v6 }
 0x681   : > { %2225 = vmax.xlane.f32.xlu0 %v4703_v23 }
 0x683   : > { %2227 = vmax.xlane.f32.xlu1 %v4708_v49 }
 0x694   : > { %1878 = vrot.lane.b32.xlu1 %v1873_v52, %s3505_s19 }
 0x697   : > { %1876 = vrot.lane.b32.xlu0 %v1872_v45, %s3505_s19 }
 0x69b   : > { %1740 = vrot.lane.b32.xlu0 %v1736_v36, %s3505_s19 }
 0x6eb   : > { %v2142_v61 = vpop.xlane.xlu0 %2141 }
 0x6ec   : > { %v2157_v46 = vsub.f32 %v2103_v15, %v2142_v61 }
 0x6ee   : > { %v2165_v33 = vmul.f32 1.442695, %v2157_v46  ;;  %v2216_v35 = vpop.xlane.xlu1 %2215 }
 0x6ef   : > { %v2214_v43 = vpop.xlane.xlu0 %2213  ;;  %v2230_v9 = vsub.f32 %v2109_v3, %v2216_v35 }
 0x6f0   : > { %3377 = vpow2.f32 %v2165_v33  ;;  %v2229_v32 = vsub.f32 %v2105_v27, %v2214_v43 }
 0x6f1   : > { %v2239_v2 = vmul.f32 1.442695, %v2230_v9 }
 0x6f2   : > { %v2237_v11 = vmul.f32 1.442695, %v2229_v32 }
 0x6f3   : > { %v2144_v44 = vpop.xlane.xlu0 %2143 }
 0x6f4   : > { %3379 = vpow2.f32 %v2237_v11  ;;  %v2158_v28 = vsub.f32 %v2107_v18, %v2144_v44 }
 0x6f5   : > { %v2148_v57 = vpop.xlane.xlu1 %2147 }
 0x6f6   : > { %v2167_v21 = vmul.f32 1.442695, %v2158_v28  ;;  %v2160_v38 = vsub.f32 %v4679_v19, %v2148_v57 }
 0x6f7   : > { %v2146_v47 = vpop.xlane.xlu0 %2145 }
 0x6f8   : > { %3381 = vpow2.f32 %v2167_v21  ;;  %v2159_v30 = vsub.f32 %v4683_v58, %v2146_v47  ;;  %v2171_v15 = vmul.f32 1.442695, %v2160_v38 }
 0x6f9   : > { %v4724_v48 = vpop.xlane.xlu1 %2219  ;;  %3383 = vpow2.f32 %v2239_v2 }
 0x6fa   : > { %v4722_v1 = vpop.eup %3377  ;;  %v2169_v41 = vmul.f32 1.442695, %v2159_v30 }
 0x6fb   : > { %2181 = vadd.xlane.f32.xlu0 %v4722_v1  ;;  %v2218_v26 = vpop.xlane.xlu0 %2217 }
 0x6fc   : > { %v2231_v53 = vsub.f32 %v4677_v8, %v2218_v26  ;;  %v1971_v26 = vld [vmem:[#allocation3 + $0xd8] sm:$0xff] }
 0x6fd   : > { %v2222_v60 = vpop.xlane.xlu1 %2221 }
 0x6fe   : > { %v4729_v25 = vpop.eup %3379  ;;  %v2241_v4 = vmul.f32 1.442695, %v2231_v53  ;;  %v2233_v62 = vsub.f32 %v4688_v22, %v2222_v60 }
 0x6ff   : > { %2253 = vadd.xlane.f32.xlu0 %v4729_v25  ;;  %v2150_v54 = vpop.xlane.xlu0 %2149 }
 0x700   : > { %3385 = vpow2.f32 %v2241_v4  ;;  %v2245_v29 = vmul.f32 1.442695, %v2233_v62  ;;  %v2161_v3 = vsub.f32 %v4693_v55, %v2150_v54  ;;  %v1954_v54 = vld [vmem:[#allocation3 + $0x50] sm:$0xff] }
 0x701   : > { %3387 = vpow2.f32 %v2169_v41  ;;  %v2152_v5 = vpop.xlane.xlu1 %2151 }
 0x702   : > { %v4733_v13 = vpop.eup %3381  ;;  %3389 = vpow2.f32 %v2171_v15  ;;  %v2173_v8 = vmul.f32 1.442695, %v2161_v3  ;;  %v2162_v46 = vsub.f32 %v4696_v20, %v2152_v5  ;;  %v1955_v15 = vld [vmem:[#allocation3 + $0x58] sm:$0xff] }
 0x703   : > { %2183 = vadd.xlane.f32.xlu1 %v4733_v13  ;;  %v4737_v27 = vpop.eup %3383  ;;  %v2224_v39 = vpop.xlane.xlu0 %2223  ;;  %3391 = vpow2.f32 %v2245_v29  ;;  %v1973_v29 = vld [vmem:[#allocation3 + $0xe8] sm:$0xff]  ;;  %v1981_v5 = vpack.c.bf16 %v1955_v15, %v1954_v54 }
 0x704   : > { %3393 = vpow2.f32 %v2173_v8  ;;  %v2234_v61 = vsub.f32 %v4691_v24, %v2224_v39  ;;  %v2175_v43 = vmul.f32 1.442695, %v2162_v46  ;;  %v1972_v39 = vld [vmem:[#allocation3 + $0xe0] sm:$0xff] }
 0x705   : > { %v1956_v8 = vld [vmem:[#allocation3 + $0x60] sm:$0xff] }
 0x706   : > { %v2247_v33 = vmul.f32 1.442695, %v2234_v61 }
 0x707   : > { %2255 = vadd.xlane.f32.xlu1 %v4737_v27 }
 0x70a   : > { %v4741_v18 = vpop.eup %3385  ;;  %v2154_v10 = vpop.xlane.xlu0 %2153 }
 0x70b   : > { %2257 = vadd.xlane.f32.xlu0 %v4741_v18  ;;  %v4744_v19 = vpop.eup %3387  ;;  %v2163_v58 = vsub.f32 %v4701_v40, %v2154_v10  ;;  %v1737_v40 = vmul.f32 %v3810_v56, %v3786_v37  ;;  %v2232_v56 = vsub.f32 %v4681_v14, %v4724_v48  ;;  %v1970_v48 = vld [vmem:[#allocation3 + $0xd0] sm:$0xff]  ;;  %v1990_v10 = vpack.c.bf16 %v1973_v29, %v1972_v39 }
 0x70c   : > { %v2156_v12 = vpop.xlane.xlu1 %2155  ;;  %v4749_v22 = vpop.eup %3389  ;;  %v1989_v60 = vpack.c.bf16 %v1971_v26, %v1970_v48 }
 0x70d   : > { %v2177_v55 = vmul.f32 1.442695, %v2163_v58  ;;  %v4753_v42 = vpop.eup %3391  ;;  %v2243_v36 = vmul.f32 1.442695, %v2232_v56  ;;  %v2164_v35 = vsub.f32 %v4705_v6, %v2156_v12  ;;  %v1957_v12 = vld [vmem:[#allocation3 + $0x68] sm:$0xff]  ;;  %v1975_v58 = vld [vmem:[#allocation3 + $0xf8] sm:$0xff] }
 0x70e   : > { %v2226_v7 = vpop.xlane.xlu0 %2225  ;;  %v4761_v51 = vpop.eup %3393 }
 0x70f   : > { %2185 = vadd.xlane.f32.xlu0 %v4744_v19  ;;  %v2235_v34 = vsub.f32 %v4703_v23, %v2226_v7  ;;  %v2179_v14 = vmul.f32 1.442695, %v2164_v35  ;;  %v1974_v7 = vld [vmem:[#allocation3 + $0xf0] sm:$0xff] }
 0x710   : > { %v2228_v16 = vpop.xlane.xlu1 %2227 }
 0x711   : > { %v2249_v0 = vmul.f32 1.442695, %v2235_v34  ;;  %v2236_v32 = vsub.f32 %v4708_v49, %v2228_v16  ;;  %v1958_v34 = vld [vmem:[#allocation3 + $0x70] sm:$0xff]  ;;  %v1959_v16 = vld [vmem:[#allocation3 + $0x78] sm:$0xff] }
 0x712   : > { %v1877_v31 = vpop.permute.xlu0 %1876 }
 0x713   : > { %2187 = vadd.xlane.f32.xlu0 %v4749_v22  ;;  %3395 = vpow2.f32 %v2249_v0  ;;  %1882 = vst.msk [vmem:[#allocation3 + $0xc0] sm:$0xff] %vm575_vm1, %v1877_v31  ;;  %v2251_v11 = vmul.f32 1.442695, %v2236_v32 }
 0x714   : > { %v1879_v59 = vpop.permute.xlu1 %1878  ;;  %3397 = vpow2.f32 %v2177_v55  ;;  %v1983_v55 = vpack.c.bf16 %v1959_v16, %v1958_v34  ;;  %v3079_v16 = vld [vmem:[%s5022_s7 + $0x18] sm:$0xff] }
 0x715   : > { %1883 = vst.msk [vmem:[#allocation3 + $0xc8] sm:$0xff] %vm575_vm1, %v1879_v59  ;;  %3399 = vpow2.f32 %v2243_v36 }
 0x716   : > { %v1741_v23 = vpop.permute.xlu0 %1740  ;;  %3401 = vpow2.f32 %v2247_v33 }
 0x717   : > { %2261 = vadd.xlane.f32.xlu0 %v4753_v42  ;;  %1746 = vst.msk [vmem:[#allocation3 + $0x40] sm:$0xff] %vm575_vm1, %v1741_v23  ;;  %3403 = vpow2.f32 %v2175_v43 }
 0x718   : > { %1742 = vrot.lane.b32.xlu1 %v1737_v40, %s3505_s19  ;;  %3405 = vpow2.f32 %v2251_v11 }
 0x719   : > { %3407 = vpow2.f32 %v2179_v14 }
 0x71a   : > { %v1968_v17 = vld [vmem:[#allocation3 + $0xc0] sm:$0xff] }
 0x71b   : > { %2189 = vadd.xlane.f32.xlu0 %v4761_v51 }
 0x71c   : > { %v1969_v52 = vld [vmem:[#allocation3 + $0xc8] sm:$0xff] }
 0x71d   : > { %v4764_v63 = vpop.eup %3395  ;;  %v1988_v45 = vpack.c.bf16 %v1969_v52, %v1968_v17 }
 0x71e   : > { %v4767_v37 = vpop.eup %3397  ;;  %v1952_v53 = vld [vmem:[#allocation3 + $0x40] sm:$0xff] }
 0x71f   : > { %2265 = vadd.xlane.f32.xlu0 %v4764_v63  ;;  %3146 = vmatprep.subr.bf16.mxu0 %v1988_v45  ;;  %v4776_v44 = vpop.eup %3399 }
 0x720   : > { %v4779_v9 = vpop.eup %3401 }
 0x721   : > { %v4782_v24 = vpop.eup %3403 }
 0x722   : > { %v4785_v20 = vpop.eup %3405 }
 0x723   : > { %2193 = vadd.xlane.f32.xlu0 %v4767_v37  ;;  %v4788_v6 = vpop.eup %3407 }
 0x73c   : > { %2259 = vadd.xlane.f32.xlu1 %v4776_v44 }
 0x740   : > { %2263 = vadd.xlane.f32.xlu1 %v4779_v9 }
 0x744   : > { %2191 = vadd.xlane.f32.xlu1 %v4782_v24 }
 0x748   : > { %2267 = vadd.xlane.f32.xlu1 %v4785_v20 }
 0x74c   : > { %2195 = vadd.xlane.f32.xlu1 %v4788_v6 }
 0x788   : > { %v2182_v49 = vpop.xlane.xlu0 %2181 }
 0x78c   : > { %v2254_v28 = vpop.xlane.xlu0 %2253 }
 0x78d   : > { %3409 = vrcp.f32 %v2254_v28 }
 0x790   : > { %v2184_v57 = vpop.xlane.xlu1 %2183 }
 0x794   : > { %v2256_v21 = vpop.xlane.xlu1 %2255 }
 0x795   : > { %3411 = vrcp.f32 %v2256_v21 }
 0x796   : > { %3413 = vrcp.f32 %v2184_v57 }
 0x797   : > { %v3410_v2 = vpop.eup %3409  ;;  %3415 = vrcp.f32 %v2182_v49 }
 0x798   : > { %v1743_v47 = vpop.permute.xlu1 %1742  ;;  %v2270_v38 = vmul.f32 %v3410_v2, %v4729_v25  ;;  %v1982_v25 = vpack.c.bf16 %v1957_v12, %v1956_v8  ;;  %v2258_v17 = vpop.xlane.xlu0 %2257 }
 0x799   : > { %1747 = vst.msk [vmem:[#allocation3 + $0x48] sm:$0xff] %vm575_vm1, %v1743_v47 }
 0x79c   : > { %v2186_v52 = vpop.xlane.xlu0 %2185 }
 0x79f   : > { %v3412_v30 = vpop.eup %3411 }
 0x7a0   : > { %v1953_v4 = vld [vmem:[#allocation3 + $0x48] sm:$0xff]  ;;  %v2272_v41 = vmul.f32 %v3412_v30, %v4737_v27  ;;  %v1991_v27 = vpack.c.bf16 %v1975_v58, %v1974_v7  ;;  %v3414_v0 = vpop.eup %3413  ;;  %v2188_v45 = vpop.xlane.xlu0 %2187 }
 0x7a1   : > { %v1980_v62 = vpack.c.bf16 %v1953_v4, %v1952_v53  ;;  %v3416_v31 = vpop.eup %3415  ;;  %v2200_v59 = vmul.f32 %v3414_v0, %v4733_v13  ;;  %3417 = vrcp.f32 %v2188_v45  ;;  %v3080_v0 = vld [vmem:[%s5022_s7 + $0x20] sm:$0xff] }
 0x7a2   : > { %v2286_v3 = vpack.c.bf16 %v2272_v41, %v2270_v38  ;;  %v2198_v40 = vmul.f32 %v3416_v31, %v4722_v1  ;;  %3419 = vrcp.f32 %v2258_v17 }
 0x7a3   : > { %3147 = vmatpush3.bf16.msra.mxu0 %v1980_v62  ;;  %3421 = vrcp.f32 %v2186_v52 }
 0x7a4   : > { %2325 = vmatprep.mubr.bf16.mxu0 %v2286_v3  ;;  %3148 = vmatprep.subr.bf16.mxu0 %v1989_v60  ;;  %v2285_v23 = vpack.c.bf16 %v2200_v59, %v2198_v40  ;;  %v2262_v56 = vpop.xlane.xlu0 %2261  ;;  %v3282_v59 = vpack.c.bf16 %v3080_v0, %v3079_v16 }
 0x7a7   : > { %3149 = vmatpush3.bf16.msra.mxu0 %v1981_v5 }
 0x7a8   : > { %3150 = vmatprep.subr.bf16.mxu0 %v1990_v10  ;;  %v2190_v36 = vpop.xlane.xlu0 %2189 }
 0x7ab   : > { %3151 = vmatpush3.bf16.msra.mxu0 %v1982_v25  ;;  %v3418_v13 = vpop.eup %3417 }
 0x7ac   : > { %3152 = vmatprep.subr.bf16.mxu0 %v1991_v27  ;;  %v2266_v33 = vpop.xlane.xlu0 %2265  ;;  %v3420_v43 = vpop.eup %3419  ;;  %v2204_v11 = vmul.f32 %v3418_v13, %v4749_v22 }
 0x7ad   : > { %v3422_v32 = vpop.eup %3421  ;;  %v2274_v28 = vmul.f32 %v3420_v43, %v4741_v18 }
 0x7ae   : > { %v2202_v47 = vmul.f32 %v3422_v32, %v4744_v19 }
 0x7af   : > { %3153 = vmatpush3.bf16.msra.mxu0 %v1983_v55 }
 0x7b0   : > { %v2194_v14 = vpop.xlane.xlu0 %2193  ;;  %v2287_v26 = vpack.c.bf16 %v2204_v11, %v2202_v47 }
 0x7b2   : > { %2326 = vmatmul.mubr.bf16.vlgmr.msra.gmra.mrb[8].mxu0 %v2285_v23 }
 0x7c9   : > { %v2260_v61 = vpop.xlane.xlu1 %2259 }
 0x7ca   : > { %3423 = vrcp.f32 %v2260_v61 }
 0x7cb   : > { %3425 = vrcp.f32 %v2262_v56  ;;  %v5077_v56 = vmov 0.0  }
 0x7cd   : > { %v2264_v46 = vpop.xlane.xlu1 %2263 }
 0x7ce   : > { %3427 = vrcp.f32 %v2264_v46 }
 0x7cf   : > { %3429 = vrcp.f32 %v2190_v36  ;;  %v3081_v36 = vld [vmem:[%s5022_s7 + $0x28] sm:$0xff] }
 0x7d1   : > { %v2192_v1 = vpop.xlane.xlu1 %2191 }
 0x7d2   : > { %3431 = vrcp.f32 %v2192_v1 }
 0x7d3   : > { %3433 = vrcp.f32 %v2266_v33 }
 0x7d4   : > { %v3424_v35 = vpop.eup %3423 }
 0x7d5   : > { %v2268_v49 = vpop.xlane.xlu1 %2267  ;;  %v2276_v57 = vmul.f32 %v3424_v35, %v4776_v44  ;;  %v3426_v21 = vpop.eup %3425 }
 0x7d6   : > { %3435 = vrcp.f32 %v2268_v49  ;;  %v2278_v53 = vmul.f32 %v3426_v21, %v4753_v42  ;;  %v3483_v49 = vld [vmem:[%s3674_s30] sm:$0x1] }
 0x7d7   : > { %v2288_v2 = vpack.c.bf16 %v2276_v57, %v2274_v28  ;;  %3437 = vrcp.f32 %v2194_v14  ;;  %v3072_v28 = vld [vmem:[%s5020_s5 + $0x2] ss:$0 sm:$0xff] }
 0x7d8   : > { %v3428_v48 = vpop.eup %3427 }
 0x7d9   : > { %v2196_v30 = vpop.xlane.xlu1 %2195  ;;  %2333 = vmatprep.mubr.bf16.mxu0 %v2288_v2  ;;  %v2280_v22 = vmul.f32 %v3428_v48, %v4779_v9  ;;  %v3430_v4 = vpop.eup %3429 }
 0x7da   : > { %3439 = vrcp.f32 %v2196_v30  ;;  %2334 = vmatmul.mubr.bf16.gmra.mrb[12].mxu0 %v2287_v26  ;;  %v2206_v44 = vmul.f32 %v3430_v4, %v4761_v51  ;;  %v3317_v51 = vld [vmem:[%s5025_s10] sm:$0xff]  }
 0x7db   : > { %v2290_v18 = vpack.c.bf16 %v2280_v22, %v2278_v53  ;;  %3229 = vmatprep.subr.bf16.mxu0 %v3317_v51  ;;  %v3484_v53 = vld [vmem:[%s3665_s22 + $0x10] sm:$0xff]  ;;  %v3485_v4 = vld [vmem:[%s3665_s22] sm:$0xff] }
 0x7dc   : > { %v3432_v38 = vpop.eup %3431  ;;  %3230 = vmatpush3.bf16.msra.mxu0 %v3317_v51 }
 0x7dd   : > { %2341 = vmatprep.mubr.bf16.mxu0 %v2290_v18  ;;  %v2208_v19 = vmul.f32 %v3432_v38, %v4782_v24  ;;  %v3434_v41 = vpop.eup %3433  ;;  %v5076_v24 = vmov 0.0|0.0  }
 0x7de   : > { %v2282_v15 = vmul.f32 %v3434_v41, %v4764_v63  ;;  %v3318_v63 = vld [vmem:[%s5025_s10 + $0x8] sm:$0xff]  }
 0x7df   : > { %v2289_v60 = vpack.c.bf16 %v2208_v19, %v2206_v44  ;;  %3231 = vmatprep.subr.bf16.mxu0 %v3318_v63  ;;  %v3486_v44 = vld [vmem:[%s3665_s22 + $0x18] sm:$0xff]  ;;  %v3487_v41 = vld [vmem:[%s3665_s22 + $0x8] sm:$0xff] }
 0x7e0   : > { %v3436_v54 = vpop.eup %3435  ;;  %3232 = vmatpush3.bf16.msra.mxu0 %v3318_v63 }
 0x7e1   : > { %v2284_v62 = vmul.f32 %v3436_v54, %v4785_v20  ;;  %v3438_v42 = vpop.eup %3437  ;;  %3281 = vmatprep.subr.bf16.mxu0 %v5076_v24 }
 0x7e2   : > { %2342 = vmatmul.mubr.bf16.gmra.mrb[16].mxu0 %v2289_v60  ;;  %v2210_v29 = vmul.f32 %v3438_v42, %v4767_v37 }
 0x7e3   : > { %v2292_v9 = vpack.c.bf16 %v2284_v62, %v2282_v15 }
 0x7e4   : > { %v3440_v39 = vpop.eup %3439 }
 0x7e5   : > { %2349 = vmatprep.mubr.bf16.mxu0 %v2292_v9  ;;  %v2212_v3 = vmul.f32 %v3440_v39, %v4788_v6 }
 0x7e7   : > { %v2291_v5 = vpack.c.bf16 %v2212_v3, %v2210_v29 }
 0x7ea   : > { %2350 = vmatmul.mubr.bf16.gmra.mrb[20].mxu0 %v2291_v5 }
 0x885   : > { %v3154_v20 = vpop.f32.mrb[8].mxu0 }
 0x886   : > { %v3155_v37 = vpop.f32.mrb[9].mxu0 }
 0x887   : > { %v3156_v10 = vadd.f32 %v3155_v37, %v3154_v20  ;;  %v3157_v6 = vpop.f32.mrb[10].mxu0 }
 0x888   : > { %v3158_v8 = vpop.f32.mrb[11].mxu0 }
 0x889   : > { %v3159_v12 = vadd.f32 %v3158_v8, %v3157_v6  ;;  %v3488_v6 = vld [vmem:[%s3665_s22 + $0x30] sm:$0xff] }
 0x88b   : > { %v2358_v7 = vpack.c.bf16 %v3159_v12, %v3156_v10  ;;  %v3489_v12 = vld [vmem:[%s3665_s22 + $0x20] sm:$0xff] }
 0x88d   : > { %3233 = vmatprep.mubr.msk.bf16.mxu0 %vm575_vm1, %v2358_v7 }
 0x8ad   : > { %v3160_v58 = vpop.f32.mrb[12].mxu0 }
 0x8ae   : > { %v3161_v25 = vpop.f32.mrb[13].mxu0 }
 0x8af   : > { %v3162_v27 = vadd.f32 %v3161_v25, %v3160_v58  ;;  %v3163_v34 = vpop.f32.mrb[14].mxu0  ;;  %v3490_v25 = vld [vmem:[%s3665_s22 + $0x38] sm:$0xff] }
 0x8b0   : > { %v3164_v31 = vpop.f32.mrb[15].mxu0 }
 0x8b1   : > { %v3165_v55 = vadd.f32 %v3164_v31, %v3163_v34  ;;  %v3491_v34 = vld [vmem:[%s3665_s22 + $0x28] sm:$0xff]  ;;  %s474_s22 = scalar_lea.vmem %s5028_s13, %s3099_s18 }
 0x8b3   : > { %v2359_v40 = vpack.c.bf16 %v3165_v55, %v3162_v27 }
 0x8b5   : > { %v3166_v23 = vpop.f32.mrb[16].mxu0  ;;  %3234 = vmatmul.mubr.msk.bf16.vlgmr.msra.gmra.mrb[24].mxu0 %vm575_vm1, %v2359_v40 }
 0x8b6   : > { %v3167_v17 = vpop.f32.mrb[17].mxu0  ;;  %3283 = vmatpush3.bf16.msra.mxu0 %v3282_v59 }
 0x8b7   : > { %v3168_v52 = vadd.f32 %v3167_v17, %v3166_v23  ;;  %v3169_v45 = vpop.f32.mrb[18].mxu0  ;;  %3245 = vmatprep.subr.mxu0 %v5077_v56 }
 0x8b8   : > { %v3170_v61 = vpop.f32.mrb[19].mxu0 }
 0x8b9   : > { %v3171_v46 = vadd.f32 %v3170_v61, %v3169_v45  ;;  %v3320_v61 = vld [vmem:[%s5026_s11 + $0x8] sm:$0xff]  }
 0x8ba   : > { %3246 = vmatpush3.msra.mxu0 %v3081_v36  ;;  %v3319_v36 = vld [vmem:[%s5026_s11] sm:$0xff]  }
 0x8bb   : > { %v2360_v33 = vpack.c.bf16 %v3171_v46, %v3168_v52  ;;  %3250 = vmatprep.subr.bf16.mxu0 %v3319_v36 }
 0x8bd   : > { %v3172_v13 = vpop.f32.mrb[20].mxu0  ;;  %3237 = vmatprep.mubr.msk.bf16.mxu0 %vm575_vm1, %v2360_v33 }
 0x8be   : > { %v3173_v1 = vpop.f32.mrb[21].mxu0 }
 0x8bf   : > { %v3174_v43 = vadd.f32 %v3173_v1, %v3172_v13  ;;  %v3175_v32 = vpop.f32.mrb[22].mxu0 }
 0x8c0   : > { %v3176_v35 = vpop.f32.mrb[23].mxu0 }
 0x8c1   : > { %v3177_v11 = vadd.f32 %v3176_v35, %v3175_v32 }
 0x8c3   : > { %v2361_v14 = vpack.c.bf16 %v3177_v11, %v3174_v43 }
 0x8c5   : > { %3238 = vmatmul.mubr.msk.bf16.gmra.mrb[28].mxu0 %vm575_vm1, %v2361_v14 }
 0x8c6   : > { %3247 = vmatprep.mubr.msk.f32.mxu0 %vm3501_vm0, %v5077_v56 }
 0x8cd   : > { %3248 = vmatmul.mubr.msk.f32.vlgmr.msra.gmra.mrb[2].mxu0 %vm493_vm2, %v3483_v49 }
 0x8ce   : > { %3251 = vmatpush3.bf16.msra.mxu0 %v3319_v36  ;;  %v3321_v36 = vld [vmem:[%s5027_s12] sm:$0xff]  }
 0x8cf   : > { %3252 = vmatprep.subr.bf16.mxu0 %v3320_v61  ;;  %3262 = vmatprep.subr.bf16.mxu1 %v3321_v36 }
 0x8d0   : > { %3263 = vmatpush3.bf16.msra.mxu1 %v3321_v36 }
 0x8d2   : > { %3253 = vmatpush3.bf16.msra.mxu0 %v3320_v61  ;;  %v3322_v61 = vld [vmem:[%s5027_s12 + $0x8] sm:$0xff]  }
 0x8d3   : > { %3264 = vmatprep.subr.bf16.mxu1 %v3322_v61 }
 0x8d4   : > { %3265 = vmatpush3.bf16.msra.mxu1 %v3322_v61 }
 0x988   : > { %v3235_v57 = vpop.f32.mrb[24].mxu0 }
 0x989   : > { %v2437_v21 = vadd.f32 %v3235_v57, %v3072_v28  ;;  %v2428_v47 = vpop.f32.mrb[25].mxu0 }
 0x98a   : > { %v2429_v2 = vadd.f32 %v3072_v28, %v2428_v47  ;;  %v3236_v48 = vpop.f32.mrb[26].mxu0 }
 0x98b   : > { %v2440_v26 = vadd.f32 %v3236_v48, %v3072_v28  ;;  %v2431_v30 = vpop.f32.mrb[27].mxu0  ;;  %v4837_v22 = vadd.f32 %v3484_v53, %v2437_v21 }
 0x98c   : > { %v4840_v18 = vadd.f32 %v3485_v4, %v2429_v2  ;;  %v2432_v38 = vadd.f32 %v3072_v28, %v2431_v30 }
 0x98d   : > { %v4843_v19 = vadd.f32 %v3486_v44, %v2440_v26  ;;  %v2543_v42 = vmul.f32 %v4837_v22, %v4837_v22 }
 0x98e   : > { %v4846_v60 = vadd.f32 %v3487_v41, %v2432_v38  ;;  %v2541_v54 = vmul.f32 %v4840_v18, %v4840_v18 }
 0x98f   : > { %v2544_v39 = vmul.f32 %v4843_v19, %v4843_v19  ;;  %v2555_v29 = vsel %vm575_vm1, %v2543_v42, 0.0 }
 0x990   : > { %v2549_v15 = vsel %vm575_vm1, %v2541_v54, 0.0  ;;  %v2542_v62 = vmul.f32 %v4846_v60, %v4846_v60 }
 0x991   : > { %2550 = vadd.xlane.f32.xlu0 %v2549_v15  ;;  %v2558_v3 = vsel %vm575_vm1, %v2544_v39, 0.0 }
 0x992   : > { %v2552_v9 = vsel %vm575_vm1, %v2542_v62, 0.0 }
 0x993   : > { %2553 = vadd.xlane.f32.xlu1 %v2552_v9 }
 0x995   : > { %2556 = vadd.xlane.f32.xlu0 %v2555_v29 }
 0x997   : > { %2559 = vadd.xlane.f32.xlu1 %v2558_v3 }
 0x998   : > { %v3239_v5 = vpop.f32.mrb[28].mxu0 }
 0x999   : > { %v2453_v51 = vadd.f32 %v3239_v5, %v3072_v28  ;;  %v2444_v63 = vpop.f32.mrb[29].mxu0 }
 0x99a   : > { %v2445_v24 = vadd.f32 %v3072_v28, %v2444_v63  ;;  %v3240_v20 = vpop.f32.mrb[30].mxu0 }
 0x99b   : > { %v2456_v37 = vadd.f32 %v3240_v20, %v3072_v28  ;;  %v2447_v10 = vpop.f32.mrb[31].mxu0  ;;  %v4861_v8 = vadd.f32 %v3488_v6, %v2453_v51 }
 0x99c   : > { %v4864_v7 = vadd.f32 %v3489_v12, %v2445_v24  ;;  %v2448_v58 = vadd.f32 %v3072_v28, %v2447_v10 }
 0x99d   : > { %v4867_v27 = vadd.f32 %v3490_v25, %v2456_v37  ;;  %v2547_v59 = vmul.f32 %v4861_v8, %v4861_v8 }
 0x99e   : > { %v4870_v16 = vadd.f32 %v3491_v34, %v2448_v58  ;;  %v2545_v0 = vmul.f32 %v4864_v7, %v4864_v7 }
 0x99f   : > { %v2548_v23 = vmul.f32 %v4867_v27, %v4867_v27  ;;  %v2567_v17 = vsel %vm575_vm1, %v2547_v59, 0.0 }
 0x9a0   : > { %v2561_v31 = vsel %vm575_vm1, %v2545_v0, 0.0  ;;  %v2546_v55 = vmul.f32 %v4870_v16, %v4870_v16  ;;  %v2537_v45 = vpop.f32.mrb[2].mxu0 }
 0x9a1   : > { %2562 = vadd.xlane.f32.xlu0 %v2561_v31  ;;  %v2570_v52 = vsel %vm575_vm1, %v2548_v23, 0.0  ;;  %v3249_v56 = vpop.f32.mrb[3].mxu0  ;;  %v2538_v57 = vadd.f32 1.0, %v2537_v45 }
 0x9a2   : > { %v2564_v40 = vsel %vm575_vm1, %v2546_v55, 0.0 }
 0x9a3   : > { %2565 = vadd.xlane.f32.xlu1 %v2564_v40  ;;  %v2600_v47 = vrot.slane %v2538_v57, %v5074_v50 }
 0x9a5   : > { %2568 = vadd.xlane.f32.xlu0 %v2567_v17 }
 0x9a7   : > { %2571 = vadd.xlane.f32.xlu1 %v2570_v52 }
 0xa1e   : > { %v2551_v46 = vpop.xlane.xlu0 %2550 }
 0xa1f   : > { %v2573_v33 = vmul.f32 0.03125, %v2551_v46 }
 0xa20   : > { %v2554_v13 = vpop.xlane.xlu1 %2553 }
 0xa21   : > { %v2581_v1 = vadd.f32 1e-06, %v2573_v33  ;;  %v2574_v43 = vmul.f32 0.03125, %v2554_v13 }
 0xa22   : > { %v2557_v32 = vpop.xlane.xlu0 %2556 }
 0xa23   : > { %3441 = vrsqrt.f32 %v2581_v1  ;;  %v2582_v35 = vadd.f32 1e-06, %v2574_v43  ;;  %v2575_v11 = vmul.f32 0.03125, %v2557_v32 }
 0xa24   : > { %v2560_v14 = vpop.xlane.xlu1 %2559 }
 0xa25   : > { %3443 = vrsqrt.f32 %v2582_v35  ;;  %v2583_v49 = vadd.f32 1e-06, %v2575_v11  ;;  %v2576_v28 = vmul.f32 0.03125, %v2560_v14 }
 0xa27   : > { %3445 = vrsqrt.f32 %v2583_v49  ;;  %v2584_v21 = vadd.f32 1e-06, %v2576_v28 }
 0xa29   : > { %3447 = vrsqrt.f32 %v2584_v21 }
 0xa2d   : > { %v3442_v2 = vpop.eup %3441 }
 0xa2e   : > { %v2563_v48 = vpop.xlane.xlu0 %2562  ;;  %v2601_v26 = vmul.f32 %v3442_v2, %v2600_v47 }
 0xa2f   : > { %v3444_v30 = vpop.eup %3443  ;;  %v2577_v53 = vmul.f32 0.03125, %v2563_v48 }
 0xa30   : > { %v2566_v4 = vpop.xlane.xlu1 %2565  ;;  %v2602_v38 = vmul.f32 %v3444_v30, %v2600_v47  ;;  %v2609_v62 = vmul.f32 %v2601_v26, %v4840_v18 }
 0xa31   : > { %v3446_v44 = vpop.eup %3445  ;;  %v2585_v41 = vadd.f32 1e-06, %v2577_v53  ;;  %v2578_v54 = vmul.f32 0.03125, %v2566_v4 }
 0xa32   : > { %v2569_v15 = vpop.xlane.xlu0 %2568  ;;  %v2610_v42 = vmul.f32 %v2602_v38, %v4846_v60  ;;  %v2603_v9 = vmul.f32 %v3446_v44, %v2600_v47 }
 0xa33   : > { %v3448_v39 = vpop.eup %3447  ;;  %3449 = vrsqrt.f32 %v2585_v41  ;;  %v2586_v29 = vadd.f32 1e-06, %v2578_v54  ;;  %v2579_v50 = vmul.f32 0.03125, %v2569_v15  ;;  %v3323_v15 = vld [vmem:[%s5027_s12 + $0x10] sm:$0xff]  }
 0xa34   : > { %v2572_v3 = vpop.xlane.xlu1 %2571  ;;  %v2617_v5 = vpack.c.bf16 %v2610_v42, %v2609_v62  ;;  %v2604_v51 = vmul.f32 %v3448_v39, %v2600_v47  ;;  %v2611_v20 = vmul.f32 %v2603_v9, %v4837_v22  ;;  %3266 = vmatprep.subr.bf16.mxu1 %v3323_v15 }
 0xa35   : > { %3451 = vrsqrt.f32 %v2586_v29  ;;  %v2587_v63 = vadd.f32 1e-06, %v2579_v50  ;;  %v2580_v24 = vmul.f32 0.03125, %v2572_v3  ;;  %3267 = vmatpush3.bf16.msra.mxu1 %v3323_v15 }
 0xa36   : > { %3254 = vmatprep.mubr.msk.bf16.mxu0 %vm575_vm1, %v2617_v5  ;;  %v2612_v37 = vmul.f32 %v2604_v51, %v4843_v19 }
 0xa37   : > { %3453 = vrsqrt.f32 %v2587_v63  ;;  %v2588_v10 = vadd.f32 1e-06, %v2580_v24 }
 0xa38   : > { %v2618_v6 = vpack.c.bf16 %v2612_v37, %v2611_v20 }
 0xa39   : > { %3455 = vrsqrt.f32 %v2588_v10 }
 0xa3a   : > { %3255 = vmatmul.mubr.msk.bf16.vlgmr.msra.gmra.mrb[32].mxu0 %vm575_vm1, %v2618_v6 }
 0xa3d   : > { %v3450_v12 = vpop.eup %3449 }
 0xa3e   : > { %v2605_v58 = vmul.f32 %v3450_v12, %v2600_v47 }
 0xa3f   : > { %v3452_v25 = vpop.eup %3451 }
 0xa40   : > { %v2606_v34 = vmul.f32 %v3452_v25, %v2600_v47  ;;  %v2613_v31 = vmul.f32 %v2605_v58, %v4864_v7 }
 0xa41   : > { %v3454_v0 = vpop.eup %3453 }
 0xa42   : > { %v2614_v55 = vmul.f32 %v2606_v34, %v4870_v16  ;;  %v2607_v59 = vmul.f32 %v3454_v0, %v2600_v47  ;;  %v3324_v34 = vld [vmem:[%s5027_s12 + $0x18] sm:$0xff]  }
 0xa43   : > { %v3456_v40 = vpop.eup %3455  ;;  %3268 = vmatprep.subr.bf16.mxu1 %v3324_v34 }
 0xa44   : > { %v2619_v23 = vpack.c.bf16 %v2614_v55, %v2613_v31  ;;  %v2608_v17 = vmul.f32 %v3456_v40, %v2600_v47  ;;  %v2615_v52 = vmul.f32 %v2607_v59, %v4861_v8  ;;  %3269 = vmatpush3.bf16.msra.mxu1 %v3324_v34 }
 0xa46   : > { %3258 = vmatprep.mubr.msk.bf16.mxu0 %vm575_vm1, %v2619_v23  ;;  %v2616_v45 = vmul.f32 %v2608_v17, %v4867_v27 }
 0xa48   : > { %v2620_v56 = vpack.c.bf16 %v2616_v45, %v2615_v52 }
 0xa4a   : > { %3259 = vmatmul.mubr.msk.bf16.gmra.mrb[36].mxu0 %vm575_vm1, %v2620_v56 }
 0xb0d   : > { %v4909_v46 = vpop.f32.mrb[32].mxu0 }
 0xb0e   : > { %v2724_v33 = vmul.f32 0.044715, %v4909_v46  ;;  %v4912_v13 = vpop.f32.mrb[33].mxu0  ;;  %v2716_v58 = vmul.f32 0.5, %v4909_v46 }
 0xb0f   : > { %v2722_v1 = vmul.f32 0.044715, %v4912_v13  ;;  %v4915_v43 = vpop.f32.mrb[34].mxu0  ;;  %v2714_v55 = vmul.f32 0.5, %v4912_v13 }
 0xb10   : > { %v2732_v32 = vmul.f32 %v4909_v46, %v2724_v33  ;;  %v2725_v35 = vmul.f32 0.044715, %v4915_v43  ;;  %v4919_v11 = vpop.f32.mrb[35].mxu0 }
 0xb11   : > { %v2730_v14 = vmul.f32 %v2722_v1, %v4912_v13  ;;  %v2723_v49 = vmul.f32 0.044715, %v4919_v11  ;;  %v2715_v45 = vmul.f32 0.5, %v4919_v11 }
 0xb12   : > { %v2740_v28 = vmul.f32 %v4909_v46, %v2732_v32  ;;  %v2733_v57 = vmul.f32 %v4915_v43, %v2725_v35 }
 0xb13   : > { %v2738_v21 = vmul.f32 %v2730_v14, %v4912_v13  ;;  %v2731_v47 = vmul.f32 %v2723_v49, %v4919_v11 }
 0xb14   : > { %v2748_v2 = vadd.f32 %v4909_v46, %v2740_v28  ;;  %v2741_v48 = vmul.f32 %v4915_v43, %v2733_v57 }
 0xb15   : > { %v2746_v26 = vadd.f32 %v2738_v21, %v4912_v13  ;;  %v2739_v30 = vmul.f32 %v2731_v47, %v4919_v11  ;;  %v2717_v21 = vmul.f32 0.5, %v4915_v43 }
 0xb16   : > { %v2756_v53 = vmul.f32 0.7978846, %v2748_v2  ;;  %v2749_v4 = vadd.f32 %v4915_v43, %v2741_v48 }
 0xb17   : > { %v2754_v38 = vmul.f32 0.7978846, %v2746_v26  ;;  %v2747_v44 = vadd.f32 %v2739_v30, %v4919_v11 }
 0xb18   : > { %v2757_v41 = vmul.f32 0.7978846, %v2749_v4  ;;  %3457 = vtanh.f32 %v2756_v53 }
 0xb19   : > { %v2755_v54 = vmul.f32 0.7978846, %v2747_v44  ;;  %3459 = vtanh.f32 %v2754_v38 }
 0xb1b   : > { %3461 = vtanh.f32 %v2755_v54 }
 0xb1c   : > { %3463 = vtanh.f32 %v2757_v41 }
 0xb1d   : > { %v4936_v62 = vpop.f32.mrb[36].mxu0 }
 0xb1e   : > { %v2728_v42 = vmul.f32 0.044715, %v4936_v62  ;;  %v4939_v9 = vpop.f32.mrb[37].mxu0 }
 0xb1f   : > { %v2726_v39 = vmul.f32 0.044715, %v4939_v9  ;;  %v4942_v29 = vpop.f32.mrb[38].mxu0  ;;  %v2718_v30 = vmul.f32 0.5, %v4939_v9 }
 0xb20   : > { %v2736_v50 = vmul.f32 %v4936_v62, %v2728_v42  ;;  %v2729_v3 = vmul.f32 0.044715, %v4942_v29  ;;  %v4946_v5 = vpop.f32.mrb[39].mxu0  ;;  %v2720_v42 = vmul.f32 0.5, %v4936_v62 }
 0xb21   : > { %v2734_v51 = vmul.f32 %v2726_v39, %v4939_v9  ;;  %v2727_v63 = vmul.f32 0.044715, %v4946_v5  ;;  %v2719_v38 = vmul.f32 0.5, %v4946_v5 }
 0xb22   : > { %v3458_v24 = vpop.eup %3457  ;;  %v2744_v20 = vmul.f32 %v4936_v62, %v2736_v50  ;;  %v2737_v37 = vmul.f32 %v4942_v29, %v2729_v3  ;;  %v2721_v3 = vmul.f32 0.5, %v4942_v29 }
 0xb23   : > { %v3460_v10 = vpop.eup %3459  ;;  %v2742_v6 = vmul.f32 %v2734_v51, %v4939_v9  ;;  %v2735_v12 = vmul.f32 %v2727_v63, %v4946_v5  ;;  %v2772_v25 = vadd.f32 1.0, %v3458_v24 }
 0xb24   : > { %v2752_v0 = vadd.f32 %v4936_v62, %v2744_v20  ;;  %v2745_v31 = vmul.f32 %v4942_v29, %v2737_v37  ;;  %v2770_v59 = vadd.f32 1.0, %v3460_v10 }
 0xb25   : > { %v3462_v40 = vpop.eup %3461  ;;  %v2750_v23 = vadd.f32 %v2742_v6, %v4939_v9  ;;  %v2743_v17 = vmul.f32 %v2735_v12, %v4946_v5  ;;  %v2780_v52 = vmul.f32 %v2772_v25, %v2716_v58 }
 0xb26   : > { %v3464_v56 = vpop.eup %3463  ;;  %v2760_v36 = vmul.f32 0.7978846, %v2752_v0  ;;  %v2753_v61 = vadd.f32 %v4942_v29, %v2745_v31  ;;  %v2778_v33 = vmul.f32 %v2770_v59, %v2714_v55  ;;  %v2771_v1 = vadd.f32 1.0, %v3462_v40 }
 0xb27   : > { %v2758_v32 = vmul.f32 0.7978846, %v2750_v23  ;;  %v2751_v35 = vadd.f32 %v2743_v17, %v4946_v5  ;;  %2798 = vrot.lane.b32.xlu1 %v2780_v52, %s3513_s23  ;;  %v2773_v57 = vadd.f32 1.0, %v3464_v56 }
 0xb28   : > { %v2761_v14 = vmul.f32 0.7978846, %v2753_v61  ;;  %2794 = vrot.lane.b32.xlu0 %v2778_v33, %s3513_s23  ;;  %v2779_v49 = vmul.f32 %v2771_v1, %v2715_v45  ;;  %3465 = vtanh.f32 %v2760_v36 }
 0xb29   : > { %v2759_v28 = vmul.f32 0.7978846, %v2751_v35  ;;  %3467 = vtanh.f32 %v2758_v32  ;;  %v2781_v47 = vmul.f32 %v2773_v57, %v2717_v21 }
 0xb2a   : > { %3469 = vtanh.f32 %v2761_v14 }
 0xb2b   : > { %3471 = vtanh.f32 %v2759_v28  ;;  %2796 = vrot.lane.b32.xlu1 %v2779_v49, %s3513_s23 }
 0xb2f   : > { %2800 = vrot.lane.b32.xlu1 %v2781_v47, %s3513_s23 }
 0xb32   : > { %v3466_v2 = vpop.eup %3465 }
 0xb33   : > { %v3468_v48 = vpop.eup %3467  ;;  %v2776_v54 = vadd.f32 1.0, %v3466_v2 }
 0xb34   : > { %v3470_v26 = vpop.eup %3469  ;;  %v2774_v53 = vadd.f32 1.0, %v3468_v48 }
 0xb35   : > { %v3472_v4 = vpop.eup %3471  ;;  %v2777_v39 = vadd.f32 1.0, %v3470_v26  ;;  %v2784_v50 = vmul.f32 %v2776_v54, %v2720_v42 }
 0xb36   : > { %v2782_v44 = vmul.f32 %v2774_v53, %v2718_v30  ;;  %v2775_v41 = vadd.f32 1.0, %v3472_v4 }
 0xb37   : > { %v2785_v51 = vmul.f32 %v2777_v39, %v2721_v3 }
 0xb38   : > { %2802 = vrot.lane.b32.xlu0 %v2782_v44, %s3513_s23  ;;  %v2783_v15 = vmul.f32 %v2775_v41, %v2719_v38 }
 0xb3a   : > { %2804 = vrot.lane.b32.xlu1 %v2783_v15, %s3513_s23 }
 0xb3c   : > { %2806 = vrot.lane.b32.xlu0 %v2784_v50, %s3513_s23 }
 0xb3e   : > { %2808 = vrot.lane.b32.xlu1 %v2785_v51, %s3513_s23 }
 0xb99   : > { %v2799_v63 = vpop.permute.xlu1 %2798 }
 0xb9a   : > { %v2795_v24 = vpop.permute.xlu0 %2794  ;;  %v2820_v58 = vmul.f32 %v4909_v46, %v2799_v63 }
 0xb9b   : > { %v2818_v37 = vmul.f32 %v2795_v24, %v4912_v13 }
 0xb9d   : > { %v2797_v20 = vpop.permute.xlu1 %2796 }
 0xb9e   : > { %v2819_v10 = vmul.f32 %v2797_v20, %v4919_v11 }
 0xba0   : > { %v2826_v6 = vpack.c.bf16 %v2819_v10, %v2818_v37 }
 0xba1   : > { %v2801_v12 = vpop.permute.xlu1 %2800 }
 0xba2   : > { %v2821_v25 = vmul.f32 %v4915_v43, %v2801_v12  ;;  %3270 = vmatprep.mubr.msk.bf16.mxu1 %vm2862_vm6, %v2826_v6 }
 0xba4   : > { %v2827_v34 = vpack.c.bf16 %v2821_v25, %v2820_v58 }
 0xba6   : > { %3271 = vmatmul.mubr.msk.bf16.vlgmr.msra.gmra.mrb[24].mxu1 %vm2862_vm6, %v2827_v34 }
 0xbaa   : > { %v2803_v0 = vpop.permute.xlu0 %2802 }
 0xbab   : > { %v2822_v55 = vmul.f32 %v2803_v0, %v4939_v9 }
 0xbac   : > { %v2805_v31 = vpop.permute.xlu1 %2804 }
 0xbad   : > { %v2823_v13 = vmul.f32 %v2805_v31, %v4946_v5 }
 0xbae   : > { %v2807_v11 = vpop.permute.xlu0 %2806 }
 0xbaf   : > { %v2828_v59 = vpack.c.bf16 %v2823_v13, %v2822_v55  ;;  %v2824_v23 = vmul.f32 %v4936_v62, %v2807_v11 }
 0xbb0   : > { %v2809_v40 = vpop.permute.xlu1 %2808 }
 0xbb1   : > { %v2825_v46 = vmul.f32 %v4942_v29, %v2809_v40  ;;  %3274 = vmatprep.mubr.msk.bf16.mxu1 %vm2862_vm6, %v2828_v59 }
 0xbb3   : > { %v2829_v43 = vpack.c.bf16 %v2825_v46, %v2824_v23 }
 0xbb5   : > { %3275 = vmatmul.mubr.msk.bf16.gmra.mrb[28].mxu1 %vm2862_vm6, %v2829_v43 }
 0xc79   : > { %v3272_v9 = vpop.f32.mrb[24].mxu1 }
 0xc7a   : > { %v2918_v5 = vadd.f32 %v3272_v9, %v4837_v22  ;;  %v2909_v17 = vpop.f32.mrb[25].mxu1 }
 0xc7b   : > { %v2910_v52 = vadd.f32 %v2909_v17, %v4840_v18  ;;  %v3273_v45 = vpop.f32.mrb[26].mxu1 }
 0xc7c   : > { %2942 = vst.msk [vmem:[%s474_s22 + $0x10] sm:$0xff] %vm575_vm1, %v2918_v5  ;;  %v2921_v62 = vadd.f32 %v3273_v45, %v4843_v19  ;;  %v2912_v29 = vpop.f32.mrb[27].mxu1 }
 0xc7d   : > { %2940 = vst.msk [vmem:[%s474_s22] sm:$0xff] %vm575_vm1, %v2910_v52  ;;  %v2913_v56 = vadd.f32 %v2912_v29, %v4846_v60 }
 0xc7e   : > { %2943 = vst.msk [vmem:[%s474_s22 + $0x18] sm:$0xff] %vm575_vm1, %v2921_v62 }
 0xc7f   : > { %2941 = vst.msk [vmem:[%s474_s22 + $0x8] sm:$0xff] %vm575_vm1, %v2913_v56 }
 0xc88   : > { %v3276_v36 = vpop.f32.mrb[28].mxu1 }
 0xc89   : > { %v2934_v22 = vadd.f32 %v3276_v36, %v4861_v8  ;;  %v2925_v61 = vpop.f32.mrb[29].mxu1 }
 0xc8a   : > { %v2926_v18 = vadd.f32 %v2925_v61, %v4864_v7  ;;  %v3277_v33 = vpop.f32.mrb[30].mxu1 }
 0xc8b   : > { %2946 = vst.msk [vmem:[%s474_s22 + $0x30] sm:$0xff] %vm575_vm1, %v2934_v22  ;;  %v2937_v19 = vadd.f32 %v3277_v33, %v4867_v27  ;;  %v2928_v1 = vpop.f32.mrb[31].mxu1 }
 0xc8c   : > { %2944 = vst.msk [vmem:[%s474_s22 + $0x20] sm:$0xff] %vm575_vm1, %v2926_v18  ;;  %v2929_v60 = vadd.f32 %v2928_v1, %v4870_v16 }
 0xc8d   : > { %2947 = vst.msk [vmem:[%s474_s22 + $0x38] sm:$0xff] %vm575_vm1, %v2937_v19 }
 0xc8e   : > { %2945 = vst.msk [vmem:[%s474_s22 + $0x28] sm:$0xff] %vm575_vm1, %v2929_v60 }
 0xc8f PF: > { %s23_s25 = sadd.s32 1, %s3498_s25  }
 0xc90   : > { %p20_p4 = scmp.ge.s32.totalorder %s23_s25, 4  }
 0xc92   :  { %22 = sbr.rel (!%p20_p4) target bundleno = 1 (0x1), region = 113 }

</bundles_post_ra>
